<compile_context>
chip_gen: v7x
topology: tpu7x:2x2x1
jax: 0.10.0
libtpu: 0.0.40
codegen_flags: <defaults>
</compile_context>

<pallas_src>
import jax
import jax.numpy as jnp
from jax import lax
from jax.experimental import pallas as pl
from jax.experimental.pallas import tpu as pltpu

H = W = 28
CIN = 1
COUT = 32
KSIZE = 3
NPATCH = KSIZE * KSIZE * CIN      # 9
HW = H * W                        # 784
FEAT = COUT * HW                  # 25088 = 32 * 28 * 28
NCLASS = 10


# ---------------------------------------------------------------------------
# Fused kernel: conv (im2col matmul) + bias + ReLU + fully-connected layer.
# One image per grid step; all weights resident in VMEM (constant index maps).
# ---------------------------------------------------------------------------
def fused_cnn_kernel(p_ref, wconv_ref, bconv_ref, wfc_ref, bfc_ref, o_ref):
    # p_ref:     (1, NPATCH, HW)  im2col patches for this image, (9, 784)
    # wconv_ref: (COUT, NPATCH)   (32, 9)
    # bconv_ref: (COUT, 1)
    # wfc_ref:   (COUT, NCLASS, HW)  FC weight regrouped per input channel
    # bfc_ref:   (1, NCLASS)
    # o_ref:     (1, 1, NCLASS)
    #
    # Conv as (32, 9) @ (9, 784): activation lands in (COUT, HW), i.e. each row c
    # is the contiguous segment [c*HW, (c+1)*HW) of the NCHW-flattened features.
    act = jnp.dot(wconv_ref[...], p_ref[0], preferred_element_type=jnp.float32)
    act = jnp.maximum(act + bconv_ref[...], 0.0)            # (COUT, HW)

    # FC: logits[n] = sum_c  act[c, :] . w_fc[n, c*HW:(c+1)*HW]  + b_fc[n]
    # Contract channel-by-channel against the resident weight; no in-kernel
    # reshape of the activation is ever needed.
    acc = jnp.zeros((1, NCLASS), dtype=jnp.float32)
    for c in range(COUT):                                   # static unroll (32 small matmuls)
        a_c = act[c:c + 1, :]                               # (1, HW)
        w_c = wfc_ref[c]                                    # (NCLASS, HW)
        acc = acc + lax.dot_general(
            a_c, w_c, (((1,), (1,)), ((), ())),             # contract HW with HW (A @ B^T)
            preferred_element_type=jnp.float32)
    o_ref[0] = acc + bfc_ref[...]                           # (1, NCLASS)


def fused_cnn(patches, wconv_mat, bconv_col, wfc3, bfc_row):
    B = patches.shape[0]
    out = pl.pallas_call(
        fused_cnn_kernel,
        out_shape=jax.ShapeDtypeStruct((B, 1, NCLASS), jnp.float32),
        grid_spec=pltpu.PrefetchScalarGridSpec(
            num_scalar_prefetch=0,
            grid=(B,),                                       # one image per step
            in_specs=[
                pl.BlockSpec((1, NPATCH, HW), lambda b: (b, 0, 0)),
                pl.BlockSpec((COUT, NPATCH), lambda b: (0, 0)),      # resident
                pl.BlockSpec((COUT, 1), lambda b: (0, 0)),           # resident
                pl.BlockSpec((COUT, NCLASS, HW), lambda b: (0, 0, 0)),  # resident (~1 MB)
                pl.BlockSpec((1, NCLASS), lambda b: (0, 0)),         # resident
            ],
            out_specs=pl.BlockSpec((1, 1, NCLASS), lambda b: (b, 0, 0)),
        ),
        compiler_params=pltpu.CompilerParams(
            dimension_semantics=("parallel",)),              # megacore-shardable on v7x
    )(patches, wconv_mat, bconv_col, wfc3, bfc_row)
    return out.reshape(B, NCLASS)


# ---------------------------------------------------------------------------
# Glue: im2col (patch-major layout), one-time parameter prep, forward pass.
# ---------------------------------------------------------------------------
def im2col_t(x):
    # x: (B, 1, H, W) NCHW  ->  (B, 9, H*W) with patch index k = ki*3 + kj
    B = x.shape[0]
    xp = jnp.pad(x[:, 0], ((0, 0), (1, 1), (1, 1)))
    cols = [xp[:, i:i + H, j:j + W] for i in range(KSIZE) for j in range(KSIZE)]
    patches = jnp.stack(cols, axis=1)                       # (B, 9, H, W)
    return patches.reshape(B, NPATCH, HW)


def init_params(key):
    k1, k2, k3, k4 = jax.random.split(key, 4)
    w_conv = jax.random.normal(k1, (COUT, CIN, KSIZE, KSIZE), jnp.float32) * 0.1
    b_conv = jax.random.normal(k2, (COUT,), jnp.float32) * 0.1
    w_fc = jax.random.normal(k3, (NCLASS, FEAT), jnp.float32) * 0.01
    b_fc = jax.random.normal(k4, (NCLASS,), jnp.float32) * 0.01
    return w_conv, b_conv, w_fc, b_fc


def prepare_params(params):
    # One-time prep (hoisted out of the forward pass).
    w_conv, b_conv, w_fc, b_fc = params
    wconv_mat = w_conv.reshape(COUT, NPATCH)                # (32, 9), k = ki*3 + kj
    bconv_col = b_conv.reshape(COUT, 1)
    # Regroup FC weight so wfc3[c, n, hw] == w_fc[n, c*HW + hw] (NCHW flatten order),
    # keeping HW (784) as the lane dimension for a dense VMEM layout.
    wfc3 = w_fc.reshape(NCLASS, COUT, HW).transpose(1, 0, 2)  # (32, 10, 784)
    bfc_row = b_fc.reshape(1, NCLASS)
    return wconv_mat, bconv_col, wfc3, bfc_row


def simple_cnn_forward(x, prepped):
    wconv_mat, bconv_col, wfc3, bfc_row = prepped
    patches = im2col_t(x)                                   # (B, 9, 784)
    return fused_cnn(patches, wconv_mat, bconv_col, wfc3, bfc_row)


def reference_forward(x, params):
    w_conv, b_conv, w_fc, b_fc = params
    y = lax.conv_general_dilated(
        x, w_conv, window_strides=(1, 1), padding="SAME",
        dimension_numbers=("NCHW", "OIHW", "NCHW"))
    y = y + b_conv[None, :, None, None]
    y = jnp.maximum(y, 0.0)
    y = y.reshape(x.shape[0], -1)                           # NCHW flatten
    return y @ w_fc.T + b_fc


if __name__ == "__main__":
    key = jax.random.PRNGKey(0)
    kx, kp = jax.random.split(key)
    x = jax.random.normal(kx, (2, CIN, H, W), jnp.float32)  # (B, 1, 28, 28)
    params = init_params(kp)
    prepped = prepare_params(params)                        # one-time prep

    fwd = jax.jit(simple_cnn_forward)
    out = jax.block_until_ready(fwd(x, prepped))

    ref = reference_forward(x, params)
    assert out.shape == (2, NCLASS)
    assert jnp.allclose(out, ref, rtol=1e-4, atol=1e-4), "mismatch vs reference"
    print("KERNEL_OK")
</pallas_src>

<mosaic_0001>
module attributes {stable_mosaic.version = 11 : i64} {
  func.func @fused_cnn_kernel(%arg0: i32, %arg1: memref<1x9x784xf32, #tpu.memory_space<vmem>>, %arg2: memref<32x9xf32, #tpu.memory_space<vmem>>, %arg3: memref<32x1xf32, #tpu.memory_space<vmem>>, %arg4: memref<32x10x784xf32, #tpu.memory_space<vmem>>, %arg5: memref<1x10xf32, #tpu.memory_space<vmem>>, %arg6: memref<1x1x10xf32, #tpu.memory_space<vmem>>) attributes {dimension_semantics = [#tpu.dimension_semantics<parallel>], iteration_bounds = array<i64: 2>, scalar_prefetch = 0 : i64, scratch_operands = 0 : i64, tpu.core_type = #tpu.core_type<tc>, window_params = [{transform_indices = @transform_0, window_bounds = array<i64: 1, 9, 784>}, {pipeline_mode = #tpu.pipeline_mode<synchronous>, transform_indices = @transform_1, window_bounds = array<i64: 32, 9>}, {pipeline_mode = #tpu.pipeline_mode<synchronous>, transform_indices = @transform_2, window_bounds = array<i64: 32, 1>}, {pipeline_mode = #tpu.pipeline_mode<synchronous>, transform_indices = @transform_3, window_bounds = array<i64: 32, 10, 784>}, {pipeline_mode = #tpu.pipeline_mode<synchronous>, transform_indices = @transform_4, window_bounds = array<i64: 1, 10>}, {transform_indices = @transform_5, window_bounds = array<i64: 1, 1, 10>}]} {
    %c0 = arith.constant 0 : index
    %c0_0 = arith.constant 0 : index
    %0 = vector.load %arg2[%c0, %c0_0] : memref<32x9xf32, #tpu.memory_space<vmem>>, vector<32x9xf32>
    %c0_1 = arith.constant 0 : index
    %c0_2 = arith.constant 0 : index
    %c0_3 = arith.constant 0 : index
    %1 = vector.load %arg1[%c0_1, %c0_2, %c0_3] : memref<1x9x784xf32, #tpu.memory_space<vmem>>, vector<1x9x784xf32>
    %2 = vector.shape_cast %1 : vector<1x9x784xf32> to vector<9x784xf32>
    %cst = arith.constant dense<0.000000e+00> : vector<32x784xf32>
    %3 = tpu.matmul %0, %2, %cst {dimension_numbers = #tpu.dot_dimension_numbers<[1], [0], [0], [1], [0, 0, 1, 1], [], []>} : vector<32x9xf32>, vector<9x784xf32>, vector<32x784xf32> -> vector<32x784xf32>
    %c0_4 = arith.constant 0 : index
    %c0_5 = arith.constant 0 : index
    %4 = vector.load %arg3[%c0_4, %c0_5] : memref<32x1xf32, #tpu.memory_space<vmem>>, vector<32x1xf32>
    %5 = vector.broadcast %4 : vector<32x1xf32> to vector<32x784xf32>
    %6 = arith.addf %3, %5 : vector<32x784xf32>
    %cst_6 = arith.constant 0.000000e+00 : f32
    %7 = vector.broadcast %cst_6 : f32 to vector<32x784xf32>
    %8 = arith.maximumf %6, %7 : vector<32x784xf32>
    %cst_7 = arith.constant 0.000000e+00 : f32
    %9 = vector.broadcast %cst_7 : f32 to vector<1x10xf32>
    %10 = vector.extract_strided_slice %8 {offsets = [0, 0], sizes = [1, 784], strides = [1, 1]} : vector<32x784xf32> to vector<1x784xf32>
    %c0_8 = arith.constant 0 : index
    %c0_9 = arith.constant 0 : index
    %c0_10 = arith.constant 0 : index
    %11 = vector.load %arg4[%c0_8, %c0_9, %c0_10] : memref<32x10x784xf32, #tpu.memory_space<vmem>>, vector<1x10x784xf32>
    %12 = vector.shape_cast %11 : vector<1x10x784xf32> to vector<10x784xf32>
    %cst_11 = arith.constant dense<0.000000e+00> : vector<1x10xf32>
    %13 = tpu.matmul %10, %12, %cst_11 {dimension_numbers = #tpu.dot_dimension_numbers<[1], [1], [0], [0], [0, 0, 1, 0], [], []>} : vector<1x784xf32>, vector<10x784xf32>, vector<1x10xf32> -> vector<1x10xf32>
    %14 = arith.addf %9, %13 : vector<1x10xf32>
    %15 = vector.extract_strided_slice %8 {offsets = [1, 0], sizes = [1, 784], strides = [1, 1]} : vector<32x784xf32> to vector<1x784xf32>
    %c1 = arith.constant 1 : index
    %c0_12 = arith.constant 0 : index
    %c0_13 = arith.constant 0 : index
    %16 = vector.load %arg4[%c1, %c0_12, %c0_13] : memref<32x10x784xf32, #tpu.memory_space<vmem>>, vector<1x10x784xf32>
    %17 = vector.shape_cast %16 : vector<1x10x784xf32> to vector<10x784xf32>
    %cst_14 = arith.constant dense<0.000000e+00> : vector<1x10xf32>
    %18 = tpu.matmul %15, %17, %cst_14 {dimension_numbers = #tpu.dot_dimension_numbers<[1], [1], [0], [0], [0, 0, 1, 0], [], []>} : vector<1x784xf32>, vector<10x784xf32>, vector<1x10xf32> -> vector<1x10xf32>
    %19 = arith.addf %14, %18 : vector<1x10xf32>
    %20 = vector.extract_strided_slice %8 {offsets = [2, 0], sizes = [1, 784], strides = [1, 1]} : vector<32x784xf32> to vector<1x784xf32>
    %c2 = arith.constant 2 : index
    %c0_15 = arith.constant 0 : index
    %c0_16 = arith.constant 0 : index
    %21 = vector.load %arg4[%c2, %c0_15, %c0_16] : memref<32x10x784xf32, #tpu.memory_space<vmem>>, vector<1x10x784xf32>
    %22 = vector.shape_cast %21 : vector<1x10x784xf32> to vector<10x784xf32>
    %cst_17 = arith.constant dense<0.000000e+00> : vector<1x10xf32>
    %23 = tpu.matmul %20, %22, %cst_17 {dimension_numbers = #tpu.dot_dimension_numbers<[1], [1], [0], [0], [0, 0, 1, 0], [], []>} : vector<1x784xf32>, vector<10x784xf32>, vector<1x10xf32> -> vector<1x10xf32>
    %24 = arith.addf %19, %23 : vector<1x10xf32>
    %25 = vector.extract_strided_slice %8 {offsets = [3, 0], sizes = [1, 784], strides = [1, 1]} : vector<32x784xf32> to vector<1x784xf32>
    %c3 = arith.constant 3 : index
    %c0_18 = arith.constant 0 : index
    %c0_19 = arith.constant 0 : index
    %26 = vector.load %arg4[%c3, %c0_18, %c0_19] : memref<32x10x784xf32, #tpu.memory_space<vmem>>, vector<1x10x784xf32>
    %27 = vector.shape_cast %26 : vector<1x10x784xf32> to vector<10x784xf32>
    %cst_20 = arith.constant dense<0.000000e+00> : vector<1x10xf32>
    %28 = tpu.matmul %25, %27, %cst_20 {dimension_numbers = #tpu.dot_dimension_numbers<[1], [1], [0], [0], [0, 0, 1, 0], [], []>} : vector<1x784xf32>, vector<10x784xf32>, vector<1x10xf32> -> vector<1x10xf32>
    %29 = arith.addf %24, %28 : vector<1x10xf32>
    %30 = vector.extract_strided_slice %8 {offsets = [4, 0], sizes = [1, 784], strides = [1, 1]} : vector<32x784xf32> to vector<1x784xf32>
    %c4 = arith.constant 4 : index
    %c0_21 = arith.constant 0 : index
    %c0_22 = arith.constant 0 : index
    %31 = vector.load %arg4[%c4, %c0_21, %c0_22] : memref<32x10x784xf32, #tpu.memory_space<vmem>>, vector<1x10x784xf32>
    %32 = vector.shape_cast %31 : vector<1x10x784xf32> to vector<10x784xf32>
    %cst_23 = arith.constant dense<0.000000e+00> : vector<1x10xf32>
    %33 = tpu.matmul %30, %32, %cst_23 {dimension_numbers = #tpu.dot_dimension_numbers<[1], [1], [0], [0], [0, 0, 1, 0], [], []>} : vector<1x784xf32>, vector<10x784xf32>, vector<1x10xf32> -> vector<1x10xf32>
    %34 = arith.addf %29, %33 : vector<1x10xf32>
    %35 = vector.extract_strided_slice %8 {offsets = [5, 0], sizes = [1, 784], strides = [1, 1]} : vector<32x784xf32> to vector<1x784xf32>
    %c5 = arith.constant 5 : index
    %c0_24 = arith.constant 0 : index
    %c0_25 = arith.constant 0 : index
    %36 = vector.load %arg4[%c5, %c0_24, %c0_25] : memref<32x10x784xf32, #tpu.memory_space<vmem>>, vector<1x10x784xf32>
    %37 = vector.shape_cast %36 : vector<1x10x784xf32> to vector<10x784xf32>
    %cst_26 = arith.constant dense<0.000000e+00> : vector<1x10xf32>
    %38 = tpu.matmul %35, %37, %cst_26 {dimension_numbers = #tpu.dot_dimension_numbers<[1], [1], [0], [0], [0, 0, 1, 0], [], []>} : vector<1x784xf32>, vector<10x784xf32>, vector<1x10xf32> -> vector<1x10xf32>
    %39 = arith.addf %34, %38 : vector<1x10xf32>
    %40 = vector.extract_strided_slice %8 {offsets = [6, 0], sizes = [1, 784], strides = [1, 1]} : vector<32x784xf32> to vector<1x784xf32>
    %c6 = arith.constant 6 : index
    %c0_27 = arith.constant 0 : index
    %c0_28 = arith.constant 0 : index
    %41 = vector.load %arg4[%c6, %c0_27, %c0_28] : memref<32x10x784xf32, #tpu.memory_space<vmem>>, vector<1x10x784xf32>
    %42 = vector.shape_cast %41 : vector<1x10x784xf32> to vector<10x784xf32>
    %cst_29 = arith.constant dense<0.000000e+00> : vector<1x10xf32>
    %43 = tpu.matmul %40, %42, %cst_29 {dimension_numbers = #tpu.dot_dimension_numbers<[1], [1], [0], [0], [0, 0, 1, 0], [], []>} : vector<1x784xf32>, vector<10x784xf32>, vector<1x10xf32> -> vector<1x10xf32>
    %44 = arith.addf %39, %43 : vector<1x10xf32>
    %45 = vector.extract_strided_slice %8 {offsets = [7, 0], sizes = [1, 784], strides = [1, 1]} : vector<32x784xf32> to vector<1x784xf32>
    %c7 = arith.constant 7 : index
    %c0_30 = arith.constant 0 : index
    %c0_31 = arith.constant 0 : index
    %46 = vector.load %arg4[%c7, %c0_30, %c0_31] : memref<32x10x784xf32, #tpu.memory_space<vmem>>, vector<1x10x784xf32>
    %47 = vector.shape_cast %46 : vector<1x10x784xf32> to vector<10x784xf32>
    %cst_32 = arith.constant dense<0.000000e+00> : vector<1x10xf32>
    %48 = tpu.matmul %45, %47, %cst_32 {dimension_numbers = #tpu.dot_dimension_numbers<[1], [1], [0], [0], [0, 0, 1, 0], [], []>} : vector<1x784xf32>, vector<10x784xf32>, vector<1x10xf32> -> vector<1x10xf32>
    %49 = arith.addf %44, %48 : vector<1x10xf32>
    %50 = vector.extract_strided_slice %8 {offsets = [8, 0], sizes = [1, 784], strides = [1, 1]} : vector<32x784xf32> to vector<1x784xf32>
    %c8 = arith.constant 8 : index
    %c0_33 = arith.constant 0 : index
    %c0_34 = arith.constant 0 : index
    %51 = vector.load %arg4[%c8, %c0_33, %c0_34] : memref<32x10x784xf32, #tpu.memory_space<vmem>>, vector<1x10x784xf32>
    %52 = vector.shape_cast %51 : vector<1x10x784xf32> to vector<10x784xf32>
    %cst_35 = arith.constant dense<0.000000e+00> : vector<1x10xf32>
    %53 = tpu.matmul %50, %52, %cst_35 {dimension_numbers = #tpu.dot_dimension_numbers<[1], [1], [0], [0], [0, 0, 1, 0], [], []>} : vector<1x784xf32>, vector<10x784xf32>, vector<1x10xf32> -> vector<1x10xf32>
    %54 = arith.addf %49, %53 : vector<1x10xf32>
    %55 = vector.extract_strided_slice %8 {offsets = [9, 0], sizes = [1, 784], strides = [1, 1]} : vector<32x784xf32> to vector<1x784xf32>
    %c9 = arith.constant 9 : index
    %c0_36 = arith.constant 0 : index
    %c0_37 = arith.constant 0 : index
    %56 = vector.load %arg4[%c9, %c0_36, %c0_37] : memref<32x10x784xf32, #tpu.memory_space<vmem>>, vector<1x10x784xf32>
    %57 = vector.shape_cast %56 : vector<1x10x784xf32> to vector<10x784xf32>
    %cst_38 = arith.constant dense<0.000000e+00> : vector<1x10xf32>
    %58 = tpu.matmul %55, %57, %cst_38 {dimension_numbers = #tpu.dot_dimension_numbers<[1], [1], [0], [0], [0, 0, 1, 0], [], []>} : vector<1x784xf32>, vector<10x784xf32>, vector<1x10xf32> -> vector<1x10xf32>
    %59 = arith.addf %54, %58 : vector<1x10xf32>
    %60 = vector.extract_strided_slice %8 {offsets = [10, 0], sizes = [1, 784], strides = [1, 1]} : vector<32x784xf32> to vector<1x784xf32>
    %c10 = arith.constant 10 : index
    %c0_39 = arith.constant 0 : index
    %c0_40 = arith.constant 0 : index
    %61 = vector.load %arg4[%c10, %c0_39, %c0_40] : memref<32x10x784xf32, #tpu.memory_space<vmem>>, vector<1x10x784xf32>
    %62 = vector.shape_cast %61 : vector<1x10x784xf32> to vector<10x784xf32>
    %cst_41 = arith.constant dense<0.000000e+00> : vector<1x10xf32>
    %63 = tpu.matmul %60, %62, %cst_41 {dimension_numbers = #tpu.dot_dimension_numbers<[1], [1], [0], [0], [0, 0, 1, 0], [], []>} : vector<1x784xf32>, vector<10x784xf32>, vector<1x10xf32> -> vector<1x10xf32>
    %64 = arith.addf %59, %63 : vector<1x10xf32>
    %65 = vector.extract_strided_slice %8 {offsets = [11, 0], sizes = [1, 784], strides = [1, 1]} : vector<32x784xf32> to vector<1x784xf32>
    %c11 = arith.constant 11 : index
    %c0_42 = arith.constant 0 : index
    %c0_43 = arith.constant 0 : index
    %66 = vector.load %arg4[%c11, %c0_42, %c0_43] : memref<32x10x784xf32, #tpu.memory_space<vmem>>, vector<1x10x784xf32>
    %67 = vector.shape_cast %66 : vector<1x10x784xf32> to vector<10x784xf32>
    %cst_44 = arith.constant dense<0.000000e+00> : vector<1x10xf32>
    %68 = tpu.matmul %65, %67, %cst_44 {dimension_numbers = #tpu.dot_dimension_numbers<[1], [1], [0], [0], [0, 0, 1, 0], [], []>} : vector<1x784xf32>, vector<10x784xf32>, vector<1x10xf32> -> vector<1x10xf32>
    %69 = arith.addf %64, %68 : vector<1x10xf32>
    %70 = vector.extract_strided_slice %8 {offsets = [12, 0], sizes = [1, 784], strides = [1, 1]} : vector<32x784xf32> to vector<1x784xf32>
    %c12 = arith.constant 12 : index
    %c0_45 = arith.constant 0 : index
    %c0_46 = arith.constant 0 : index
    %71 = vector.load %arg4[%c12, %c0_45, %c0_46] : memref<32x10x784xf32, #tpu.memory_space<vmem>>, vector<1x10x784xf32>
    %72 = vector.shape_cast %71 : vector<1x10x784xf32> to vector<10x784xf32>
    %cst_47 = arith.constant dense<0.000000e+00> : vector<1x10xf32>
    %73 = tpu.matmul %70, %72, %cst_47 {dimension_numbers = #tpu.dot_dimension_numbers<[1], [1], [0], [0], [0, 0, 1, 0], [], []>} : vector<1x784xf32>, vector<10x784xf32>, vector<1x10xf32> -> vector<1x10xf32>
    %74 = arith.addf %69, %73 : vector<1x10xf32>
    %75 = vector.extract_strided_slice %8 {offsets = [13, 0], sizes = [1, 784], strides = [1, 1]} : vector<32x784xf32> to vector<1x784xf32>
    %c13 = arith.constant 13 : index
    %c0_48 = arith.constant 0 : index
    %c0_49 = arith.constant 0 : index
    %76 = vector.load %arg4[%c13, %c0_48, %c0_49] : memref<32x10x784xf32, #tpu.memory_space<vmem>>, vector<1x10x784xf32>
    %77 = vector.shape_cast %76 : vector<1x10x784xf32> to vector<10x784xf32>
    %cst_50 = arith.constant dense<0.000000e+00> : vector<1x10xf32>
    %78 = tpu.matmul %75, %77, %cst_50 {dimension_numbers = #tpu.dot_dimension_numbers<[1], [1], [0], [0], [0, 0, 1, 0], [], []>} : vector<1x784xf32>, vector<10x784xf32>, vector<1x10xf32> -> vector<1x10xf32>
    %79 = arith.addf %74, %78 : vector<1x10xf32>
    %80 = vector.extract_strided_slice %8 {offsets = [14, 0], sizes = [1, 784], strides = [1, 1]} : vector<32x784xf32> to vector<1x784xf32>
    %c14 = arith.constant 14 : index
    %c0_51 = arith.constant 0 : index
    %c0_52 = arith.constant 0 : index
    %81 = vector.load %arg4[%c14, %c0_51, %c0_52] : memref<32x10x784xf32, #tpu.memory_space<vmem>>, vector<1x10x784xf32>
    %82 = vector.shape_cast %81 : vector<1x10x784xf32> to vector<10x784xf32>
    %cst_53 = arith.constant dense<0.000000e+00> : vector<1x10xf32>
    %83 = tpu.matmul %80, %82, %cst_53 {dimension_numbers = #tpu.dot_dimension_numbers<[1], [1], [0], [0], [0, 0, 1, 0], [], []>} : vector<1x784xf32>, vector<10x784xf32>, vector<1x10xf32> -> vector<1x10xf32>
    %84 = arith.addf %79, %83 : vector<1x10xf32>
    %85 = vector.extract_strided_slice %8 {offsets = [15, 0], sizes = [1, 784], strides = [1, 1]} : vector<32x784xf32> to vector<1x784xf32>
    %c15 = arith.constant 15 : index
    %c0_54 = arith.constant 0 : index
    %c0_55 = arith.constant 0 : index
    %86 = vector.load %arg4[%c15, %c0_54, %c0_55] : memref<32x10x784xf32, #tpu.memory_space<vmem>>, vector<1x10x784xf32>
    %87 = vector.shape_cast %86 : vector<1x10x784xf32> to vector<10x784xf32>
    %cst_56 = arith.constant dense<0.000000e+00> : vector<1x10xf32>
    %88 = tpu.matmul %85, %87, %cst_56 {dimension_numbers = #tpu.dot_dimension_numbers<[1], [1], [0], [0], [0, 0, 1, 0], [], []>} : vector<1x784xf32>, vector<10x784xf32>, vector<1x10xf32> -> vector<1x10xf32>
    %89 = arith.addf %84, %88 : vector<1x10xf32>
    %90 = vector.extract_strided_slice %8 {offsets = [16, 0], sizes = [1, 784], strides = [1, 1]} : vector<32x784xf32> to vector<1x784xf32>
    %c16 = arith.constant 16 : index
    %c0_57 = arith.constant 0 : index
    %c0_58 = arith.constant 0 : index
    %91 = vector.load %arg4[%c16, %c0_57, %c0_58] : memref<32x10x784xf32, #tpu.memory_space<vmem>>, vector<1x10x784xf32>
    %92 = vector.shape_cast %91 : vector<1x10x784xf32> to vector<10x784xf32>
    %cst_59 = arith.constant dense<0.000000e+00> : vector<1x10xf32>
    %93 = tpu.matmul %90, %92, %cst_59 {dimension_numbers = #tpu.dot_dimension_numbers<[1], [1], [0], [0], [0, 0, 1, 0], [], []>} : vector<1x784xf32>, vector<10x784xf32>, vector<1x10xf32> -> vector<1x10xf32>
    %94 = arith.addf %89, %93 : vector<1x10xf32>
    %95 = vector.extract_strided_slice %8 {offsets = [17, 0], sizes = [1, 784], strides = [1, 1]} : vector<32x784xf32> to vector<1x784xf32>
    %c17 = arith.constant 17 : index
    %c0_60 = arith.constant 0 : index
    %c0_61 = arith.constant 0 : index
    %96 = vector.load %arg4[%c17, %c0_60, %c0_61] : memref<32x10x784xf32, #tpu.memory_space<vmem>>, vector<1x10x784xf32>
    %97 = vector.shape_cast %96 : vector<1x10x784xf32> to vector<10x784xf32>
    %cst_62 = arith.constant dense<0.000000e+00> : vector<1x10xf32>
    %98 = tpu.matmul %95, %97, %cst_62 {dimension_numbers = #tpu.dot_dimension_numbers<[1], [1], [0], [0], [0, 0, 1, 0], [], []>} : vector<1x784xf32>, vector<10x784xf32>, vector<1x10xf32> -> vector<1x10xf32>
    %99 = arith.addf %94, %98 : vector<1x10xf32>
    %100 = vector.extract_strided_slice %8 {offsets = [18, 0], sizes = [1, 784], strides = [1, 1]} : vector<32x784xf32> to vector<1x784xf32>
    %c18 = arith.constant 18 : index
    %c0_63 = arith.constant 0 : index
    %c0_64 = arith.constant 0 : index
    %101 = vector.load %arg4[%c18, %c0_63, %c0_64] : memref<32x10x784xf32, #tpu.memory_space<vmem>>, vector<1x10x784xf32>
    %102 = vector.shape_cast %101 : vector<1x10x784xf32> to vector<10x784xf32>
    %cst_65 = arith.constant dense<0.000000e+00> : vector<1x10xf32>
    %103 = tpu.matmul %100, %102, %cst_65 {dimension_numbers = #tpu.dot_dimension_numbers<[1], [1], [0], [0], [0, 0, 1, 0], [], []>} : vector<1x784xf32>, vector<10x784xf32>, vector<1x10xf32> -> vector<1x10xf32>
    %104 = arith.addf %99, %103 : vector<1x10xf32>
    %105 = vector.extract_strided_slice %8 {offsets = [19, 0], sizes = [1, 784], strides = [1, 1]} : vector<32x784xf32> to vector<1x784xf32>
    %c19 = arith.constant 19 : index
    %c0_66 = arith.constant 0 : index
    %c0_67 = arith.constant 0 : index
    %106 = vector.load %arg4[%c19, %c0_66, %c0_67] : memref<32x10x784xf32, #tpu.memory_space<vmem>>, vector<1x10x784xf32>
    %107 = vector.shape_cast %106 : vector<1x10x784xf32> to vector<10x784xf32>
    %cst_68 = arith.constant dense<0.000000e+00> : vector<1x10xf32>
    %108 = tpu.matmul %105, %107, %cst_68 {dimension_numbers = #tpu.dot_dimension_numbers<[1], [1], [0], [0], [0, 0, 1, 0], [], []>} : vector<1x784xf32>, vector<10x784xf32>, vector<1x10xf32> -> vector<1x10xf32>
    %109 = arith.addf %104, %108 : vector<1x10xf32>
    %110 = vector.extract_strided_slice %8 {offsets = [20, 0], sizes = [1, 784], strides = [1, 1]} : vector<32x784xf32> to vector<1x784xf32>
    %c20 = arith.constant 20 : index
    %c0_69 = arith.constant 0 : index
    %c0_70 = arith.constant 0 : index
    %111 = vector.load %arg4[%c20, %c0_69, %c0_70] : memref<32x10x784xf32, #tpu.memory_space<vmem>>, vector<1x10x784xf32>
    %112 = vector.shape_cast %111 : vector<1x10x784xf32> to vector<10x784xf32>
    %cst_71 = arith.constant dense<0.000000e+00> : vector<1x10xf32>
    %113 = tpu.matmul %110, %112, %cst_71 {dimension_numbers = #tpu.dot_dimension_numbers<[1], [1], [0], [0], [0, 0, 1, 0], [], []>} : vector<1x784xf32>, vector<10x784xf32>, vector<1x10xf32> -> vector<1x10xf32>
    %114 = arith.addf %109, %113 : vector<1x10xf32>
    %115 = vector.extract_strided_slice %8 {offsets = [21, 0], sizes = [1, 784], strides = [1, 1]} : vector<32x784xf32> to vector<1x784xf32>
    %c21 = arith.constant 21 : index
    %c0_72 = arith.constant 0 : index
    %c0_73 = arith.constant 0 : index
    %116 = vector.load %arg4[%c21, %c0_72, %c0_73] : memref<32x10x784xf32, #tpu.memory_space<vmem>>, vector<1x10x784xf32>
    %117 = vector.shape_cast %116 : vector<1x10x784xf32> to vector<10x784xf32>
    %cst_74 = arith.constant dense<0.000000e+00> : vector<1x10xf32>
    %118 = tpu.matmul %115, %117, %cst_74 {dimension_numbers = #tpu.dot_dimension_numbers<[1], [1], [0], [0], [0, 0, 1, 0], [], []>} : vector<1x784xf32>, vector<10x784xf32>, vector<1x10xf32> -> vector<1x10xf32>
    %119 = arith.addf %114, %118 : vector<1x10xf32>
    %120 = vector.extract_strided_slice %8 {offsets = [22, 0], sizes = [1, 784], strides = [1, 1]} : vector<32x784xf32> to vector<1x784xf32>
    %c22 = arith.constant 22 : index
    %c0_75 = arith.constant 0 : index
    %c0_76 = arith.constant 0 : index
    %121 = vector.load %arg4[%c22, %c0_75, %c0_76] : memref<32x10x784xf32, #tpu.memory_space<vmem>>, vector<1x10x784xf32>
    %122 = vector.shape_cast %121 : vector<1x10x784xf32> to vector<10x784xf32>
    %cst_77 = arith.constant dense<0.000000e+00> : vector<1x10xf32>
    %123 = tpu.matmul %120, %122, %cst_77 {dimension_numbers = #tpu.dot_dimension_numbers<[1], [1], [0], [0], [0, 0, 1, 0], [], []>} : vector<1x784xf32>, vector<10x784xf32>, vector<1x10xf32> -> vector<1x10xf32>
    %124 = arith.addf %119, %123 : vector<1x10xf32>
    %125 = vector.extract_strided_slice %8 {offsets = [23, 0], sizes = [1, 784], strides = [1, 1]} : vector<32x784xf32> to vector<1x784xf32>
    %c23 = arith.constant 23 : index
    %c0_78 = arith.constant 0 : index
    %c0_79 = arith.constant 0 : index
    %126 = vector.load %arg4[%c23, %c0_78, %c0_79] : memref<32x10x784xf32, #tpu.memory_space<vmem>>, vector<1x10x784xf32>
    %127 = vector.shape_cast %126 : vector<1x10x784xf32> to vector<10x784xf32>
    %cst_80 = arith.constant dense<0.000000e+00> : vector<1x10xf32>
    %128 = tpu.matmul %125, %127, %cst_80 {dimension_numbers = #tpu.dot_dimension_numbers<[1], [1], [0], [0], [0, 0, 1, 0], [], []>} : vector<1x784xf32>, vector<10x784xf32>, vector<1x10xf32> -> vector<1x10xf32>
    %129 = arith.addf %124, %128 : vector<1x10xf32>
    %130 = vector.extract_strided_slice %8 {offsets = [24, 0], sizes = [1, 784], strides = [1, 1]} : vector<32x784xf32> to vector<1x784xf32>
    %c24 = arith.constant 24 : index
    %c0_81 = arith.constant 0 : index
    %c0_82 = arith.constant 0 : index
    %131 = vector.load %arg4[%c24, %c0_81, %c0_82] : memref<32x10x784xf32, #tpu.memory_space<vmem>>, vector<1x10x784xf32>
    %132 = vector.shape_cast %131 : vector<1x10x784xf32> to vector<10x784xf32>
    %cst_83 = arith.constant dense<0.000000e+00> : vector<1x10xf32>
    %133 = tpu.matmul %130, %132, %cst_83 {dimension_numbers = #tpu.dot_dimension_numbers<[1], [1], [0], [0], [0, 0, 1, 0], [], []>} : vector<1x784xf32>, vector<10x784xf32>, vector<1x10xf32> -> vector<1x10xf32>
    %134 = arith.addf %129, %133 : vector<1x10xf32>
    %135 = vector.extract_strided_slice %8 {offsets = [25, 0], sizes = [1, 784], strides = [1, 1]} : vector<32x784xf32> to vector<1x784xf32>
    %c25 = arith.constant 25 : index
    %c0_84 = arith.constant 0 : index
    %c0_85 = arith.constant 0 : index
    %136 = vector.load %arg4[%c25, %c0_84, %c0_85] : memref<32x10x784xf32, #tpu.memory_space<vmem>>, vector<1x10x784xf32>
    %137 = vector.shape_cast %136 : vector<1x10x784xf32> to vector<10x784xf32>
    %cst_86 = arith.constant dense<0.000000e+00> : vector<1x10xf32>
    %138 = tpu.matmul %135, %137, %cst_86 {dimension_numbers = #tpu.dot_dimension_numbers<[1], [1], [0], [0], [0, 0, 1, 0], [], []>} : vector<1x784xf32>, vector<10x784xf32>, vector<1x10xf32> -> vector<1x10xf32>
    %139 = arith.addf %134, %138 : vector<1x10xf32>
    %140 = vector.extract_strided_slice %8 {offsets = [26, 0], sizes = [1, 784], strides = [1, 1]} : vector<32x784xf32> to vector<1x784xf32>
    %c26 = arith.constant 26 : index
    %c0_87 = arith.constant 0 : index
    %c0_88 = arith.constant 0 : index
    %141 = vector.load %arg4[%c26, %c0_87, %c0_88] : memref<32x10x784xf32, #tpu.memory_space<vmem>>, vector<1x10x784xf32>
    %142 = vector.shape_cast %141 : vector<1x10x784xf32> to vector<10x784xf32>
    %cst_89 = arith.constant dense<0.000000e+00> : vector<1x10xf32>
    %143 = tpu.matmul %140, %142, %cst_89 {dimension_numbers = #tpu.dot_dimension_numbers<[1], [1], [0], [0], [0, 0, 1, 0], [], []>} : vector<1x784xf32>, vector<10x784xf32>, vector<1x10xf32> -> vector<1x10xf32>
    %144 = arith.addf %139, %143 : vector<1x10xf32>
    %145 = vector.extract_strided_slice %8 {offsets = [27, 0], sizes = [1, 784], strides = [1, 1]} : vector<32x784xf32> to vector<1x784xf32>
    %c27 = arith.constant 27 : index
    %c0_90 = arith.constant 0 : index
    %c0_91 = arith.constant 0 : index
    %146 = vector.load %arg4[%c27, %c0_90, %c0_91] : memref<32x10x784xf32, #tpu.memory_space<vmem>>, vector<1x10x784xf32>
    %147 = vector.shape_cast %146 : vector<1x10x784xf32> to vector<10x784xf32>
    %cst_92 = arith.constant dense<0.000000e+00> : vector<1x10xf32>
    %148 = tpu.matmul %145, %147, %cst_92 {dimension_numbers = #tpu.dot_dimension_numbers<[1], [1], [0], [0], [0, 0, 1, 0], [], []>} : vector<1x784xf32>, vector<10x784xf32>, vector<1x10xf32> -> vector<1x10xf32>
    %149 = arith.addf %144, %148 : vector<1x10xf32>
    %150 = vector.extract_strided_slice %8 {offsets = [28, 0], sizes = [1, 784], strides = [1, 1]} : vector<32x784xf32> to vector<1x784xf32>
    %c28 = arith.constant 28 : index
    %c0_93 = arith.constant 0 : index
    %c0_94 = arith.constant 0 : index
    %151 = vector.load %arg4[%c28, %c0_93, %c0_94] : memref<32x10x784xf32, #tpu.memory_space<vmem>>, vector<1x10x784xf32>
    %152 = vector.shape_cast %151 : vector<1x10x784xf32> to vector<10x784xf32>
    %cst_95 = arith.constant dense<0.000000e+00> : vector<1x10xf32>
    %153 = tpu.matmul %150, %152, %cst_95 {dimension_numbers = #tpu.dot_dimension_numbers<[1], [1], [0], [0], [0, 0, 1, 0], [], []>} : vector<1x784xf32>, vector<10x784xf32>, vector<1x10xf32> -> vector<1x10xf32>
    %154 = arith.addf %149, %153 : vector<1x10xf32>
    %155 = vector.extract_strided_slice %8 {offsets = [29, 0], sizes = [1, 784], strides = [1, 1]} : vector<32x784xf32> to vector<1x784xf32>
    %c29 = arith.constant 29 : index
    %c0_96 = arith.constant 0 : index
    %c0_97 = arith.constant 0 : index
    %156 = vector.load %arg4[%c29, %c0_96, %c0_97] : memref<32x10x784xf32, #tpu.memory_space<vmem>>, vector<1x10x784xf32>
    %157 = vector.shape_cast %156 : vector<1x10x784xf32> to vector<10x784xf32>
    %cst_98 = arith.constant dense<0.000000e+00> : vector<1x10xf32>
    %158 = tpu.matmul %155, %157, %cst_98 {dimension_numbers = #tpu.dot_dimension_numbers<[1], [1], [0], [0], [0, 0, 1, 0], [], []>} : vector<1x784xf32>, vector<10x784xf32>, vector<1x10xf32> -> vector<1x10xf32>
    %159 = arith.addf %154, %158 : vector<1x10xf32>
    %160 = vector.extract_strided_slice %8 {offsets = [30, 0], sizes = [1, 784], strides = [1, 1]} : vector<32x784xf32> to vector<1x784xf32>
    %c30 = arith.constant 30 : index
    %c0_99 = arith.constant 0 : index
    %c0_100 = arith.constant 0 : index
    %161 = vector.load %arg4[%c30, %c0_99, %c0_100] : memref<32x10x784xf32, #tpu.memory_space<vmem>>, vector<1x10x784xf32>
    %162 = vector.shape_cast %161 : vector<1x10x784xf32> to vector<10x784xf32>
    %cst_101 = arith.constant dense<0.000000e+00> : vector<1x10xf32>
    %163 = tpu.matmul %160, %162, %cst_101 {dimension_numbers = #tpu.dot_dimension_numbers<[1], [1], [0], [0], [0, 0, 1, 0], [], []>} : vector<1x784xf32>, vector<10x784xf32>, vector<1x10xf32> -> vector<1x10xf32>
    %164 = arith.addf %159, %163 : vector<1x10xf32>
    %165 = vector.extract_strided_slice %8 {offsets = [31, 0], sizes = [1, 784], strides = [1, 1]} : vector<32x784xf32> to vector<1x784xf32>
    %c31 = arith.constant 31 : index
    %c0_102 = arith.constant 0 : index
    %c0_103 = arith.constant 0 : index
    %166 = vector.load %arg4[%c31, %c0_102, %c0_103] : memref<32x10x784xf32, #tpu.memory_space<vmem>>, vector<1x10x784xf32>
    %167 = vector.shape_cast %166 : vector<1x10x784xf32> to vector<10x784xf32>
    %cst_104 = arith.constant dense<0.000000e+00> : vector<1x10xf32>
    %168 = tpu.matmul %165, %167, %cst_104 {dimension_numbers = #tpu.dot_dimension_numbers<[1], [1], [0], [0], [0, 0, 1, 0], [], []>} : vector<1x784xf32>, vector<10x784xf32>, vector<1x10xf32> -> vector<1x10xf32>
    %169 = arith.addf %164, %168 : vector<1x10xf32>
    %c0_105 = arith.constant 0 : index
    %c0_106 = arith.constant 0 : index
    %170 = vector.load %arg5[%c0_105, %c0_106] : memref<1x10xf32, #tpu.memory_space<vmem>>, vector<1x10xf32>
    %171 = arith.addf %169, %170 : vector<1x10xf32>
    %c0_107 = arith.constant 0 : index
    %c0_108 = arith.constant 0 : index
    %c0_109 = arith.constant 0 : index
    %172 = vector.load %arg6[%c0_107, %c0_108, %c0_109] : memref<1x1x10xf32, #tpu.memory_space<vmem>>, vector<1x1x10xf32>
    %173 = vector.shape_cast %172 : vector<1x1x10xf32> to vector<1x10xf32>
    %174 = vector.shape_cast %171 : vector<1x10xf32> to vector<1x1x10xf32>
    tpu.vector_store %arg6[%c0_107, %c0_108, %c0_109], %174 {strides = array<i32>} : memref<1x1x10xf32, #tpu.memory_space<vmem>>, vector<1x1x10xf32>,
    return
  }
  func.func @transform_0(%arg0: i32) -> (i32, i32, i32) {
    %c0_i32 = arith.constant 0 : i32
    %c0_i32_0 = arith.constant 0 : i32
    %c0_i32_1 = arith.constant 0 : i32
    return %arg0, %c0_i32, %c0_i32_0 : i32, i32, i32
  }
  func.func @transform_1(%arg0: i32) -> (i32, i32) {
    %c0_i32 = arith.constant 0 : i32
    %c0_i32_0 = arith.constant 0 : i32
    %c0_i32_1 = arith.constant 0 : i32
    return %c0_i32, %c0_i32_0 : i32, i32
  }
  func.func @transform_2(%arg0: i32) -> (i32, i32) {
    %c0_i32 = arith.constant 0 : i32
    %c0_i32_0 = arith.constant 0 : i32
    %c0_i32_1 = arith.constant 0 : i32
    return %c0_i32, %c0_i32_0 : i32, i32
  }
  func.func @transform_3(%arg0: i32) -> (i32, i32, i32) {
    %c0_i32 = arith.constant 0 : i32
    %c0_i32_0 = arith.constant 0 : i32
    %c0_i32_1 = arith.constant 0 : i32
    %c0_i32_2 = arith.constant 0 : i32
    return %c0_i32, %c0_i32_0, %c0_i32_1 : i32, i32, i32
  }
  func.func @transform_4(%arg0: i32) -> (i32, i32) {
    %c0_i32 = arith.constant 0 : i32
    %c0_i32_0 = arith.constant 0 : i32
    %c0_i32_1 = arith.constant 0 : i32
    return %c0_i32, %c0_i32_0 : i32, i32
  }
  func.func @transform_5(%arg0: i32) -> (i32, i32, i32) {
    %c0_i32 = arith.constant 0 : i32
    %c0_i32_0 = arith.constant 0 : i32
    %c0_i32_1 = arith.constant 0 : i32
    return %arg0, %c0_i32, %c0_i32_0 : i32, i32, i32
  }
}

</mosaic_0001>

<bundles_post_ra>
// kernel: simple_cnn_forward.1
= control target key start
LH: loop header
LB: loop body
LE: loop exit
PB: predicated region body
PF: predicated region fallthrough
CT: control target
= control target key end

     0   :  { %10 = vsyncpa [#allocation3], 0  ;;  %s14554_s0 = inlined_call_operand.vmem [shape: f32[2,9,784], index: 0, kind: input, shape index: {}]   ;;  %s14555_s1 = inlined_call_operand.vmem [shape: f32[32,9], index: 1, kind: input, shape index: {}]   ;;  %s14556_s2 = inlined_call_operand.vmem [shape: f32[32,1], index: 2, kind: input, shape index: {}]   ;;  %s14557_s3 = inlined_call_operand.vmem [shape: f32[32,10,784], index: 3, kind: input, shape index: {}]   ;;  %s14558_s4 = inlined_call_operand.vmem [shape: f32[1,10], index: 4, kind: input, shape index: {}]   ;;  %s14559_s5 = inlined_call_operand.hbm [shape: f32[2,1,10], index: 5, kind: output, shape index: {}]  }
   0x1   :  { %12 = vsyncpa [#allocation3 + $0x1], 0  ;;  %s12451_s18 = smov 0   ;;  %s12453_s19 = smov 0  }
   0x2   :  { %s12455_s20 = smov 0   ;;  %s12457_s21 = smov 0  }
   0x3 LB: > { %s12472_s22 = sadd.s32 4294967295, %s12413_s21   ;;  %s10869_s23 = sadd.s32 4294967294, %s12413_s21   ;;  %s12413_s21 = sphi %s12457_s21, %s14569_s21   ;;  %s12409_s20 = sphi %s12455_s20, %s14568_s20   ;;  %s12405_s19 = sphi %s12453_s19, %s14567_s19   ;;  %s12401_s18 = sphi %s12451_s18, %s14566_s18  }
   0x4   : > { %s12476_s24 = sadd.s32 1, %s12413_s21   ;;  %s135_s25 = sadd.s32 1, %s12409_s20 }
   0x5   : > { %s132_s26 = ssub.s32 %s12413_s21, %s12476_s24  ;;  %p145_p0 = scmp.ne.s32.totalorder %s12409_s20, %s12405_s19 }
   0x6   : > { %p133_p1 = scmp.eq.s32.totalorder %s132_s26, 0  ;;  %p146_p2 = scmp.eq.s32.totalorder %s12472_s22, 1 }
   0x7   : > { %p151_p3 = scmp.ne.s32.totalorder %s12405_s19, %s12401_s18  ;;  %p152_p4 = scmp.eq.s32.totalorder %s10869_s23, 1 }
   0x8   : > { %s12487_s27 = scalar_select %p133_p1, %s12409_s20, %s135_s25  }
   0x9   : > { %p12489_p5 = por %p146_p2, %p145_p0  ;;  %p12493_p6 = por %p152_p4, %p151_p3 }
   0xa   : > { %p10872_p7 = scmp.ge.s32.totalorder %s12413_s21, 1  ;;  %p190_p8 = scmp.lt.s32.totalorder %s12413_s21, 3 }
   0xc   : > { %p191_p9 = pnand %p10872_p7, %p190_p8 }
   0xd   : > { %p217_p10 = scmp.lt.s32.totalorder (!%p191_p9), %s12472_s22, 1  ;;  %v12415_v0 = vmov (!%p191_p9), 0.0   ;;  %v12416_v1 = vmov (!%p191_p9), 0   ;;  %v242_v2 = vld [vmem:[%s14556_s2 + $0x10] sm:$0xff] (!%p191_p9)  ;;  %vm277_vm0 = vcmask (!%p191_p9), 1040384   ;;  %v240_v3 = vld [vmem:[%s14556_s2] sm:$0xff] (!%p191_p9) }
   0xe   : > { %194 = sbr.rel (%p191_p9) target bundleno = 1001 (0x3e9), region = 40  ;;  %363 = vmatprep.mubr.f32.mxu0 (!%p191_p9), %v12415_v0  ;;  %381 = vmatprep.mubr.f32.mxu1 (!%p191_p9), %v12415_v0  ;;  %v243_v4 = vld [vmem:[%s14556_s2 + $0x18] sm:$0xff] (!%p191_p9)  ;;  %v241_v5 = vld [vmem:[%s14556_s2 + $0x8] sm:$0xff] (!%p191_p9)  ;;  %vm12417_vm1 = vmmov (!%p191_p9), 1   ;;  %v222_v15 = vld [vmem:[%s14555_s1] sm:$0xff] (!%p191_p9)  ;;  %vm264_vm3 = vcmask (!%p191_p9), 72704  }
   0xf   : > { %12350 = vset.pattern.permute.xlu1 (!%p191_p9), %v12416_v1  ;;  %12349 = vset.pattern.permute.xlu0 (!%p191_p9), %v12416_v1  ;;  %vm12518_vm2 = vmpackc.low (!%p191_p9), %vm277_vm0, %vm12417_vm1  ;;  %v225_v23 = vld [vmem:[%s14555_s1 + $0x18] sm:$0xff] (!%p191_p9)  ;;  %v223_v30 = vld [vmem:[%s14555_s1 + $0x8] sm:$0xff] (!%p191_p9)  ;;  %v12418_v47 = vmov (!%p191_p9), 0.0|0.0   ;;  %vm728_vm4 = vcmask (!%p191_p9), 130048   ;;  %vm12419_vm6 = vmmov (!%p191_p9), 0   ;;  %s11427_s13 = sshll.u32 (!%p191_p9), %s12472_s22, 4 }
  0x10   : > { %256 = vperm.xlu1 (!%p191_p9), %12350, %v242_v2   ;;  %246 = vperm.xlu0 (!%p191_p9), %12349, %v240_v3   ;;  %v224_v31 = vld [vmem:[%s14555_s1 + $0x10] sm:$0xff] (!%p191_p9)  ;;  %v10898_v32 = vld [vmem:[%s14557_s3 + $0x78] sm:$0xff] (!%p191_p9)  ;;  %v10904_v36 = vld [vmem:[%s14557_s3 + $0xa8] sm:$0x3] (!%p191_p9)  ;;  %vm10799_vm7 = vcmask (!%p191_p9), 73728   ;;  %s14512_s23 = scalar_lea.hbm (!%p191_p9), %s14559_s5, %s11427_s13 }
  0x11   : > { %v10905_v33 = vld [vmem:[%s14557_s3 + $0xb0] sm:$0x3] (!%p191_p9)  ;;  %v10900_v37 = vld [vmem:[%s14557_s3 + $0x88] sm:$0xff] (!%p191_p9)  ;;  %v10907_v38 = vld [vmem:[%s14557_s3 + $0xc0] sm:$0x3] (!%p191_p9) }
  0x12   : > { %v11790_v34 = vpack.c.bf16 (!%p191_p9), %v10905_v33, %v10898_v32  ;;  %v10897_v35 = vld [vmem:[%s14557_s3 + $0x70] sm:$0xff] (!%p191_p9)  ;;  %v11794_v40 = vpack.c.bf16 (!%p191_p9), %v10907_v38, %v10900_v37  ;;  %v10899_v41 = vld [vmem:[%s14557_s3 + $0x80] sm:$0xff] (!%p191_p9)  ;;  %v10906_v42 = vld [vmem:[%s14557_s3 + $0xb8] sm:$0x3] (!%p191_p9) }
  0x13   : > { %v11792_v39 = vpack.c.bf16 (!%p191_p9), %v10904_v36, %v10897_v35  ;;  %v11796_v43 = vpack.c.bf16 (!%p191_p9), %v10906_v42, %v10899_v41  ;;  %v10902_v44 = vld [vmem:[%s14557_s3 + $0x98] sm:$0xff] (!%p191_p9)  ;;  %v10909_v45 = vld [vmem:[%s14557_s3 + $0xd0] sm:$0x3] (!%p191_p9)  ;;  %v10908_v57 = vld [vmem:[%s14557_s3 + $0xc8] sm:$0x3] (!%p191_p9) }
  0x14   : > { %261 = vperm.xlu1 (!%p191_p9), %12350, %v243_v4   ;;  %251 = vperm.xlu0 (!%p191_p9), %12349, %v241_v5   ;;  %v11798_v46 = vpack.c.bf16 (!%p191_p9), %v10909_v45, %v10902_v44  ;;  %v10901_v56 = vld [vmem:[%s14557_s3 + $0x90] sm:$0xff] (!%p191_p9)  ;;  %v680_v61 = vld [vmem:[%s14557_s3 + $0x8] sm:$0xff] (!%p191_p9)  ;;  %v687_v62 = vld [vmem:[%s14557_s3 + $0x40] sm:$0x3] (!%p191_p9) }
  0x15   : > { %s218_s30 = scalar_select %p217_p10, %s12472_s22, 1  ;;  %v11800_v6 = vpack.c.bf16 %v10908_v57, %v10901_v56  ;;  %vm12671_vm5 = vmpackc.low %vm728_vm4, %vm728_vm4  ;;  %v684_v35 = vld [vmem:[%s14557_s3 + $0x28] sm:$0xff]  ;;  %v691_v36 = vld [vmem:[%s14557_s3 + $0x60] sm:$0x3] }
  0x16   : > { %v11814_v42 = vpack.c.bf16 %v691_v36, %v684_v35  ;;  %v10918_v56 = vld [vmem:[%s14557_s3 + $0xe8] sm:$0xff]  ;;  %v10925_v57 = vld [vmem:[%s14557_s3 + $0x120] sm:$0x3]  ;;  %s12420_s22 = smov [#allocation2]  }
  0x17   : > { %s12304_s10 = smul.u32 112, %s218_s30  ;;  %s12355_s30 = sshll.u32 %s12420_s22, 4  ;;  %s12356_s30 = int_to_ptr.vmem [resolvable:$false] %s12355_s30 }
  0x18   : > { %s12357_s6 = scalar_lea.vmem %s12356_s30, 32 }
  0x19   : > { %s221_s17 = scalar_lea.vmem %s14554_s0, %s12304_s10  ;;  %s215_s10 = sand.u32 1, %s12405_s19  }
  0x1a   : > { %v227_v7 = vld [vmem:[%s221_s17 + $0x8] sm:$0xff]  ;;  %v234_v8 = vld [vmem:[%s221_s17 + $0x40] sm:$0x1]  ;;  %v233_v11 = vld [vmem:[%s221_s17 + $0x38] sm:$0x1]  ;;  %s216_s14 = scalar_lea.vmem [#allocation2], %s215_s10 }
  0x1b   : > { %v226_v9 = vld [vmem:[%s221_s17] sm:$0xff]  ;;  %v11766_v10 = vpack.c.bf16 %v234_v8, %v227_v7  ;;  %v229_v12 = vld [vmem:[%s221_s17 + $0x18] sm:$0xff]  ;;  %v236_v13 = vld [vmem:[%s221_s17 + $0x50] sm:$0x1]  ;;  %s10814_s15 = sshll.u32 %s216_s14, 4  ;;  %s10802_s25 = scalar_lea.sflag [#allocation3], %s215_s10  ;;  %s14514_s15 = int_to_ptr.vmem [resolvable:$true] %s10814_s15 }
  0x1c   : > { %v11769_v14 = vpack.c.bf16 %v233_v11, %v226_v9  ;;  %v11772_v16 = vpack.c.bf16 %v236_v13, %v229_v12  ;;  %v228_v17 = vld [vmem:[%s221_s17 + $0x10] sm:$0xff]  ;;  %v235_v18 = vld [vmem:[%s221_s17 + $0x48] sm:$0x1]  ;;  %v238_v22 = vld [vmem:[%s221_s17 + $0x60] sm:$0x1]  ;;  %s12351_s26 = scalar_lea.vmem %s14514_s15, 16  ;;  %p12358_p0 = scmp.lt.s32.totalorder %s14514_s15, %s12356_s30 }
  0x1d   : > { %v232_v19 = vld [vmem:[%s221_s17 + $0x30] sm:$0xff]  ;;  %11768 = vmatprep.subr.msk.bf16.mxu0 %vm12518_vm2, %v11766_v10  ;;  %12302 = vmatprep.subr.msk.bf16.mxu1 %vm12518_vm2, %v11766_v10  ;;  %v239_v20 = vld [vmem:[%s221_s17 + $0x68] sm:$0x1]  ;;  %v11775_v24 = vpack.c.bf16 %v235_v18, %v228_v17  ;;  %v230_v26 = vld [vmem:[%s221_s17 + $0x20] sm:$0xff]  ;;  %v11806_v10 = vpack.c.bf16 %v687_v62, %v680_v61  ;;  %v11822_v62 = vpack.c.bf16 %v10925_v57, %v10918_v56  ;;  %p12352_p11 = scmp.ne.s32.totalorder %s14514_s15, %s12351_s26  ;;  %p12359_p1 = scmp.lt.s32.totalorder %s12357_s6, %s12351_s26 }
  0x1e   : > { %v231_v21 = vld [vmem:[%s221_s17 + $0x28] sm:$0xff]  ;;  %11771 = vmatpush1.bf16.msk.msra.mxu0 %vm12518_vm2, %v11769_v14  ;;  %12303 = vmatpush1.bf16.msk.msra.mxu1 %vm12518_vm2, %v11769_v14  ;;  %v237_v27 = vld [vmem:[%s221_s17 + $0x58] sm:$0x1]  ;;  %v11784_v28 = vpack.c.bf16 %v239_v20, %v232_v19  ;;  %v10903_v8 = vld [vmem:[%s14557_s3 + $0xa0] sm:$0xff] }
  0x1f   : > { %v11778_v25 = vpack.c.bf16 %v238_v22, %v231_v21  ;;  %11774 = vmatprep.subr.msk.bf16.mxu1 %vm12518_vm2, %v11772_v16  ;;  %v11781_v29 = vpack.c.bf16 %v237_v27, %v230_v26  ;;  %v10910_v9 = vld [vmem:[%s14557_s3 + $0xd8] sm:$0x3]  ;;  %p12353_p12 = pnand %p12352_p11, %p12489_p5  ;;  %p12360_p2 = por %p12359_p1, %p12358_p0 }
  0x20   : > { %v682_v14 = vld [vmem:[%s14557_s3 + $0x18] sm:$0xff]  ;;  %v11803_v19 = vpack.c.bf16 %v10910_v9, %v10903_v8  ;;  %v10922_v9 = vld [vmem:[%s14557_s3 + $0x108] sm:$0xff] }
  0x21   : > { %11780 = vmatprep.subr.msk.bf16.mxu0 %vm12518_vm2, %v11778_v25  ;;  %10876 = vmatmul.mubr.msk.f32.vlgmr.msra.gmra.mrb[0].mxu0 %vm264_vm3, %v222_v15  ;;  %p12354_p13 = pneg %p12353_p12 }
  0x22   : > { %10879 = vmatmul.mubr.msk.f32.vlgmr.msra.gmra.mrb[0].mxu1 %vm264_vm3, %v225_v23  ;;  %369 = vmatprep.mubr.f32.mxu0 %v12415_v0 }
  0x23   : > { %11777 = vmatpush1.bf16.msk.msra.mxu1 %vm12518_vm2, %v11775_v24  ;;  %452 = vmatprep.mubr.f32.mxu1 %v12415_v0  ;;  %p12361_p3 = pnand %p12360_p2, %p12354_p13 }
  0x24   : > { %11786 = vmatprep.subr.msk.bf16.mxu1 %vm12518_vm2, %v11784_v28  ;;  %11783 = vmatpush1.bf16.msk.msra.mxu0 %vm12518_vm2, %v11781_v29 }
  0x25   : > { %10877 = vmatmul.mubr.msk.f32.gmra.mrb[2].mxu0 %vm264_vm3, %v223_v30  ;;  %11795 = vmatprep.subr.bf16.mxu0 %v11794_v40 }
  0x26   : > { %10882 = vmatmul.mubr.msk.f32.vlgmr.msra.gmra.mrb[2].mxu1 %vm264_vm3, %v222_v15  ;;  %375 = vmatprep.mubr.f32.mxu0 %v12415_v0 }
  0x27   : > { %11789 = vmatpush3.bf16.msk.msra.mxu1 %vm12518_vm2, %v11784_v28  ;;  %458 = vmatprep.mubr.f32.mxu1 %v12415_v0 }
  0x28   : > { %11791 = vmatprep.subr.bf16.mxu1 %v11790_v34 }
  0x29   : > { %10878 = vmatmul.mubr.msk.f32.gmra.mrb[4].mxu0 %vm264_vm3, %v224_v31 }
  0x2a   : > { %10883 = vmatmul.mubr.msk.f32.gmra.mrb[4].mxu1 %vm264_vm3, %v223_v30  ;;  %541 = vmatprep.mubr.f32.mxu0 %v12415_v0 }
  0x2b   : > { %464 = vmatprep.mubr.f32.mxu1 %v12415_v0 }
  0x2d   : > { %10888 = vmatmul.mubr.msk.f32.vlgmr.msra.gmra.mrb[6].mxu0 %vm264_vm3, %v222_v15 }
  0x2e   : > { %10884 = vmatmul.mubr.msk.f32.gmra.mrb[6].mxu1 %vm264_vm3, %v224_v31  ;;  %547 = vmatprep.mubr.f32.mxu0 %v12415_v0 }
  0x2f   : > { %470 = vmatprep.mubr.f32.mxu1 %v12415_v0  ;;  %11797 = vmatpush1.bf16.xpose.msra.mxu0 %v11796_v43 }
  0x30   : > { %11802 = vmatprep.subr.bf16.mxu0 %v12418_v47 }
  0x31   : > { %10889 = vmatmul.mubr.msk.f32.gmra.mrb[8].mxu0 %vm264_vm3, %v223_v30 }
  0x32   : > { %10885 = vmatmul.mubr.msk.f32.gmra.mrb[8].mxu1 %vm264_vm3, %v225_v23  ;;  %553 = vmatprep.mubr.f32.mxu0 %v12415_v0 }
  0x33   : > { %11536 = vmatprep.mubr.msk.f32.mxu1 %vm264_vm3, %v222_v15  ;;  %v689_v15 = vld [vmem:[%s14557_s3 + $0x50] sm:$0x3] }
  0x34   : > { %v11810_v22 = vpack.c.bf16 %v689_v15, %v682_v14 }
  0x35   : > { %10890 = vmatmul.mubr.msk.f32.gmra.mrb[10].mxu0 %vm264_vm3, %v224_v31 }
  0x36   : > { %11537 = vmatmul.mubr.msk.f32.vlgmr.msra.gmra.mrb[10].mxu1 %vm264_vm3, %v223_v30  ;;  %559 = vmatprep.mubr.f32.mxu0 %v12415_v0  ;;  %v679_v30 = vld [vmem:[%s14557_s3] sm:$0xff] }
  0x37   : > { %11539 = vmatprep.mubr.msk.f32.mxu1 %vm264_vm3, %v224_v31  ;;  %11793 = vmatpush1.bf16.xpose.msra.mxu1 %v11792_v39  ;;  %v686_v31 = vld [vmem:[%s14557_s3 + $0x38] sm:$0x3] }
  0x38   : > { %11799 = vmatprep.subr.bf16.mxu1 %v11798_v46  ;;  %v11808_v40 = vpack.c.bf16 %v686_v31, %v679_v30  ;;  %v681_v46 = vld [vmem:[%s14557_s3 + $0x10] sm:$0xff] }
  0x39   : > { %10891 = vmatmul.mubr.msk.f32.gmra.mrb[12].mxu0 %vm264_vm3, %v225_v23  ;;  %v10942_v30 = vld [vmem:[%s14557_s3 + $0x190] sm:$0x3] }
  0x3a   : > { %11540 = vmatmul.mubr.msk.f32.gmra.mrb[12].mxu1 %vm264_vm3, %v225_v23 }
  0x8f   : > { %v12611_v48 = vpop.permute.xlu0 %246 }
  0xf4   : > { %v365_v50 = vpop.f32.mrb[0].mxu0 }
  0xf5   : > { %v12613_v49 = vpop.f32.mrb[0].mxu1  ;;  %v366_v52 = vadd.f32 %v365_v50, %v12611_v48  ;;  %v367_v53 = vpop.f32.mrb[1].mxu0  ;;  %v688_v50 = vld [vmem:[%s14557_s3 + $0x48] sm:$0x3] }
  0xf6   : > { %v12615_v51 = vpop.f32.mrb[1].mxu1  ;;  %v368_v54 = vadd.f32 %v367_v53, %v12611_v48 }
  0xf7   : > { %v12619_v55 = vmax.f32 %v366_v52, 0.0  ;;  %v683_v52 = vld [vmem:[%s14557_s3 + $0x20] sm:$0xff] }
  0xf8   : > { %v12627_v58 = vmax.f32 %v368_v54, 0.0  ;;  %v12629_v60 = vpop.f32.mrb[2].mxu0  ;;  %v11812_v54 = vpack.c.bf16 %v688_v50, %v681_v46  ;;  %v10937_v46 = vld [vmem:[%s14557_s3 + $0x168] sm:$0xff]  ;;  %v10944_v50 = vld [vmem:[%s14557_s3 + $0x1a0] sm:$0x3] }
  0xf9   : > { %v454_v59 = vpop.f32.mrb[2].mxu1  ;;  %v12638_v2 = vpop.f32.mrb[3].mxu0  ;;  %v715_v3 = vrot.slane %v12619_v55, 1  ;;  %v1320_v35 = vrot.slane %v12619_v55, 2 }
  0xfa   : > { %v455_v63 = vadd.f32 %v454_v59, %v12611_v48  ;;  %v456_v1 = vpop.f32.mrb[3].mxu1  ;;  %v716_v5 = vrot.slane %v12627_v58, 1 }
  0xfb   : > { %v457_v4 = vadd.f32 %v456_v1, %v12611_v48  ;;  %v692_v1 = vld [vmem:[%s14557_s3 + $0x68] sm:$0x3] }
  0xfc   : > { %v12643_v7 = vmax.f32 %v455_v63, 0.0  ;;  %v12655_v13 = vpop.f32.mrb[4].mxu0  ;;  %801 = vmatprep.mubr.f32.mxu1 %v716_v5  ;;  %v685_v63 = vld [vmem:[%s14557_s3 + $0x30] sm:$0xff]  ;;  %v10920_v5 = vld [vmem:[%s14557_s3 + $0xf8] sm:$0xff] }
  0xfd   : > { %v12651_v11 = vmax.f32 %v457_v4, 0.0  ;;  %v12653_v12 = vpop.f32.mrb[4].mxu1  ;;  %v12665_v17 = vpop.f32.mrb[5].mxu0  ;;  %802 = vmatmul.mubr.f32.vlgmr.msra.gmra.mrb[14].mxu1 %v715_v3  ;;  %v10917_v3 = vld [vmem:[%s14557_s3 + $0xe0] sm:$0xff]  ;;  %v10924_v4 = vld [vmem:[%s14557_s3 + $0x118] sm:$0x3]  ;;  %v11819_v8 = vpack.c.bf16 %v692_v1, %v685_v63 }
  0xfe   : > { %v12663_v16 = vpop.f32.mrb[5].mxu1  ;;  %11801 = vmatpush1.bf16.xpose.msra.mxu1 %v11800_v6  ;;  %v717_v20 = vrot.slane %v12643_v7, 1  ;;  %v10927_v6 = vld [vmem:[%s14557_s3 + $0x130] sm:$0x3]  ;;  %v11824_v14 = vpack.c.bf16 %v10924_v4, %v10917_v3  ;;  %v1322_v56 = vrot.slane %v12643_v7, 2  ;;  %v10936_v1 = vld [vmem:[%s14557_s3 + $0x160] sm:$0xff] }
  0xff   : > { %v718_v18 = vrot.slane %v12651_v11, 1  ;;  %11807 = vmatprep.subr.bf16.mxu1 %v11806_v10  ;;  %v10929_v10 = vld [vmem:[%s14557_s3 + $0x140] sm:$0x3]  ;;  %v11826_v15 = vpack.c.bf16 %v10927_v6, %v10920_v5  ;;  %v1323_v36 = vrot.slane %v12651_v11, 2  ;;  %v10943_v3 = vld [vmem:[%s14557_s3 + $0x198] sm:$0x3] }
 0x100   : > { %v543_v24 = vpop.f32.mrb[6].mxu0  ;;  %v10938_v4 = vld [vmem:[%s14557_s3 + $0x170] sm:$0xff]  ;;  %v10945_v5 = vld [vmem:[%s14557_s3 + $0x1a8] sm:$0x3]  ;;  %v11844_v6 = vpack.c.bf16 %v10943_v3, %v10936_v1 }
 0x101   : > { %v12675_v23 = vpop.f32.mrb[6].mxu1  ;;  %871 = vmatprep.mubr.f32.mxu0 %v718_v18  ;;  %v544_v25 = vadd.f32 %v543_v24, %v12611_v48  ;;  %v545_v27 = vpop.f32.mrb[7].mxu0  ;;  %v1321_v18 = vrot.slane %v12627_v58, 2  ;;  %v10921_v24 = vld [vmem:[%s14557_s3 + $0x100] sm:$0xff] }
 0x102   : > { %v12678_v26 = vpop.f32.mrb[7].mxu1  ;;  %872 = vmatmul.mubr.f32.vlgmr.msra.gmra.mrb[14].mxu0 %v717_v20  ;;  %v546_v28 = vadd.f32 %v545_v27, %v12611_v48  ;;  %v10919_v20 = vld [vmem:[%s14557_s3 + $0xf0] sm:$0xff] }
 0x103   : > { %11805 = vmatpush3.bf16.xpose.msk.msra.mxu0 %vm12671_vm5, %v11803_v19  ;;  %11546 = vmatprep.mubr.msk.f32.mxu0 %vm12419_vm6, %v12415_v0  ;;  %v12685_v29 = vmax.f32 %v544_v25, 0.0  ;;  %v11830_v19 = vpack.c.bf16 %v10929_v10, %v10922_v9  ;;  %v10928_v25 = vld [vmem:[%s14557_s3 + $0x138] sm:$0x3]  ;;  %v10959_v9 = vld [vmem:[%s14557_s3 + $0x200] sm:$0x3] }
 0x104   : > { %11811 = vmatprep.subr.bf16.mxu0 %v11810_v22  ;;  %v12693_v32 = vmax.f32 %v546_v28, 0.0  ;;  %v12697_v34 = vpop.f32.mrb[8].mxu0  ;;  %v10926_v22 = vld [vmem:[%s14557_s3 + $0x128] sm:$0x3]  ;;  %v10935_v28 = vld [vmem:[%s14557_s3 + $0x158] sm:$0xff]  ;;  %v11832_v31 = vpack.c.bf16 %v10928_v25, %v10921_v24  ;;  %v10951_v25 = vld [vmem:[%s14557_s3 + $0x1c0] sm:$0xff] }
 0x105   : > { %v12695_v33 = vpop.f32.mrb[8].mxu1  ;;  %v12707_v38 = vpop.f32.mrb[9].mxu0  ;;  %v719_v41 = vrot.slane %v12685_v29, 1  ;;  %v11828_v27 = vpack.c.bf16 %v10926_v22, %v10919_v20  ;;  %v10940_v22 = vld [vmem:[%s14557_s3 + $0x180] sm:$0xff]  ;;  %v10947_v24 = vld [vmem:[%s14557_s3 + $0x1b8] sm:$0x3] }
 0x106   : > { %v12705_v37 = vpop.f32.mrb[9].mxu1  ;;  %v720_v39 = vrot.slane %v12693_v32, 1  ;;  %v1642_v20 = vrot.slane %v12693_v32, 3  ;;  %v1959_v3 = vrot.slane %v12693_v32, 4 }
 0x108   : > { %941 = vmatprep.mubr.f32.mxu1 %v720_v39  ;;  %v11838_v39 = vpack.c.bf16 %v10942_v30, %v10935_v28  ;;  %v10954_v28 = vld [vmem:[%s14557_s3 + $0x1d8] sm:$0xff]  ;;  %v10961_v30 = vld [vmem:[%s14557_s3 + $0x210] sm:$0x3] }
 0x109   : > { %v12711_v43 = vpop.f32.mrb[10].mxu1  ;;  %942 = vmatmul.mubr.f32.vlgmr.msra.gmra.mrb[16].mxu1 %v719_v41  ;;  %v10923_v41 = vld [vmem:[%s14557_s3 + $0x110] sm:$0xff] }
 0x10a   : > { %v632_v44 = vpop.f32.mrb[11].mxu1  ;;  %11809 = vmatpush1.bf16.xpose.msra.mxu1 %v11808_v40  ;;  %1089 = vmatprep.mubr.f32.mxu1 %v12627_v58  ;;  %v1325_v40 = vrot.slane %v12693_v32, 2 }
 0x10b   : > { %v633_v45 = vadd.f32 %v632_v44, %v12611_v48  ;;  %11815 = vmatprep.subr.bf16.mxu1 %v11814_v42  ;;  %v690_v48 = vld [vmem:[%s14557_s3 + $0x58] sm:$0x3]  ;;  %v10930_v42 = vld [vmem:[%s14557_s3 + $0x148] sm:$0x3]  ;;  %v10934_v44 = vld [vmem:[%s14557_s3 + $0x150] sm:$0xff] }
 0x10c   : > { %v11816_v61 = vpack.c.bf16 %v690_v48, %v683_v52  ;;  %v11835_v52 = vpack.c.bf16 %v10930_v42, %v10923_v41  ;;  %v10939_v48 = vld [vmem:[%s14557_s3 + $0x178] sm:$0xff]  ;;  %v1641_v41 = vrot.slane %v12685_v29, 3  ;;  %v11858_v42 = vpack.c.bf16 %v10961_v30, %v10954_v28  ;;  %v10970_v28 = vld [vmem:[%s14557_s3 + $0x240] sm:$0xff] }
 0x10d   : > { %v12727_v53 = vmax.f32 %v633_v45, 0.0  ;;  %v10941_v45 = vld [vmem:[%s14557_s3 + $0x188] sm:$0x3]  ;;  %v10977_v30 = vld [vmem:[%s14557_s3 + $0x278] sm:$0x3] }
 0x10e   : > { %v11840_v57 = vpack.c.bf16 %v10941_v45, %v10934_v44  ;;  %v1955_v44 = vrot.slane %v12627_v58, 4 }
 0x10f   : > { %v721_v59 = vrot.slane %v12727_v53, 1  ;;  %v1326_v10 = vrot.slane %v12727_v53, 2 }
 0x111   : > { %11547 = vmatmul.mubr.msk.f32.vlgmr.msra.gmra.mrb[16].mxu0 %vm728_vm4, %v721_v59  ;;  %1090 = vmatmul.mubr.f32.vlgmr.msra.gmra.mrb[18].mxu1 %v12619_v55  ;;  %v1324_v59 = vrot.slane %v12685_v29, 2 }
 0x112   : > { %11813 = vmatpush1.bf16.xpose.msra.mxu0 %v11812_v54  ;;  %1159 = vmatprep.mubr.f32.mxu0 %v12651_v11  ;;  %v10946_v54 = vld [vmem:[%s14557_s3 + $0x1b0] sm:$0x3] }
 0x113   : > { %11817 = vmatpush1.bf16.xpose.msra.mxu1 %v11816_v61  ;;  %1229 = vmatprep.mubr.f32.mxu1 %v12693_v32  ;;  %v11842_v61 = vpack.c.bf16 %v10944_v50, %v10937_v46  ;;  %v11846_v63 = vpack.c.bf16 %v10946_v54, %v10939_v48  ;;  %v10953_v46 = vld [vmem:[%s14557_s3 + $0x1d0] sm:$0xff]  ;;  %v10960_v50 = vld [vmem:[%s14557_s3 + $0x208] sm:$0x3]  ;;  %v10962_v48 = vld [vmem:[%s14557_s3 + $0x218] sm:$0x3] }
 0x114   : > { %11818 = vmatprep.subr.bf16.mxu0 %v12418_v47  ;;  %11823 = vmatprep.subr.bf16.mxu1 %v11822_v62  ;;  %v1638_v62 = vrot.slane %v12627_v58, 3  ;;  %v11860_v54 = vpack.c.bf16 %v10960_v50, %v10953_v46  ;;  %v12959_v50 = vpop.f32.mrb[10].mxu0 }
 0x119   : > { %1160 = vmatmul.mubr.f32.vlgmr.msra.gmra.mrb[18].mxu0 %v12643_v7 }
 0x11a   : > { %1230 = vmatmul.mubr.f32.vlgmr.msra.gmra.mrb[20].mxu1 %v12685_v29  ;;  %11821 = vmatpush3.bf16.xpose.msk.msra.mxu0 %vm12671_vm5, %v11819_v8  ;;  %v10952_v8 = vld [vmem:[%s14557_s3 + $0x1c8] sm:$0xff] }
 0x11b   : > { %11825 = vmatpush1.bf16.xpose.msra.mxu1 %v11824_v14  ;;  %1405 = vmatprep.mubr.f32.mxu1 %v1321_v18  ;;  %v11848_v14 = vpack.c.bf16 %v10945_v5, %v10938_v4  ;;  %v1640_v18 = vrot.slane %v12651_v11, 3  ;;  %v10957_v4 = vld [vmem:[%s14557_s3 + $0x1f0] sm:$0xff]  ;;  %v10964_v5 = vld [vmem:[%s14557_s3 + $0x228] sm:$0x3] }
 0x11c   : > { %11553 = vmatprep.mubr.msk.f32.mxu0 %vm12419_vm6, %v12415_v0  ;;  %11827 = vmatprep.subr.bf16.mxu0 %v11826_v15  ;;  %v1637_v15 = vrot.slane %v12619_v55, 3 }
 0x11d   : > { %11831 = vmatprep.subr.bf16.mxu1 %v11830_v19  ;;  %v11854_v19 = vpack.c.bf16 %v10959_v9, %v10952_v8  ;;  %v10975_v8 = vld [vmem:[%s14557_s3 + $0x268] sm:$0x3] }
 0x11e   : > { %v10971_v9 = vld [vmem:[%s14557_s3 + $0x248] sm:$0xff] }
 0x121   : > { %11554 = vmatmul.mubr.msk.f32.vlgmr.msra.gmra.mrb[20].mxu0 %vm728_vm4, %v12727_v53 }
 0x122   : > { %1406 = vmatmul.mubr.f32.vlgmr.msra.gmra.mrb[22].mxu1 %v1320_v35  ;;  %11829 = vmatpush1.bf16.xpose.msra.mxu0 %v11828_v27  ;;  %v10958_v27 = vld [vmem:[%s14557_s3 + $0x1f8] sm:$0x3]  ;;  %v10956_v35 = vld [vmem:[%s14557_s3 + $0x1e8] sm:$0xff] }
 0x123   : > { %1475 = vmatprep.mubr.f32.mxu0 %v1323_v36  ;;  %11833 = vmatpush1.bf16.xpose.msra.mxu1 %v11832_v31  ;;  %v11851_v31 = vpack.c.bf16 %v10947_v24, %v10940_v22  ;;  %v10963_v36 = vld [vmem:[%s14557_s3 + $0x220] sm:$0x3]  ;;  %v1958_v22 = vrot.slane %v12685_v29, 4 }
 0x124   : > { %1545 = vmatprep.mubr.f32.mxu1 %v1325_v40  ;;  %11834 = vmatprep.subr.bf16.mxu0 %v12418_v47  ;;  %v11856_v40 = vpack.c.bf16 %v10958_v27, %v10951_v25  ;;  %v11862_v45 = vpack.c.bf16 %v10963_v36, %v10956_v35  ;;  %v2272_v25 = vrot.slane %v12627_v58, 5  ;;  %v10979_v35 = vld [vmem:[%s14557_s3 + $0x288] sm:$0x3]  ;;  %v11876_v36 = vpack.c.bf16 %v10977_v30, %v10970_v28  ;;  %v11003_v28 = vld [vmem:[%s14557_s3 + $0x318] sm:$0xff]  ;;  %v11010_v30 = vld [vmem:[%s14557_s3 + $0x350] sm:$0x3] }
 0x125   : > { %11839 = vmatprep.subr.bf16.mxu1 %v11838_v39  ;;  %v1639_v39 = vrot.slane %v12643_v7, 3 }
 0x129   : > { %1476 = vmatmul.mubr.f32.vlgmr.msra.gmra.mrb[22].mxu0 %v1322_v56  ;;  %v10969_v56 = vld [vmem:[%s14557_s3 + $0x238] sm:$0xff] }
 0x12a   : > { %1546 = vmatmul.mubr.f32.vlgmr.msra.gmra.mrb[24].mxu1 %v1324_v59  ;;  %11837 = vmatpush3.bf16.xpose.msk.msra.mxu0 %vm12671_vm5, %v11835_v52  ;;  %v10955_v52 = vld [vmem:[%s14557_s3 + $0x1e0] sm:$0xff]  ;;  %v1643_v59 = vrot.slane %v12727_v53, 3 }
 0x12b   : > { %11841 = vmatpush1.bf16.xpose.msra.mxu1 %v11840_v57  ;;  %1722 = vmatprep.mubr.f32.mxu1 %v1638_v62  ;;  %v10976_v57 = vld [vmem:[%s14557_s3 + $0x270] sm:$0x3]  ;;  %v1954_v62 = vrot.slane %v12619_v55, 4 }
 0x12c   : > { %11560 = vmatprep.mubr.msk.f32.mxu0 %vm12419_vm6, %v12415_v0  ;;  %11843 = vmatprep.subr.bf16.mxu0 %v11842_v61  ;;  %v11864_v61 = vpack.c.bf16 %v10962_v48, %v10955_v52  ;;  %v11870_v1 = vpack.c.bf16 %v10976_v57, %v10969_v56  ;;  %v2276_v52 = vrot.slane %v12693_v32, 5  ;;  %v10974_v48 = vld [vmem:[%s14557_s3 + $0x260] sm:$0xff]  ;;  %v12968_v56 = vpop.f32.mrb[11].mxu0  ;;  %v12970_v57 = vpop.f32.mrb[12].mxu1 }
 0x12d   : > { %11847 = vmatprep.subr.bf16.mxu1 %v11846_v63  ;;  %v1957_v63 = vrot.slane %v12651_v11, 4 }
 0x131   : > { %11561 = vmatmul.mubr.msk.f32.vlgmr.msra.gmra.mrb[24].mxu0 %vm728_vm4, %v1326_v10  ;;  %v10978_v10 = vld [vmem:[%s14557_s3 + $0x280] sm:$0x3] }
 0x132   : > { %1723 = vmatmul.mubr.f32.vlgmr.msra.gmra.mrb[26].mxu1 %v1637_v15  ;;  %11845 = vmatpush1.bf16.xpose.msra.mxu0 %v11844_v6  ;;  %v10968_v6 = vld [vmem:[%s14557_s3 + $0x230] sm:$0xff]  ;;  %v10973_v15 = vld [vmem:[%s14557_s3 + $0x258] sm:$0xff]  ;;  %v11874_v24 = vpack.c.bf16 %v10978_v10, %v10971_v9  ;;  %v2273_v9 = vrot.slane %v12643_v7, 5 }
 0x133   : > { %1792 = vmatprep.mubr.f32.mxu0 %v1640_v18  ;;  %11849 = vmatpush1.bf16.xpose.msra.mxu1 %v11848_v14  ;;  %v11867_v14 = vpack.c.bf16 %v10964_v5, %v10957_v4  ;;  %v10980_v18 = vld [vmem:[%s14557_s3 + $0x290] sm:$0x3] }
 0x134   : > { %1862 = vmatprep.mubr.f32.mxu1 %v1642_v20  ;;  %11850 = vmatprep.subr.bf16.mxu0 %v12418_v47  ;;  %v11872_v20 = vpack.c.bf16 %v10975_v8, %v10968_v6  ;;  %v11878_v27 = vpack.c.bf16 %v10980_v18, %v10973_v15  ;;  %v10990_v6 = vld [vmem:[%s14557_s3 + $0x2c8] sm:$0xff]  ;;  %v10997_v8 = vld [vmem:[%s14557_s3 + $0x300] sm:$0x3]  ;;  %v2589_v18 = vrot.slane %v12627_v58, 6 }
 0x135   : > { %11855 = vmatprep.subr.bf16.mxu1 %v11854_v19  ;;  %v1956_v19 = vrot.slane %v12643_v7, 4 }
 0x139   : > { %1793 = vmatmul.mubr.f32.vlgmr.msra.gmra.mrb[26].mxu0 %v1639_v39  ;;  %v10986_v39 = vld [vmem:[%s14557_s3 + $0x2a8] sm:$0xff] }
 0x13a   : > { %1863 = vmatmul.mubr.f32.vlgmr.msra.gmra.mrb[28].mxu1 %v1641_v41  ;;  %11853 = vmatpush3.bf16.xpose.msk.msra.mxu0 %vm12671_vm5, %v11851_v31  ;;  %v10972_v31 = vld [vmem:[%s14557_s3 + $0x250] sm:$0xff]  ;;  %v1960_v41 = vrot.slane %v12727_v53, 4 }
 0x13b   : > { %11857 = vmatpush1.bf16.xpose.msra.mxu1 %v11856_v40  ;;  %2039 = vmatprep.mubr.f32.mxu1 %v1955_v44  ;;  %v10993_v40 = vld [vmem:[%s14557_s3 + $0x2e0] sm:$0x3]  ;;  %v2271_v44 = vrot.slane %v12619_v55, 5 }
 0x13c   : > { %11567 = vmatprep.mubr.msk.f32.mxu0 %vm12419_vm6, %v12415_v0  ;;  %11859 = vmatprep.subr.bf16.mxu0 %v11858_v42  ;;  %v11880_v42 = vpack.c.bf16 %v10979_v35, %v10972_v31  ;;  %v11886_v46 = vpack.c.bf16 %v10993_v40, %v10986_v39  ;;  %v2277_v31 = vrot.slane %v12727_v53, 5  ;;  %v2591_v39 = vrot.slane %v12651_v11, 6 }
 0x13d   : > { %11863 = vmatprep.subr.bf16.mxu1 %v11862_v45  ;;  %v2274_v45 = vrot.slane %v12651_v11, 5  ;;  %v11902_v40 = vpack.c.bf16 %v11010_v30, %v11003_v28  ;;  %v13081_v30 = vpop.permute.xlu0 %251 }
 0x141   : > { %11568 = vmatmul.mubr.msk.f32.vlgmr.msra.gmra.mrb[28].mxu0 %vm728_vm4, %v1643_v59  ;;  %v10985_v59 = vld [vmem:[%s14557_s3 + $0x2a0] sm:$0xff] }
 0x142   : > { %2040 = vmatmul.mubr.f32.vlgmr.msra.gmra.mrb[30].mxu1 %v1954_v62  ;;  %11861 = vmatpush1.bf16.xpose.msra.mxu0 %v11860_v54  ;;  %v10981_v54 = vld [vmem:[%s14557_s3 + $0x298] sm:$0x3]  ;;  %v12979_v62 = vpop.f32.mrb[12].mxu0 }
 0x143   : > { %2109 = vmatprep.mubr.f32.mxu0 %v1957_v63  ;;  %11865 = vmatpush1.bf16.xpose.msra.mxu1 %v11864_v61  ;;  %v10992_v61 = vld [vmem:[%s14557_s3 + $0x2d8] sm:$0x3]  ;;  %v12981_v63 = vpop.f32.mrb[13].mxu1  ;;  %v12989_v4 = vpop.f32.mrb[13].mxu0  ;;  %v11883_v5 = vpack.c.bf16 %v10981_v54, %v10974_v48  ;;  %v11012_v48 = vld [vmem:[%s14557_s3 + $0x360] sm:$0x3] }
 0x144   : > { %2179 = vmatprep.mubr.f32.mxu1 %v1959_v3  ;;  %11866 = vmatprep.subr.bf16.mxu0 %v12418_v47  ;;  %v10995_v3 = vld [vmem:[%s14557_s3 + $0x2f0] sm:$0x3]  ;;  %v11888_v10 = vpack.c.bf16 %v10992_v61, %v10985_v59  ;;  %v11007_v59 = vld [vmem:[%s14557_s3 + $0x338] sm:$0xff] }
 0x145   : > { %11871 = vmatprep.subr.bf16.mxu1 %v11870_v1  ;;  %v10988_v1 = vld [vmem:[%s14557_s3 + $0x2b8] sm:$0xff]  ;;  %v11014_v61 = vld [vmem:[%s14557_s3 + $0x370] sm:$0x3] }
 0x146   : > { %v11890_v15 = vpack.c.bf16 %v10995_v3, %v10988_v1  ;;  %v2590_v1 = vrot.slane %v12643_v7, 6 }
 0x149   : > { %2110 = vmatmul.mubr.f32.vlgmr.msra.gmra.mrb[30].mxu0 %v1956_v19  ;;  %v11894_v19 = vpack.c.bf16 %v10997_v8, %v10990_v6  ;;  %v2906_v8 = vrot.slane %v12627_v58, 7  ;;  %v11006_v58 = vld [vmem:[%s14557_s3 + $0x330] sm:$0xff] }
 0x14a   : > { %2180 = vmatmul.mubr.f32.vlgmr.msra.gmra.mrb[32].mxu1 %v1958_v22  ;;  %11869 = vmatpush3.bf16.xpose.msk.msra.mxu0 %vm12671_vm5, %v11867_v14  ;;  %v2275_v14 = vrot.slane %v12685_v29, 5  ;;  %v10994_v22 = vld [vmem:[%s14557_s3 + $0x2e8] sm:$0x3] }
 0x14b   : > { %11873 = vmatpush1.bf16.xpose.msra.mxu1 %v11872_v20  ;;  %2356 = vmatprep.mubr.f32.mxu1 %v2272_v25  ;;  %v10987_v20 = vld [vmem:[%s14557_s3 + $0x2b0] sm:$0xff]  ;;  %v10996_v25 = vld [vmem:[%s14557_s3 + $0x2f8] sm:$0x3] }
 0x14c   : > { %11574 = vmatprep.mubr.msk.f32.mxu0 %vm12419_vm6, %v12415_v0  ;;  %11875 = vmatprep.subr.bf16.mxu0 %v11874_v24  ;;  %v10989_v24 = vld [vmem:[%s14557_s3 + $0x2c0] sm:$0xff] }
 0x14d   : > { %11879 = vmatprep.subr.bf16.mxu1 %v11878_v27  ;;  %v11892_v27 = vpack.c.bf16 %v10994_v22, %v10987_v20  ;;  %v11896_v35 = vpack.c.bf16 %v10996_v25, %v10989_v24  ;;  %v11027_v20 = vld [vmem:[%s14557_s3 + $0x3c0] sm:$0x3]  ;;  %v2594_v22 = vrot.slane %v12727_v53, 6  ;;  %v2905_v25 = vrot.slane %v12619_v55, 7 }
 0x151   : > { %11575 = vmatmul.mubr.msk.f32.vlgmr.msra.gmra.mrb[32].mxu0 %vm728_vm4, %v1960_v41  ;;  %v2593_v41 = vrot.slane %v12693_v32, 6 }
 0x152   : > { %2357 = vmatmul.mubr.f32.vlgmr.msra.gmra.mrb[34].mxu1 %v2271_v44  ;;  %11877 = vmatpush1.bf16.xpose.msra.mxu0 %v11876_v36  ;;  %v2588_v36 = vrot.slane %v12619_v55, 6  ;;  %v10998_v44 = vld [vmem:[%s14557_s3 + $0x308] sm:$0x3]  ;;  %v11015_v55 = vld [vmem:[%s14557_s3 + $0x378] sm:$0x3] }
 0x153   : > { %2426 = vmatprep.mubr.f32.mxu0 %v2274_v45  ;;  %11881 = vmatpush1.bf16.xpose.msra.mxu1 %v11880_v42  ;;  %v10991_v42 = vld [vmem:[%s14557_s3 + $0x2d0] sm:$0xff] }
 0x154   : > { %2496 = vmatprep.mubr.f32.mxu1 %v2276_v52  ;;  %11882 = vmatprep.subr.bf16.mxu0 %v12418_v47  ;;  %v11002_v45 = vld [vmem:[%s14557_s3 + $0x310] sm:$0xff]  ;;  %v11005_v52 = vld [vmem:[%s14557_s3 + $0x328] sm:$0xff]  ;;  %v11899_v54 = vpack.c.bf16 %v10998_v44, %v10991_v42  ;;  %v11031_v44 = vld [vmem:[%s14557_s3 + $0x3e0] sm:$0x3] }
 0x155   : > { %11887 = vmatprep.subr.bf16.mxu1 %v11886_v46  ;;  %v11009_v46 = vld [vmem:[%s14557_s3 + $0x348] sm:$0x3]  ;;  %v11906_v6 = vpack.c.bf16 %v11012_v48, %v11005_v52 }
 0x156   : > { %v11904_v3 = vpack.c.bf16 %v11009_v46, %v11002_v45  ;;  %v11024_v42 = vld [vmem:[%s14557_s3 + $0x3a8] sm:$0xff]  ;;  %v2909_v46 = vrot.slane %v12685_v29, 7 }
 0x159   : > { %2427 = vmatmul.mubr.f32.vlgmr.msra.gmra.mrb[34].mxu0 %v2273_v9  ;;  %v11910_v9 = vpack.c.bf16 %v11014_v61, %v11007_v59  ;;  %v11021_v59 = vld [vmem:[%s14557_s3 + $0x390] sm:$0xff]  ;;  %v11023_v61 = vld [vmem:[%s14557_s3 + $0x3a0] sm:$0xff] }
 0x15a   : > { %2497 = vmatmul.mubr.f32.vlgmr.msra.gmra.mrb[36].mxu1 %v2275_v14  ;;  %11885 = vmatpush3.bf16.xpose.msk.msra.mxu0 %vm12671_vm5, %v11883_v5  ;;  %v2592_v5 = vrot.slane %v12685_v29, 6  ;;  %v11011_v14 = vld [vmem:[%s14557_s3 + $0x358] sm:$0x3]  ;;  %v372_v29 = vadd.f32 %v12629_v60, %v13081_v30 }
 0x15b   : > { %11889 = vmatpush1.bf16.xpose.msra.mxu1 %v11888_v10  ;;  %2673 = vmatprep.mubr.f32.mxu1 %v2589_v18  ;;  %v11004_v10 = vld [vmem:[%s14557_s3 + $0x320] sm:$0xff] }
 0x15c   : > { %11581 = vmatprep.mubr.msk.f32.mxu0 %vm12419_vm6, %v12415_v0  ;;  %11891 = vmatprep.subr.bf16.mxu0 %v11890_v15  ;;  %v11013_v15 = vld [vmem:[%s14557_s3 + $0x368] sm:$0x3]  ;;  %v11908_v18 = vpack.c.bf16 %v11011_v14, %v11004_v10  ;;  %v13145_v14 = vmax.f32 %v372_v29, 0.0  ;;  %v11049_v29 = vld [vmem:[%s14557_s3 + $0x458] sm:$0x3] }
 0x15d   : > { %11895 = vmatprep.subr.bf16.mxu1 %v11894_v19  ;;  %v11020_v19 = vld [vmem:[%s14557_s3 + $0x388] sm:$0xff]  ;;  %v11912_v24 = vpack.c.bf16 %v11013_v15, %v11006_v58  ;;  %v461_v15 = vadd.f32 %v12653_v12, %v13081_v30  ;;  %v11036_v12 = vld [vmem:[%s14557_s3 + $0x3f0] sm:$0xff] }
 0x15e   : > { %v11918_v28 = vpack.c.bf16 %v11027_v20, %v11020_v19  ;;  %v550_v19 = vadd.f32 %v12697_v34, %v13081_v30  ;;  %v11043_v20 = vld [vmem:[%s14557_s3 + $0x428] sm:$0x3]  ;;  %v11046_v34 = vld [vmem:[%s14557_s3 + $0x440] sm:$0x3] }
 0x161   : > { %11582 = vmatmul.mubr.msk.f32.vlgmr.msra.gmra.mrb[36].mxu0 %vm728_vm4, %v2277_v31  ;;  %v2910_v31 = vrot.slane %v12693_v32, 7  ;;  %v11026_v32 = vld [vmem:[%s14557_s3 + $0x3b8] sm:$0x3] }
 0x162   : > { %2674 = vmatmul.mubr.f32.vlgmr.msra.gmra.mrb[38].mxu1 %v2588_v36  ;;  %11893 = vmatpush1.bf16.xpose.msra.mxu0 %v11892_v27  ;;  %v2908_v27 = vrot.slane %v12651_v11, 7  ;;  %v11019_v11 = vld [vmem:[%s14557_s3 + $0x380] sm:$0xff]  ;;  %v374_v36 = vadd.f32 %v12638_v2, %v13081_v30  ;;  %v2907_v2 = vrot.slane %v12643_v7, 7  ;;  %v11028_v7 = vld [vmem:[%s14557_s3 + $0x3c8] sm:$0x3] }
 0x163   : > { %2743 = vmatprep.mubr.f32.mxu0 %v2591_v39  ;;  %11897 = vmatpush1.bf16.xpose.msra.mxu1 %v11896_v35  ;;  %v11008_v35 = vld [vmem:[%s14557_s3 + $0x340] sm:$0xff]  ;;  %v11022_v39 = vld [vmem:[%s14557_s3 + $0x398] sm:$0xff]  ;;  %v11920_v45 = vpack.c.bf16 %v11026_v32, %v11019_v11  ;;  %v11924_v60 = vpack.c.bf16 %v11028_v7, %v11021_v59 }
 0x164   : > { %2813 = vmatprep.mubr.f32.mxu1 %v2593_v41  ;;  %11898 = vmatprep.subr.bf16.mxu0 %v12418_v47  ;;  %v11915_v41 = vpack.c.bf16 %v11015_v55, %v11008_v35  ;;  %v13113_v48 = vmax.f32 %v374_v36, 0.0  ;;  %v13186_v35 = vmax.f32 %v550_v19, 0.0  ;;  %v638_v36 = vadd.f32 %v12711_v43, %v13081_v30  ;;  %v11047_v43 = vld [vmem:[%s14557_s3 + $0x448] sm:$0x3]  ;;  %v11042_v7 = vld [vmem:[%s14557_s3 + $0x420] sm:$0xff]  ;;  %v11055_v19 = vld [vmem:[%s14557_s3 + $0x470] sm:$0xff] }
 0x165   : > { %11903 = vmatprep.subr.bf16.mxu1 %v11902_v40  ;;  %v11029_v40 = vld [vmem:[%s14557_s3 + $0x3d0] sm:$0x3] }
 0x166   : > { %v11922_v52 = vpack.c.bf16 %v11029_v40, %v11022_v39  ;;  %v3534_v11 = vrot.slane %v13113_v48, 1  ;;  %v11038_v39 = vld [vmem:[%s14557_s3 + $0x400] sm:$0xff]  ;;  %v11045_v40 = vld [vmem:[%s14557_s3 + $0x438] sm:$0x3] }
 0x169   : > { %2744 = vmatmul.mubr.f32.vlgmr.msra.gmra.mrb[38].mxu0 %v2590_v1  ;;  %v11030_v1 = vld [vmem:[%s14557_s3 + $0x3d8] sm:$0x3] }
 0x16a   : > { %2814 = vmatmul.mubr.f32.vlgmr.msra.gmra.mrb[40].mxu1 %v2592_v5  ;;  %11901 = vmatpush3.bf16.xpose.msk.msra.mxu0 %vm12671_vm5, %v11899_v54  ;;  %v11926_v54 = vpack.c.bf16 %v11031_v44, %v11024_v42  ;;  %v552_v5 = vadd.f32 %v12707_v38, %v13081_v30  ;;  %v11928_v10 = vpack.c.bf16 %v11030_v1, %v11023_v61  ;;  %v11054_v42 = vld [vmem:[%s14557_s3 + $0x468] sm:$0xff]  ;;  %v11061_v44 = vld [vmem:[%s14557_s3 + $0x4a0] sm:$0x3]  ;;  %v11060_v1 = vld [vmem:[%s14557_s3 + $0x498] sm:$0x3] }
 0x16b   : > { %11905 = vmatpush1.bf16.xpose.msra.mxu1 %v11904_v3  ;;  %2990 = vmatprep.mubr.f32.mxu1 %v2906_v8  ;;  %v463_v3 = vadd.f32 %v12663_v16, %v13081_v30  ;;  %v11044_v8 = vld [vmem:[%s14557_s3 + $0x430] sm:$0x3]  ;;  %v11940_v30 = vpack.c.bf16 %v11045_v40, %v11038_v39  ;;  %v11053_v61 = vld [vmem:[%s14557_s3 + $0x460] sm:$0xff]  ;;  %v11066_v40 = vld [vmem:[%s14557_s3 + $0x4c8] sm:$0x3] }
 0x16c   : > { %11588 = vmatprep.mubr.msk.f32.mxu0 %vm12419_vm6, %v12415_v0  ;;  %11907 = vmatprep.subr.bf16.mxu0 %v11906_v6  ;;  %v11037_v6 = vld [vmem:[%s14557_s3 + $0x3f8] sm:$0xff]  ;;  %v13150_v38 = vmax.f32 %v552_v5, 0.0  ;;  %v11063_v5 = vld [vmem:[%s14557_s3 + $0x4b0] sm:$0x3] }
 0x16d   : > { %11911 = vmatprep.subr.bf16.mxu1 %v11910_v9  ;;  %v2911_v9 = vrot.slane %v12727_v53, 7  ;;  %v13147_v58 = vmax.f32 %v463_v3, 0.0  ;;  %v11934_v16 = vpack.c.bf16 %v11044_v8, %v11037_v6  ;;  %v11025_v53 = vld [vmem:[%s14557_s3 + $0x3b0] sm:$0xff]  ;;  %v11056_v3 = vld [vmem:[%s14557_s3 + $0x478] sm:$0xff]  ;;  %v11058_v6 = vld [vmem:[%s14557_s3 + $0x488] sm:$0xff] }
 0x16e   : > { %v3538_v59 = vrot.slane %v13150_v38, 1  ;;  %v11065_v8 = vld [vmem:[%s14557_s3 + $0x4c0] sm:$0x3]  ;;  %v11059_v39 = vld [vmem:[%s14557_s3 + $0x490] sm:$0xff] }
 0x171   : > { %11589 = vmatmul.mubr.msk.f32.vlgmr.msra.gmra.mrb[40].mxu0 %vm728_vm4, %v2594_v22  ;;  %v11039_v22 = vld [vmem:[%s14557_s3 + $0x408] sm:$0xff] }
 0x172   : > { %2991 = vmatmul.mubr.f32.vlgmr.msra.gmra.mrb[42].mxu1 %v2905_v25  ;;  %11909 = vmatpush1.bf16.xpose.msra.mxu0 %v11908_v18  ;;  %v11032_v18 = vld [vmem:[%s14557_s3 + $0x3e8] sm:$0x3]  ;;  %v11041_v25 = vld [vmem:[%s14557_s3 + $0x418] sm:$0xff]  ;;  %v11938_v55 = vpack.c.bf16 %v11046_v34, %v11039_v22 }
 0x173   : > { %3060 = vmatprep.mubr.f32.mxu0 %v2908_v27  ;;  %11913 = vmatpush1.bf16.xpose.msra.mxu1 %v11912_v24  ;;  %v11931_v24 = vpack.c.bf16 %v11032_v18, %v11025_v53  ;;  %v11048_v27 = vld [vmem:[%s14557_s3 + $0x450] sm:$0x3]  ;;  %v3851_v53 = vrot.slane %v13113_v48, 2  ;;  %v11958_v18 = vpack.c.bf16 %v11065_v8, %v11058_v6  ;;  %v11064_v22 = vld [vmem:[%s14557_s3 + $0x4b8] sm:$0x3]  ;;  %v11088_v8 = vld [vmem:[%s14557_s3 + $0x548] sm:$0xff] }
 0x174   : > { %3130 = vmatprep.mubr.f32.mxu1 %v2910_v31  ;;  %11914 = vmatprep.subr.bf16.mxu0 %v12418_v47  ;;  %v11936_v31 = vpack.c.bf16 %v11043_v20, %v11036_v12  ;;  %v11942_v32 = vpack.c.bf16 %v11048_v27, %v11041_v25  ;;  %v11062_v12 = vld [vmem:[%s14557_s3 + $0x4a8] sm:$0x3]  ;;  %v11057_v20 = vld [vmem:[%s14557_s3 + $0x480] sm:$0xff]  ;;  %v11078_v25 = vld [vmem:[%s14557_s3 + $0x510] sm:$0x3] }
 0x175   : > { %11919 = vmatprep.subr.bf16.mxu1 %v11918_v28  ;;  %v13184_v28 = vmax.f32 %v461_v15, 0.0  ;;  %v11954_v15 = vpack.c.bf16 %v11063_v5, %v11056_v3  ;;  %v11956_v34 = vpack.c.bf16 %v11062_v12, %v11055_v19  ;;  %v11079_v3 = vld [vmem:[%s14557_s3 + $0x518] sm:$0x3]  ;;  %v11074_v5 = vld [vmem:[%s14557_s3 + $0x4f0] sm:$0xff]  ;;  %v4172_v19 = vrot.slane %v13150_v38, 3  ;;  %v11076_v12 = vld [vmem:[%s14557_s3 + $0x500] sm:$0xff] }
 0x179   : > { %3061 = vmatmul.mubr.f32.vlgmr.msra.gmra.mrb[42].mxu0 %v2907_v2  ;;  %v13215_v2 = vmax.f32 %v638_v36, 0.0  ;;  %v3855_v36 = vrot.slane %v13150_v38, 2 }
 0x17a   : > { %3131 = vmatmul.mubr.f32.vlgmr.msra.gmra.mrb[44].mxu1 %v2909_v46  ;;  %11917 = vmatpush3.bf16.xpose.msk.msra.mxu0 %vm12671_vm5, %v11915_v41  ;;  %v11040_v41 = vld [vmem:[%s14557_s3 + $0x410] sm:$0xff]  ;;  %v3533_v46 = vrot.slane %v13145_v14, 1 }
 0x17b   : > { %11921 = vmatpush1.bf16.xpose.msra.mxu1 %v11920_v45  ;;  %3295 = vmatprep.mubr.f32.mxu1 %v13113_v48  ;;  %v11944_v45 = vpack.c.bf16 %v11047_v43, %v11040_v41  ;;  %v3539_v27 = vrot.slane %v13215_v2, 1  ;;  %v11070_v41 = vld [vmem:[%s14557_s3 + $0x4d0] sm:$0xff]  ;;  %v11077_v43 = vld [vmem:[%s14557_s3 + $0x508] sm:$0x3] }
 0x17c   : > { %11595 = vmatprep.mubr.msk.f32.mxu0 %vm12419_vm6, %v12415_v0  ;;  %11923 = vmatprep.subr.bf16.mxu0 %v11922_v52  ;;  %v3536_v52 = vrot.slane %v13147_v58, 1 }
 0x17d   : > { %11927 = vmatprep.subr.bf16.mxu1 %v11926_v54  ;;  %v11950_v54 = vpack.c.bf16 %v11061_v44, %v11054_v42  ;;  %v11080_v42 = vld [vmem:[%s14557_s3 + $0x520] sm:$0x3]  ;;  %v11963_v44 = vpack.c.bf16 %v11066_v40, %v11059_v39  ;;  %v4485_v40 = vrot.slane %v13113_v48, 4 }
 0x181   : > { %11596 = vmatmul.mubr.msk.f32.vlgmr.msra.gmra.mrb[44].mxu0 %vm728_vm4, %v2911_v9  ;;  %v3535_v9 = vrot.slane %v13184_v28, 1 }
 0x182   : > { %3296 = vmatmul.mubr.f32.vlgmr.msra.gmra.mrb[46].mxu1 %v13145_v14  ;;  %11925 = vmatpush1.bf16.xpose.msra.mxu0 %v11924_v60  ;;  %v11947_v60 = vpack.c.bf16 %v11049_v29, %v11042_v7  ;;  %v4168_v29 = vrot.slane %v13113_v48, 3 }
 0x183   : > { %3365 = vmatprep.mubr.f32.mxu0 %v13147_v58  ;;  %11929 = vmatpush1.bf16.xpose.msra.mxu1 %v11928_v10  ;;  %v11952_v10 = vpack.c.bf16 %v11060_v1, %v11053_v61  ;;  %v11072_v1 = vld [vmem:[%s14557_s3 + $0x4e0] sm:$0xff] }
 0x184   : > { %3435 = vmatprep.mubr.f32.mxu1 %v13150_v38  ;;  %11930 = vmatprep.subr.bf16.mxu0 %v12418_v47  ;;  %v11972_v6 = vpack.c.bf16 %v11079_v3, %v11072_v1  ;;  %v4489_v1 = vrot.slane %v13150_v38, 4  ;;  %v11093_v3 = vld [vmem:[%s14557_s3 + $0x570] sm:$0xff] }
 0x185   : > { %11935 = vmatprep.subr.bf16.mxu1 %v11934_v16  ;;  %v3537_v16 = vrot.slane %v13186_v35, 1 }
 0x189   : > { %3366 = vmatmul.mubr.f32.vlgmr.msra.gmra.mrb[46].mxu0 %v13184_v28 }
 0x18a   : > { %3436 = vmatmul.mubr.f32.vlgmr.msra.gmra.mrb[48].mxu1 %v13186_v35  ;;  %11933 = vmatpush3.bf16.xpose.msk.msra.mxu0 %vm12671_vm5, %v11931_v24  ;;  %v11071_v24 = vld [vmem:[%s14557_s3 + $0x4d8] sm:$0xff] }
 0x18b   : > { %11937 = vmatpush1.bf16.xpose.msra.mxu1 %v11936_v31  ;;  %3618 = vmatprep.mubr.f32.mxu1 %v3534_v11  ;;  %v11960_v31 = vpack.c.bf16 %v11064_v22, %v11057_v20  ;;  %v3853_v11 = vrot.slane %v13147_v58, 2  ;;  %v11083_v20 = vld [vmem:[%s14557_s3 + $0x538] sm:$0x3]  ;;  %v11087_v22 = vld [vmem:[%s14557_s3 + $0x540] sm:$0xff] }
 0x18c   : > { %11602 = vmatprep.mubr.msk.f32.mxu0 %vm12419_vm6, %v12415_v0  ;;  %11939 = vmatprep.subr.bf16.mxu0 %v11938_v55  ;;  %v3850_v55 = vrot.slane %v13145_v14, 2 }
 0x18d   : > { %11943 = vmatprep.subr.bf16.mxu1 %v11942_v32  ;;  %v11966_v32 = vpack.c.bf16 %v11078_v25, %v11071_v24  ;;  %v11090_v24 = vld [vmem:[%s14557_s3 + $0x558] sm:$0xff]  ;;  %v11097_v25 = vld [vmem:[%s14557_s3 + $0x590] sm:$0x3] }
 0x18e   : > { %v11986_v39 = vpack.c.bf16 %v11097_v25, %v11090_v24  ;;  %v11113_v24 = vld [vmem:[%s14557_s3 + $0x5f8] sm:$0x3]  ;;  %v11108_v25 = vld [vmem:[%s14557_s3 + $0x5d0] sm:$0xff] }
 0x191   : > { %11603 = vmatmul.mubr.msk.f32.vlgmr.msra.gmra.mrb[48].mxu0 %vm728_vm4, %v13215_v2 }
 0x192   : > { %3619 = vmatmul.mubr.f32.vlgmr.msra.gmra.mrb[50].mxu1 %v3533_v46  ;;  %11941 = vmatpush1.bf16.xpose.msra.mxu0 %v11940_v30  ;;  %v11073_v30 = vld [vmem:[%s14557_s3 + $0x4e8] sm:$0xff]  ;;  %v11082_v46 = vld [vmem:[%s14557_s3 + $0x530] sm:$0x3] }
 0x193   : > { %3688 = vmatprep.mubr.f32.mxu0 %v3536_v52  ;;  %11945 = vmatpush1.bf16.xpose.msra.mxu1 %v11944_v45  ;;  %v11075_v45 = vld [vmem:[%s14557_s3 + $0x4f8] sm:$0xff]  ;;  %v3852_v52 = vrot.slane %v13184_v28, 2  ;;  %v11970_v7 = vpack.c.bf16 %v11080_v42, %v11073_v30  ;;  %v11096_v30 = vld [vmem:[%s14557_s3 + $0x588] sm:$0x3]  ;;  %v11091_v42 = vld [vmem:[%s14557_s3 + $0x560] sm:$0xff] }
 0x194   : > { %3758 = vmatprep.mubr.f32.mxu1 %v3538_v59  ;;  %11946 = vmatprep.subr.bf16.mxu0 %v12418_v47  ;;  %v3854_v59 = vrot.slane %v13186_v35, 2  ;;  %v11974_v61 = vpack.c.bf16 %v11082_v46, %v11075_v45  ;;  %v11105_v46 = vld [vmem:[%s14557_s3 + $0x5b8] sm:$0xff] }
 0x195   : > { %11951 = vmatprep.subr.bf16.mxu1 %v11950_v54  ;;  %v11968_v54 = vpack.c.bf16 %v11077_v43, %v11070_v41  ;;  %v11089_v43 = vld [vmem:[%s14557_s3 + $0x550] sm:$0xff] }
 0x196   : > { %v11988_v45 = vpack.c.bf16 %v11096_v30, %v11089_v43  ;;  %v4806_v30 = vrot.slane %v13150_v38, 5 }
 0x199   : > { %3689 = vmatmul.mubr.f32.vlgmr.msra.gmra.mrb[50].mxu0 %v3535_v9  ;;  %v11095_v9 = vld [vmem:[%s14557_s3 + $0x580] sm:$0x3] }
 0x19a   : > { %3759 = vmatmul.mubr.f32.vlgmr.msra.gmra.mrb[52].mxu1 %v3537_v16  ;;  %11949 = vmatpush3.bf16.xpose.msk.msra.mxu0 %vm12671_vm5, %v11947_v60  ;;  %v11081_v60 = vld [vmem:[%s14557_s3 + $0x528] sm:$0x3] }
 0x19b   : > { %11953 = vmatpush1.bf16.xpose.msra.mxu1 %v11952_v10  ;;  %3935 = vmatprep.mubr.f32.mxu1 %v3851_v53  ;;  %v3856_v10 = vrot.slane %v13215_v2, 2  ;;  %v11976_v16 = vpack.c.bf16 %v11081_v60, %v11074_v5  ;;  %v4170_v53 = vrot.slane %v13147_v58, 3  ;;  %v11100_v5 = vld [vmem:[%s14557_s3 + $0x5a8] sm:$0x3]  ;;  %v11104_v60 = vld [vmem:[%s14557_s3 + $0x5b0] sm:$0xff] }
 0x19c   : > { %11609 = vmatprep.mubr.msk.f32.mxu0 %vm12419_vm6, %v12415_v0  ;;  %11955 = vmatprep.subr.bf16.mxu0 %v11954_v15  ;;  %v4167_v15 = vrot.slane %v13145_v14, 3 }
 0x19d   : > { %11959 = vmatprep.subr.bf16.mxu1 %v11958_v18  ;;  %v11982_v18 = vpack.c.bf16 %v11095_v9, %v11088_v8  ;;  %v11107_v8 = vld [vmem:[%s14557_s3 + $0x5c8] sm:$0xff]  ;;  %v11114_v9 = vld [vmem:[%s14557_s3 + $0x600] sm:$0x3] }
 0x1a1   : > { %11610 = vmatmul.mubr.msk.f32.vlgmr.msra.gmra.mrb[52].mxu0 %vm728_vm4, %v3539_v27  ;;  %v11979_v27 = vpack.c.bf16 %v11083_v20, %v11076_v12  ;;  %v12002_v12 = vpack.c.bf16 %v11114_v9, %v11107_v8  ;;  %v4802_v20 = vrot.slane %v13113_v48, 5  ;;  %v4805_v8 = vrot.slane %v13186_v35, 5 }
 0x1a2   : > { %3936 = vmatmul.mubr.f32.vlgmr.msra.gmra.mrb[54].mxu1 %v3850_v55  ;;  %11957 = vmatpush1.bf16.xpose.msra.mxu0 %v11956_v34  ;;  %v11094_v34 = vld [vmem:[%s14557_s3 + $0x578] sm:$0x3]  ;;  %v11099_v55 = vld [vmem:[%s14557_s3 + $0x5a0] sm:$0x3] }
 0x1a3   : > { %4005 = vmatprep.mubr.f32.mxu0 %v3853_v11  ;;  %11961 = vmatpush1.bf16.xpose.msra.mxu1 %v11960_v31  ;;  %v11092_v31 = vld [vmem:[%s14557_s3 + $0x568] sm:$0xff]  ;;  %v4169_v11 = vrot.slane %v13184_v28, 3 }
 0x1a4   : > { %4075 = vmatprep.mubr.f32.mxu1 %v3855_v36  ;;  %11962 = vmatprep.subr.bf16.mxu0 %v12418_v47  ;;  %v4171_v36 = vrot.slane %v13186_v35, 3  ;;  %v11990_v41 = vpack.c.bf16 %v11099_v55, %v11092_v31  ;;  %v11122_v55 = vld [vmem:[%s14557_s3 + $0x628] sm:$0xff] }
 0x1a5   : > { %11967 = vmatprep.subr.bf16.mxu1 %v11966_v32  ;;  %v11984_v32 = vpack.c.bf16 %v11094_v34, %v11087_v22  ;;  %v11106_v34 = vld [vmem:[%s14557_s3 + $0x5c0] sm:$0xff] }
 0x1a6   : > { %v12004_v31 = vpack.c.bf16 %v11113_v24, %v11106_v34  ;;  %v11139_v24 = vld [vmem:[%s14557_s3 + $0x698] sm:$0xff] }
 0x1a9   : > { %4006 = vmatmul.mubr.f32.vlgmr.msra.gmra.mrb[54].mxu0 %v3852_v52  ;;  %v11112_v52 = vld [vmem:[%s14557_s3 + $0x5f0] sm:$0x3] }
 0x1aa   : > { %4076 = vmatmul.mubr.f32.vlgmr.msra.gmra.mrb[56].mxu1 %v3854_v59  ;;  %11965 = vmatpush3.bf16.xpose.msk.msra.mxu0 %vm12671_vm5, %v11963_v44  ;;  %v11098_v44 = vld [vmem:[%s14557_s3 + $0x598] sm:$0x3] }
 0x1ab   : > { %11969 = vmatpush1.bf16.xpose.msra.mxu1 %v11968_v54  ;;  %4252 = vmatprep.mubr.f32.mxu1 %v4168_v29  ;;  %v4173_v54 = vrot.slane %v13215_v2, 3  ;;  %v11992_v59 = vpack.c.bf16 %v11098_v44, %v11091_v42  ;;  %v4487_v29 = vrot.slane %v13147_v58, 4  ;;  %v11110_v44 = vld [vmem:[%s14557_s3 + $0x5e0] sm:$0xff] }
 0x1ac   : > { %11616 = vmatprep.mubr.msk.f32.mxu0 %vm12419_vm6, %v12415_v0  ;;  %11971 = vmatprep.subr.bf16.mxu0 %v11970_v7  ;;  %v4484_v7 = vrot.slane %v13145_v14, 4 }
 0x1ad   : > { %11975 = vmatprep.subr.bf16.mxu1 %v11974_v61  ;;  %v11998_v61 = vpack.c.bf16 %v11112_v52, %v11105_v46  ;;  %v11121_v46 = vld [vmem:[%s14557_s3 + $0x620] sm:$0xff]  ;;  %v11128_v52 = vld [vmem:[%s14557_s3 + $0x658] sm:$0x3] }
 0x1b1   : > { %11617 = vmatmul.mubr.msk.f32.vlgmr.msra.gmra.mrb[56].mxu0 %vm728_vm4, %v3856_v10  ;;  %v11995_v10 = vpack.c.bf16 %v11100_v5, %v11093_v3  ;;  %v11126_v3 = vld [vmem:[%s14557_s3 + $0x648] sm:$0xff]  ;;  %v11133_v5 = vld [vmem:[%s14557_s3 + $0x680] sm:$0x3] }
 0x1b2   : > { %4253 = vmatmul.mubr.f32.vlgmr.msra.gmra.mrb[58].mxu1 %v4167_v15  ;;  %11973 = vmatpush1.bf16.xpose.msra.mxu0 %v11972_v6  ;;  %v11111_v6 = vld [vmem:[%s14557_s3 + $0x5e8] sm:$0x3]  ;;  %v11116_v15 = vld [vmem:[%s14557_s3 + $0x610] sm:$0x3] }
 0x1b3   : > { %4322 = vmatprep.mubr.f32.mxu0 %v4170_v53  ;;  %11977 = vmatpush1.bf16.xpose.msra.mxu1 %v11976_v16  ;;  %v11109_v16 = vld [vmem:[%s14557_s3 + $0x5d8] sm:$0xff]  ;;  %v4486_v53 = vrot.slane %v13184_v28, 4 }
 0x1b4   : > { %4392 = vmatprep.mubr.f32.mxu1 %v4172_v19  ;;  %11978 = vmatprep.subr.bf16.mxu0 %v12418_v47  ;;  %v4488_v19 = vrot.slane %v13186_v35, 4  ;;  %v12006_v22 = vpack.c.bf16 %v11116_v15, %v11109_v16  ;;  %v12022_v16 = vpack.c.bf16 %v11133_v5, %v11126_v3  ;;  %v11123_v15 = vld [vmem:[%s14557_s3 + $0x630] sm:$0xff]  ;;  %v5122_v5 = vrot.slane %v13186_v35, 6 }
 0x1b5   : > { %11983 = vmatprep.subr.bf16.mxu1 %v11982_v18  ;;  %v12000_v18 = vpack.c.bf16 %v11111_v6, %v11104_v60  ;;  %v4803_v60 = vrot.slane %v13184_v28, 5  ;;  %v12016_v6 = vpack.c.bf16 %v11128_v52, %v11121_v46  ;;  %v11141_v46 = vld [vmem:[%s14557_s3 + $0x6a8] sm:$0xff]  ;;  %v11148_v52 = vld [vmem:[%s14557_s3 + $0x6e0] sm:$0x3] }
 0x1b9   : > { %4323 = vmatmul.mubr.f32.vlgmr.msra.gmra.mrb[58].mxu0 %v4169_v11  ;;  %v11129_v11 = vld [vmem:[%s14557_s3 + $0x660] sm:$0x3] }
 0x1ba   : > { %4393 = vmatmul.mubr.f32.vlgmr.msra.gmra.mrb[60].mxu1 %v4171_v36  ;;  %11981 = vmatpush3.bf16.xpose.msk.msra.mxu0 %vm12671_vm5, %v11979_v27  ;;  %v11115_v27 = vld [vmem:[%s14557_s3 + $0x608] sm:$0x3]  ;;  %v12014_v43 = vpack.c.bf16 %v11129_v11, %v11122_v55  ;;  %v5118_v55 = vrot.slane %v13145_v14, 6  ;;  %v5121_v11 = vrot.slane %v13147_v58, 6 }
 0x1bb   : > { %11985 = vmatpush1.bf16.xpose.msra.mxu1 %v11984_v32  ;;  %4569 = vmatprep.mubr.f32.mxu1 %v4485_v40  ;;  %v4490_v32 = vrot.slane %v13215_v2, 4  ;;  %v12008_v36 = vpack.c.bf16 %v11115_v27, %v11108_v25  ;;  %v4804_v40 = vrot.slane %v13147_v58, 5  ;;  %v11146_v25 = vld [vmem:[%s14557_s3 + $0x6d0] sm:$0x3]  ;;  %v4807_v27 = vrot.slane %v13215_v2, 5 }
 0x1bc   : > { %11623 = vmatprep.mubr.msk.f32.mxu0 %vm12419_vm6, %v12415_v0  ;;  %11987 = vmatprep.subr.bf16.mxu0 %v11986_v39  ;;  %v4801_v39 = vrot.slane %v13145_v14, 5 }
 0x1bd   : > { %11991 = vmatprep.subr.bf16.mxu1 %v11990_v41 }
 0x1c1   : > { %11624 = vmatmul.mubr.msk.f32.vlgmr.msra.gmra.mrb[60].mxu0 %vm728_vm4, %v4173_v54 }
 0x1c2   : > { %4570 = vmatmul.mubr.f32.vlgmr.msra.gmra.mrb[62].mxu1 %v4484_v7  ;;  %11989 = vmatpush1.bf16.xpose.msra.mxu0 %v11988_v45  ;;  %v11117_v45 = vld [vmem:[%s14557_s3 + $0x618] sm:$0x3]  ;;  %v11131_v7 = vld [vmem:[%s14557_s3 + $0x670] sm:$0x3] }
 0x1c3   : > { %4639 = vmatprep.mubr.f32.mxu0 %v4487_v29  ;;  %11993 = vmatpush1.bf16.xpose.msra.mxu1 %v11992_v59  ;;  %v11124_v59 = vld [vmem:[%s14557_s3 + $0x638] sm:$0xff] }
 0x1c4   : > { %4709 = vmatprep.mubr.f32.mxu1 %v4489_v1  ;;  %11994 = vmatprep.subr.bf16.mxu0 %v12418_v47  ;;  %v12011_v1 = vpack.c.bf16 %v11117_v45, %v11110_v44  ;;  %v12018_v9 = vpack.c.bf16 %v11131_v7, %v11124_v59  ;;  %v11143_v7 = vld [vmem:[%s14557_s3 + $0x6b8] sm:$0xff] }
 0x1c5   : > { %11999 = vmatprep.subr.bf16.mxu1 %v11998_v61 }
 0x1c9   : > { %4640 = vmatmul.mubr.f32.vlgmr.msra.gmra.mrb[62].mxu0 %v4486_v53  ;;  %v11130_v53 = vld [vmem:[%s14557_s3 + $0x668] sm:$0x3] }
 0x1ca   : > { %4710 = vmatmul.mubr.f32.vlgmr.msra.gmra.mrb[64].mxu1 %v4488_v19  ;;  %11997 = vmatpush3.bf16.xpose.msk.msra.mxu0 %vm12671_vm5, %v11995_v10  ;;  %v5119_v10 = vrot.slane %v13113_v48, 6  ;;  %v11132_v19 = vld [vmem:[%s14557_s3 + $0x678] sm:$0x3]  ;;  %v12020_v34 = vpack.c.bf16 %v11130_v53, %v11123_v15  ;;  %v11149_v15 = vld [vmem:[%s14557_s3 + $0x6e8] sm:$0x3] }
 0x1cb   : > { %12001 = vmatpush1.bf16.xpose.msra.mxu1 %v12000_v18  ;;  %4886 = vmatprep.mubr.f32.mxu1 %v4802_v20  ;;  %v11125_v18 = vld [vmem:[%s14557_s3 + $0x640] sm:$0xff] }
 0x1cc   : > { %11630 = vmatprep.mubr.msk.f32.mxu0 %vm12419_vm6, %v12415_v0  ;;  %12003 = vmatprep.subr.bf16.mxu0 %v12002_v12 }
 0x1cd   : > { %12007 = vmatprep.subr.bf16.mxu1 %v12006_v22 }
 0x1d0   : > { %v803_v41 = vpop.f32.mrb[14].mxu1 }
 0x1d1   : > { %11631 = vmatmul.mubr.msk.f32.vlgmr.msra.gmra.mrb[64].mxu0 %vm728_vm4, %v4490_v32  ;;  %v805_v42 = vpop.f32.mrb[15].mxu1  ;;  %v12030_v32 = vpack.c.bf16 %v11146_v25, %v11139_v24  ;;  %v5124_v25 = vrot.slane %v13215_v2, 6 }
 0x1d2   : > { %4887 = vmatmul.mubr.f32.vlgmr.msra.gmra.mrb[66].mxu1 %v4801_v39  ;;  %12005 = vmatpush1.bf16.xpose.msra.mxu0 %v12004_v31  ;;  %v12024_v31 = vpack.c.bf16 %v11132_v19, %v11125_v18  ;;  %v11127_v39 = vld [vmem:[%s14557_s3 + $0x650] sm:$0xff] }
 0x1d3   : > { %4956 = vmatprep.mubr.f32.mxu0 %v4804_v40  ;;  %12009 = vmatpush1.bf16.xpose.msra.mxu1 %v12008_v36  ;;  %v5123_v36 = vrot.slane %v13150_v38, 6  ;;  %v11134_v40 = vld [vmem:[%s14557_s3 + $0x688] sm:$0x3] }
 0x1d4   : > { %5026 = vmatprep.mubr.f32.mxu1 %v4806_v30  ;;  %12010 = vmatprep.subr.bf16.mxu0 %v12418_v47  ;;  %v11145_v30 = vld [vmem:[%s14557_s3 + $0x6c8] sm:$0x3]  ;;  %v12027_v59 = vpack.c.bf16 %v11134_v40, %v11127_v39  ;;  %v11151_v39 = vld [vmem:[%s14557_s3 + $0x6f8] sm:$0x3] }
 0x1d5   : > { %v873_v54 = vpop.f32.mrb[14].mxu0  ;;  %12015 = vmatprep.subr.bf16.mxu1 %v12014_v43  ;;  %v11138_v43 = vld [vmem:[%s14557_s3 + $0x690] sm:$0xff] }
 0x1d6   : > { %v874_v29 = vadd.f32 %v873_v54, %v803_v41  ;;  %v875_v61 = vpop.f32.mrb[15].mxu0  ;;  %v12032_v3 = vpack.c.bf16 %v11145_v30, %v11138_v43 }
 0x1d9   : > { %4957 = vmatmul.mubr.f32.vlgmr.msra.gmra.mrb[66].mxu0 %v4803_v60  ;;  %v12034_v60 = vpack.c.bf16 %v11148_v52, %v11141_v46 }
 0x1da   : > { %5027 = vmatmul.mubr.f32.vlgmr.msra.gmra.mrb[68].mxu1 %v4805_v8  ;;  %12013 = vmatpush3.bf16.xpose.msk.msra.mxu0 %vm12671_vm5, %v12011_v1  ;;  %v5120_v1 = vrot.slane %v13184_v28, 6 }
 0x1db   : > { %12017 = vmatpush1.bf16.xpose.msra.mxu1 %v12016_v6  ;;  %5203 = vmatprep.mubr.f32.mxu1 %v5119_v10  ;;  %v5436_v6 = vrot.slane %v13113_v48, 7  ;;  %v11147_v10 = vld [vmem:[%s14557_s3 + $0x6d8] sm:$0x3]  ;;  %v11142_v48 = vld [vmem:[%s14557_s3 + $0x6b0] sm:$0xff] }
 0x1dc   : > { %11637 = vmatprep.mubr.msk.f32.mxu0 %vm12419_vm6, %v12415_v0  ;;  %12019 = vmatprep.subr.bf16.mxu0 %v12018_v9  ;;  %v943_v12 = vpop.f32.mrb[16].mxu1  ;;  %v11140_v9 = vld [vmem:[%s14557_s3 + $0x6a0] sm:$0xff] }
 0x1dd   : > { %12023 = vmatprep.subr.bf16.mxu1 %v12022_v16  ;;  %v944_v20 = vadd.f32 %v943_v12, %v874_v29  ;;  %v945_v22 = vpop.f32.mrb[17].mxu1  ;;  %v11150_v29 = vld [vmem:[%s14557_s3 + $0x6f0] sm:$0x3] }
 0x1de   : > { %v12038_v8 = vpack.c.bf16 %v11150_v29, %v11143_v7  ;;  %v11156_v22 = vld [vmem:[%s14557_s3 + $0x708] sm:$0xff]  ;;  %v5439_v29 = vrot.slane %v13186_v35, 7 }
 0x1e1   : > { %11638 = vmatmul.mubr.msk.f32.vlgmr.msra.gmra.mrb[68].mxu0 %vm728_vm4, %v4807_v27  ;;  %v12040_v27 = vpack.c.bf16 %v11149_v15, %v11142_v48 }
 0x1e2   : > { %5204 = vmatmul.mubr.f32.vlgmr.msra.gmra.mrb[70].mxu1 %v5118_v55  ;;  %12021 = vmatpush1.bf16.xpose.msra.mxu0 %v12020_v34  ;;  %v11163_v34 = vld [vmem:[%s14557_s3 + $0x740] sm:$0x3]  ;;  %v5438_v55 = vrot.slane %v13147_v58, 7 }
 0x1e3   : > { %5273 = vmatprep.mubr.f32.mxu0 %v5121_v11  ;;  %12025 = vmatpush1.bf16.xpose.msra.mxu1 %v12024_v31  ;;  %v5435_v31 = vrot.slane %v13145_v14, 7  ;;  %v12046_v11 = vpack.c.bf16 %v11163_v34, %v11156_v22  ;;  %v13558_v14 = vpop.permute.xlu1 %256  ;;  %v11155_v58 = vld [vmem:[%s14557_s3 + $0x700] sm:$0xff] }
 0x1e4   : > { %5343 = vmatprep.mubr.f32.mxu1 %v5123_v36  ;;  %v1013_v41 = vpop.f32.mrb[16].mxu0  ;;  %12026 = vmatprep.subr.bf16.mxu0 %v12418_v47  ;;  %v1091_v44 = vpop.f32.mrb[18].mxu1  ;;  %v11144_v36 = vld [vmem:[%s14557_s3 + $0x6c0] sm:$0xff]  ;;  %v378_v35 = vadd.f32 %v12655_v13, %v13558_v14  ;;  %v558_v13 = vadd.f32 %v12968_v56, %v13558_v14 }
 0x1e5   : > { %v1014_v42 = vadd.f32 %v1013_v41, %v944_v20  ;;  %v11548_v45 = vpop.f32.mrb[17].mxu0  ;;  %12031 = vmatprep.subr.bf16.mxu1 %v12030_v32  ;;  %v1093_v54 = vpop.f32.mrb[19].mxu1  ;;  %v12036_v20 = vpack.c.bf16 %v11147_v10, %v11140_v9  ;;  %v5440_v32 = vrot.slane %v13150_v38, 7  ;;  %v11162_v38 = vld [vmem:[%s14557_s3 + $0x738] sm:$0x3]  ;;  %v380_v41 = vadd.f32 %v12665_v17, %v13558_v14 }
 0x1e6   : > { %v11165_v45 = vld [vmem:[%s14557_s3 + $0x750] sm:$0x3]  ;;  %v12043_v52 = vpack.c.bf16 %v11151_v39, %v11144_v36  ;;  %v11160_v54 = vld [vmem:[%s14557_s3 + $0x728] sm:$0xff]  ;;  %v11167_v17 = vld [vmem:[%s14557_s3 + $0x760] sm:$0x3]  ;;  %v12048_v7 = vpack.c.bf16 %v11162_v38, %v11155_v58  ;;  %v469_v9 = vadd.f32 %v12678_v26, %v13558_v14  ;;  %v5441_v26 = vrot.slane %v13215_v2, 7 }
 0x1e7   : > { %v1092_v61 = vadd.f32 %v1091_v44, %v1014_v42  ;;  %v11158_v44 = vld [vmem:[%s14557_s3 + $0x718] sm:$0xff]  ;;  %v13617_v22 = vmax.f32 %v378_v35, 0.0  ;;  %v11161_v2 = vld [vmem:[%s14557_s3 + $0x730] sm:$0xff] }
 0x1e8   : > { %v13619_v34 = vmax.f32 %v469_v9, 0.0 }
 0x1e9   : > { %5274 = vmatmul.mubr.f32.vlgmr.msra.gmra.mrb[70].mxu0 %v5120_v1  ;;  %v13585_v1 = vmax.f32 %v380_v41, 0.0  ;;  %v11177_v41 = vld [vmem:[%s14557_s3 + $0x798] sm:$0xff] }
 0x1ea   : > { %5344 = vmatmul.mubr.f32.vlgmr.msra.gmra.mrb[72].mxu1 %v5122_v5  ;;  %12029 = vmatpush3.bf16.xpose.msk.msra.mxu0 %vm12671_vm5, %v12027_v59  ;;  %v5437_v59 = vrot.slane %v13184_v28, 7  ;;  %v11157_v5 = vld [vmem:[%s14557_s3 + $0x710] sm:$0xff]  ;;  %v11164_v28 = vld [vmem:[%s14557_s3 + $0x748] sm:$0x3] }
 0x1eb   : > { %12033 = vmatpush1.bf16.xpose.msra.mxu1 %v12032_v3  ;;  %5520 = vmatprep.mubr.f32.mxu1 %v5436_v6  ;;  %v12054_v3 = vpack.c.bf16 %v11167_v17, %v11160_v54  ;;  %v11159_v6 = vld [vmem:[%s14557_s3 + $0x720] sm:$0xff]  ;;  %v6064_v54 = vrot.slane %v13585_v1, 1 }
 0x1ec   : > { %v1161_v16 = vpop.f32.mrb[18].mxu0  ;;  %11644 = vmatprep.mubr.msk.f32.mxu0 %vm12419_vm6, %v12415_v0  ;;  %12035 = vmatprep.subr.bf16.mxu0 %v12034_v60 }
 0x1ed   : > { %v1162_v53 = vadd.f32 %v1161_v16, %v1092_v61  ;;  %v1163_v18 = vpop.f32.mrb[19].mxu0  ;;  %v1231_v19 = vpop.f32.mrb[20].mxu1  ;;  %12039 = vmatprep.subr.bf16.mxu1 %v12038_v8  ;;  %v12050_v61 = vpack.c.bf16 %v11165_v45, %v11158_v44  ;;  %v11166_v8 = vld [vmem:[%s14557_s3 + $0x758] sm:$0x3] }
 0x1ee   : > { %v1233_v12 = vpop.f32.mrb[21].mxu1  ;;  %v11173_v18 = vld [vmem:[%s14557_s3 + $0x778] sm:$0xff] }
 0x1ef   : > { %v1232_v24 = vadd.f32 %v1231_v19, %v1162_v53  ;;  %v12052_v53 = vpack.c.bf16 %v11164_v28, %v11157_v5  ;;  %v11180_v19 = vld [vmem:[%s14557_s3 + $0x7b0] sm:$0x3] }
 0x1f0   : > { %v12062_v56 = vpack.c.bf16 %v11180_v19, %v11173_v18  ;;  %v11185_v18 = vld [vmem:[%s14557_s3 + $0x7d8] sm:$0x3] }
 0x1f1   : > { %11645 = vmatmul.mubr.msk.f32.vlgmr.msra.gmra.mrb[72].mxu0 %vm728_vm4, %v5124_v25  ;;  %v467_v25 = vadd.f32 %v12675_v23, %v13558_v14  ;;  %v11172_v23 = vld [vmem:[%s14557_s3 + $0x770] sm:$0xff] }
 0x1f2   : > { %5521 = vmatmul.mubr.f32.vlgmr.msra.gmra.mrb[74].mxu1 %v5435_v31  ;;  %12037 = vmatpush1.bf16.xpose.msra.mxu0 %v12036_v20  ;;  %v12056_v20 = vpack.c.bf16 %v11166_v8, %v11159_v6  ;;  %v556_v31 = vadd.f32 %v12959_v50, %v13558_v14  ;;  %v11175_v50 = vld [vmem:[%s14557_s3 + $0x788] sm:$0xff]  ;;  %v11197_v6 = vld [vmem:[%s14557_s3 + $0x820] sm:$0x3] }
 0x1f3   : > { %5590 = vmatprep.mubr.f32.mxu0 %v5438_v55  ;;  %12041 = vmatpush1.bf16.xpose.msra.mxu1 %v12040_v27  ;;  %v11168_v27 = vld [vmem:[%s14557_s3 + $0x768] sm:$0x3] }
 0x1f4   : > { %5660 = vmatprep.mubr.f32.mxu1 %v5440_v32  ;;  %v1301_v40 = vpop.f32.mrb[20].mxu0  ;;  %12042 = vmatprep.subr.bf16.mxu0 %v12418_v47  ;;  %v12059_v38 = vpack.c.bf16 %v11168_v27, %v11161_v2  ;;  %v11192_v2 = vld [vmem:[%s14557_s3 + $0x7f8] sm:$0xff]  ;;  %v11199_v27 = vld [vmem:[%s14557_s3 + $0x830] sm:$0x3] }
 0x1f5   : > { %v13569_v43 = vadd.f32 %v1301_v40, %v1232_v24  ;;  %v11555_v30 = vpop.f32.mrb[21].mxu0  ;;  %v1407_v42 = vpop.f32.mrb[22].mxu1  ;;  %12047 = vmatprep.subr.bf16.mxu1 %v12046_v11  ;;  %v13622_v24 = vmax.f32 %v558_v13, 0.0  ;;  %v11179_v11 = vld [vmem:[%s14557_s3 + $0x7a8] sm:$0x3] }
 0x1f6   : > { %v1409_v46 = vpop.f32.mrb[23].mxu1  ;;  %v11182_v40 = vld [vmem:[%s14557_s3 + $0x7c0] sm:$0x3]  ;;  %v11184_v30 = vld [vmem:[%s14557_s3 + $0x7d0] sm:$0x3]  ;;  %v12064_v45 = vpack.c.bf16 %v11179_v11, %v11172_v23  ;;  %v11194_v23 = vld [vmem:[%s14557_s3 + $0x808] sm:$0xff] }
 0x1f7   : > { %v13659_v46 = vmax.f32 %v556_v31, 0.0  ;;  %v12070_v17 = vpack.c.bf16 %v11184_v30, %v11177_v41  ;;  %v11201_v11 = vld [vmem:[%s14557_s3 + $0x840] sm:$0x3]  ;;  %v11191_v41 = vld [vmem:[%s14557_s3 + $0x7f0] sm:$0xff]  ;;  %v11198_v30 = vld [vmem:[%s14557_s3 + $0x828] sm:$0x3] }
 0x1f9   : > { %5591 = vmatmul.mubr.f32.vlgmr.msra.gmra.mrb[74].mxu0 %v5437_v59  ;;  %v643_v59 = vadd.f32 %v12981_v63, %v13558_v14  ;;  %v11183_v63 = vld [vmem:[%s14557_s3 + $0x7c8] sm:$0x3] }
 0x1fa   : > { %5661 = vmatmul.mubr.f32.vlgmr.msra.gmra.mrb[76].mxu1 %v5439_v29  ;;  %12045 = vmatpush3.bf16.xpose.msk.msra.mxu0 %vm12671_vm5, %v12043_v52  ;;  %v12066_v52 = vpack.c.bf16 %v11182_v40, %v11175_v50  ;;  %v6067_v50 = vrot.slane %v13659_v46, 1  ;;  %v12082_v40 = vpack.c.bf16 %v11199_v27, %v11192_v2 }
 0x1fb   : > { %12049 = vmatpush1.bf16.xpose.msra.mxu1 %v12048_v7  ;;  %5825 = vmatprep.mubr.f32.mxu1 %v13585_v1  ;;  %v11181_v7 = vld [vmem:[%s14557_s3 + $0x7b8] sm:$0x3]  ;;  %v13688_v8 = vmax.f32 %v643_v59, 0.0 }
 0x1fc   : > { %v1477_v60 = vpop.f32.mrb[22].mxu0  ;;  %11651 = vmatprep.mubr.msk.f32.mxu0 %vm12419_vm6, %v12415_v0  ;;  %12051 = vmatprep.subr.bf16.mxu0 %v12050_v61  ;;  %v11176_v61 = vld [vmem:[%s14557_s3 + $0x790] sm:$0xff] }
 0x1fd   : > { %v1478_v10 = vadd.f32 %v1477_v60, %v1407_v42  ;;  %v1479_v16 = vpop.f32.mrb[23].mxu0  ;;  %v1547_v48 = vpop.f32.mrb[24].mxu1  ;;  %12055 = vmatprep.subr.bf16.mxu1 %v12054_v3  ;;  %v13656_v42 = vmax.f32 %v467_v25, 0.0  ;;  %v11190_v60 = vld [vmem:[%s14557_s3 + $0x7e8] sm:$0xff] }
 0x1fe   : > { %v1549_v15 = vpop.f32.mrb[25].mxu1  ;;  %v6063_v16 = vrot.slane %v13617_v22, 1  ;;  %v12078_v13 = vpack.c.bf16 %v11197_v6, %v11190_v60  ;;  %v6385_v60 = vrot.slane %v13622_v24, 2  ;;  %v11195_v6 = vld [vmem:[%s14557_s3 + $0x810] sm:$0xff] }
 0x1ff   : > { %v1548_v12 = vadd.f32 %v1547_v48, %v1478_v10  ;;  %v12072_v10 = vpack.c.bf16 %v11183_v63, %v11176_v61  ;;  %v6066_v48 = vrot.slane %v13619_v34, 1  ;;  %v6068_v15 = vrot.slane %v13622_v24, 1  ;;  %v11214_v61 = vld [vmem:[%s14557_s3 + $0x890] sm:$0x3] }
 0x200   : > { %v6382_v2 = vrot.slane %v13656_v42, 2 }
 0x201   : > { %11652 = vmatmul.mubr.msk.f32.vlgmr.msra.gmra.mrb[76].mxu0 %vm728_vm4, %v5441_v26  ;;  %v11196_v26 = vld [vmem:[%s14557_s3 + $0x818] sm:$0x3] }
 0x202   : > { %5826 = vmatmul.mubr.f32.vlgmr.msra.gmra.mrb[78].mxu1 %v13617_v22  ;;  %12053 = vmatpush1.bf16.xpose.msra.mxu0 %v12052_v53  ;;  %v11178_v53 = vld [vmem:[%s14557_s3 + $0x7a0] sm:$0xff] }
 0x203   : > { %5895 = vmatprep.mubr.f32.mxu0 %v13619_v34  ;;  %12057 = vmatpush1.bf16.xpose.msra.mxu1 %v12056_v20 }
 0x204   : > { %5965 = vmatprep.mubr.f32.mxu1 %v13622_v24  ;;  %v1617_v55 = vpop.f32.mrb[24].mxu0  ;;  %12058 = vmatprep.subr.bf16.mxu0 %v12418_v47 }
 0x205   : > { %v1618_v32 = vadd.f32 %v1617_v55, %v1548_v12  ;;  %v11562_v36 = vpop.f32.mrb[25].mxu0  ;;  %v1724_v39 = vpop.f32.mrb[26].mxu1  ;;  %12063 = vmatprep.subr.bf16.mxu1 %v12062_v56  ;;  %v11189_v12 = vld [vmem:[%s14557_s3 + $0x7e0] sm:$0xff]  ;;  %v12075_v55 = vpack.c.bf16 %v11185_v18, %v11178_v53  ;;  %v11209_v18 = vld [vmem:[%s14557_s3 + $0x868] sm:$0xff] }
 0x206   : > { %v1726_v58 = vpop.f32.mrb[27].mxu1  ;;  %v6065_v36 = vrot.slane %v13656_v42, 1 }
 0x207   : > { %v1621_v44 = vadd.f32 %v1618_v32, %v13569_v43  ;;  %v11174_v43 = vld [vmem:[%s14557_s3 + $0x780] sm:$0xff]  ;;  %v6381_v58 = vrot.slane %v13585_v1, 2 }
 0x208   : > { %v12068_v35 = vpack.c.bf16 %v11181_v7, %v11174_v43  ;;  %v12084_v7 = vpack.c.bf16 %v11198_v30, %v11191_v41 }
 0x209   : > { %5896 = vmatmul.mubr.f32.vlgmr.msra.gmra.mrb[78].mxu0 %v13656_v42 }
 0x20a   : > { %5966 = vmatmul.mubr.f32.vlgmr.msra.gmra.mrb[80].mxu1 %v13659_v46  ;;  %12061 = vmatpush3.bf16.xpose.msk.msra.mxu0 %vm12671_vm5, %v12059_v38  ;;  %v12086_v38 = vpack.c.bf16 %v11201_v11, %v11194_v23  ;;  %v6698_v23 = vrot.slane %v13585_v1, 3 }
 0x20b   : > { %12065 = vmatpush1.bf16.xpose.msra.mxu1 %v12064_v45  ;;  %6148 = vmatprep.mubr.f32.mxu1 %v6064_v54  ;;  %v11193_v45 = vld [vmem:[%s14557_s3 + $0x800] sm:$0xff] }
 0x20c   : > { %v1794_v29 = vpop.f32.mrb[26].mxu0  ;;  %11658 = vmatprep.mubr.msk.f32.mxu0 %vm12419_vm6, %v12415_v0  ;;  %12067 = vmatprep.subr.bf16.mxu0 %v12066_v52  ;;  %v11200_v52 = vld [vmem:[%s14557_s3 + $0x838] sm:$0x3] }
 0x20d   : > { %v1795_v14 = vadd.f32 %v1794_v29, %v1724_v39  ;;  %v1796_v3 = vpop.f32.mrb[27].mxu0  ;;  %v1864_v5 = vpop.f32.mrb[28].mxu1  ;;  %12071 = vmatprep.subr.bf16.mxu1 %v12070_v17  ;;  %v12080_v39 = vpack.c.bf16 %v11196_v26, %v11189_v12  ;;  %v11207_v29 = vld [vmem:[%s14557_s3 + $0x858] sm:$0xff] }
 0x20e   : > { %v1866_v28 = vpop.f32.mrb[29].mxu1  ;;  %v12088_v3 = vpack.c.bf16 %v11200_v52, %v11193_v45  ;;  %v11224_v45 = vld [vmem:[%s14557_s3 + $0x8c8] sm:$0xff]  ;;  %v11231_v52 = vld [vmem:[%s14557_s3 + $0x900] sm:$0x3] }
 0x20f   : > { %v1865_v9 = vadd.f32 %v1864_v5, %v1795_v14  ;;  %v6069_v14 = vrot.slane %v13688_v8, 1  ;;  %v6380_v5 = vrot.slane %v13617_v22, 2  ;;  %v6383_v28 = vrot.slane %v13619_v34, 2 }
 0x211   : > { %11659 = vmatmul.mubr.msk.f32.vlgmr.msra.gmra.mrb[80].mxu0 %vm728_vm4, %v13688_v8 }
 0x212   : > { %6149 = vmatmul.mubr.f32.vlgmr.msra.gmra.mrb[82].mxu1 %v6063_v16  ;;  %12069 = vmatpush1.bf16.xpose.msra.mxu0 %v12068_v35  ;;  %v12094_v35 = vpack.c.bf16 %v11214_v61, %v11207_v29  ;;  %v11206_v16 = vld [vmem:[%s14557_s3 + $0x850] sm:$0xff]  ;;  %v12110_v29 = vpack.c.bf16 %v11231_v52, %v11224_v45  ;;  %v6702_v61 = vrot.slane %v13622_v24, 3  ;;  %v7019_v52 = vrot.slane %v13622_v24, 4 }
 0x213   : > { %6218 = vmatprep.mubr.f32.mxu0 %v6066_v48  ;;  %12073 = vmatpush1.bf16.xpose.msra.mxu1 %v12072_v10  ;;  %v11213_v48 = vld [vmem:[%s14557_s3 + $0x888] sm:$0x3] }
 0x214   : > { %6288 = vmatprep.mubr.f32.mxu1 %v6068_v15  ;;  %v1934_v19 = vpop.f32.mrb[28].mxu0  ;;  %12074 = vmatprep.subr.bf16.mxu0 %v12418_v47  ;;  %v12096_v27 = vpack.c.bf16 %v11213_v48, %v11206_v16 }
 0x215   : > { %v1935_v20 = vadd.f32 %v1934_v19, %v1865_v9  ;;  %v11569_v56 = vpop.f32.mrb[29].mxu0  ;;  %v2041_v25 = vpop.f32.mrb[30].mxu1  ;;  %12079 = vmatprep.subr.bf16.mxu1 %v12078_v13  ;;  %v11202_v9 = vld [vmem:[%s14557_s3 + $0x848] sm:$0x3]  ;;  %v11216_v19 = vld [vmem:[%s14557_s3 + $0x8a0] sm:$0x3] }
 0x216   : > { %v2043_v31 = vpop.f32.mrb[31].mxu1  ;;  %v12091_v26 = vpack.c.bf16 %v11202_v9, %v11195_v6  ;;  %v11218_v56 = vld [vmem:[%s14557_s3 + $0x8b0] sm:$0x3]  ;;  %v11226_v9 = vld [vmem:[%s14557_s3 + $0x8d8] sm:$0xff] }
 0x217   : > { %v1938_v32 = vadd.f32 %v1935_v20, %v1621_v44  ;;  %v11211_v20 = vld [vmem:[%s14557_s3 + $0x878] sm:$0xff]  ;;  %v6384_v31 = vrot.slane %v13659_v46, 2 }
 0x218   : > { %v12102_v11 = vpack.c.bf16 %v11218_v56, %v11211_v20  ;;  %v7015_v20 = vrot.slane %v13585_v1, 4 }
 0x219   : > { %6219 = vmatmul.mubr.f32.vlgmr.msra.gmra.mrb[82].mxu0 %v6065_v36  ;;  %v11215_v36 = vld [vmem:[%s14557_s3 + $0x898] sm:$0x3] }
 0x21a   : > { %6289 = vmatmul.mubr.f32.vlgmr.msra.gmra.mrb[84].mxu1 %v6067_v50  ;;  %12077 = vmatpush3.bf16.xpose.msk.msra.mxu0 %vm12671_vm5, %v12075_v55  ;;  %v12098_v55 = vpack.c.bf16 %v11216_v19, %v11209_v18  ;;  %v11210_v50 = vld [vmem:[%s14557_s3 + $0x870] sm:$0xff]  ;;  %v6699_v18 = vrot.slane %v13656_v42, 3 }
 0x21b   : > { %12081 = vmatpush1.bf16.xpose.msra.mxu1 %v12080_v39  ;;  %6465 = vmatprep.mubr.f32.mxu1 %v6381_v58 }
 0x21c   : > { %v2111_v44 = vpop.f32.mrb[30].mxu0  ;;  %11665 = vmatprep.mubr.msk.f32.mxu0 %vm12419_vm6, %v12415_v0  ;;  %12083 = vmatprep.subr.bf16.mxu0 %v12082_v40  ;;  %v11217_v40 = vld [vmem:[%s14557_s3 + $0x8a8] sm:$0x3] }
 0x21d   : > { %v2112_v54 = vadd.f32 %v2111_v44, %v2041_v25  ;;  %v2113_v17 = vpop.f32.mrb[31].mxu0  ;;  %v2181_v59 = vpop.f32.mrb[32].mxu1  ;;  %12087 = vmatprep.subr.bf16.mxu1 %v12086_v38 }
 0x21e   : > { %v2183_v43 = vpop.f32.mrb[33].mxu1  ;;  %v6386_v17 = vrot.slane %v13688_v8, 2 }
 0x21f   : > { %v2182_v63 = vadd.f32 %v2181_v59, %v2112_v54  ;;  %v12104_v59 = vpack.c.bf16 %v11217_v40, %v11210_v50  ;;  %v6697_v43 = vrot.slane %v13617_v22, 3  ;;  %v11241_v50 = vld [vmem:[%s14557_s3 + $0x938] sm:$0xff]  ;;  %v11248_v40 = vld [vmem:[%s14557_s3 + $0x970] sm:$0x3] }
 0x220   : > { %v12126_v45 = vpack.c.bf16 %v11248_v40, %v11241_v50  ;;  %v7336_v40 = vrot.slane %v13622_v24, 5 }
 0x221   : > { %11666 = vmatmul.mubr.msk.f32.vlgmr.msra.gmra.mrb[84].mxu0 %vm728_vm4, %v6069_v14  ;;  %v11219_v14 = vld [vmem:[%s14557_s3 + $0x8b8] sm:$0x3] }
 0x222   : > { %6466 = vmatmul.mubr.f32.vlgmr.msra.gmra.mrb[86].mxu1 %v6380_v5  ;;  %12085 = vmatpush1.bf16.xpose.msra.mxu0 %v12084_v7  ;;  %v6700_v7 = vrot.slane %v13619_v34, 3  ;;  %v11223_v5 = vld [vmem:[%s14557_s3 + $0x8c0] sm:$0xff] }
 0x223   : > { %6535 = vmatprep.mubr.f32.mxu0 %v6383_v28  ;;  %12089 = vmatpush1.bf16.xpose.msra.mxu1 %v12088_v3  ;;  %v11230_v28 = vld [vmem:[%s14557_s3 + $0x8f8] sm:$0x3] }
 0x224   : > { %6605 = vmatprep.mubr.f32.mxu1 %v6385_v60  ;;  %v2251_v10 = vpop.f32.mrb[32].mxu0  ;;  %12090 = vmatprep.subr.bf16.mxu0 %v12418_v47  ;;  %v12112_v19 = vpack.c.bf16 %v11230_v28, %v11223_v5 }
 0x225   : > { %v2252_v13 = vadd.f32 %v2251_v10, %v2182_v63  ;;  %v11576_v15 = vpop.f32.mrb[33].mxu0  ;;  %v2358_v53 = vpop.f32.mrb[34].mxu1  ;;  %12095 = vmatprep.subr.bf16.mxu1 %v12094_v35  ;;  %v11212_v63 = vld [vmem:[%s14557_s3 + $0x880] sm:$0xff]  ;;  %v11233_v10 = vld [vmem:[%s14557_s3 + $0x910] sm:$0x3] }
 0x226   : > { %v2360_v12 = vpop.f32.mrb[35].mxu1  ;;  %v12107_v48 = vpack.c.bf16 %v11219_v14, %v11212_v63  ;;  %v11235_v15 = vld [vmem:[%s14557_s3 + $0x920] sm:$0x3]  ;;  %v11243_v14 = vld [vmem:[%s14557_s3 + $0x948] sm:$0xff] }
 0x227   : > { %v2255_v25 = vadd.f32 %v2252_v13, %v1938_v32  ;;  %v11208_v32 = vld [vmem:[%s14557_s3 + $0x860] sm:$0xff]  ;;  %v11228_v13 = vld [vmem:[%s14557_s3 + $0x8e8] sm:$0xff]  ;;  %v6701_v12 = vrot.slane %v13659_v46, 3 }
 0x228   : > { %v12100_v44 = vpack.c.bf16 %v11215_v36, %v11208_v32  ;;  %v12118_v56 = vpack.c.bf16 %v11235_v15, %v11228_v13  ;;  %v7332_v13 = vrot.slane %v13585_v1, 5 }
 0x229   : > { %6536 = vmatmul.mubr.f32.vlgmr.msra.gmra.mrb[86].mxu0 %v6382_v2  ;;  %v11232_v2 = vld [vmem:[%s14557_s3 + $0x908] sm:$0x3] }
 0x22a   : > { %6606 = vmatmul.mubr.f32.vlgmr.msra.gmra.mrb[88].mxu1 %v6384_v31  ;;  %12093 = vmatpush3.bf16.xpose.msk.msra.mxu0 %vm12671_vm5, %v12091_v26  ;;  %v12114_v26 = vpack.c.bf16 %v11233_v10, %v11226_v9  ;;  %v11227_v31 = vld [vmem:[%s14557_s3 + $0x8e0] sm:$0xff]  ;;  %v7016_v9 = vrot.slane %v13656_v42, 4 }
 0x22b   : > { %12097 = vmatpush1.bf16.xpose.msra.mxu1 %v12096_v27  ;;  %6782 = vmatprep.mubr.f32.mxu1 %v6698_v23 }
 0x22c   : > { %v2428_v39 = vpop.f32.mrb[34].mxu0  ;;  %11672 = vmatprep.mubr.msk.f32.mxu0 %vm12419_vm6, %v12415_v0  ;;  %12099 = vmatprep.subr.bf16.mxu0 %v12098_v55  ;;  %v11234_v55 = vld [vmem:[%s14557_s3 + $0x918] sm:$0x3] }
 0x22d   : > { %v2429_v58 = vadd.f32 %v2428_v39, %v2358_v53  ;;  %v2430_v38 = vpop.f32.mrb[35].mxu0  ;;  %v2498_v41 = vpop.f32.mrb[36].mxu1  ;;  %12103 = vmatprep.subr.bf16.mxu1 %v12102_v11 }
 0x22e   : > { %v2500_v30 = vpop.f32.mrb[37].mxu1  ;;  %v6703_v38 = vrot.slane %v13688_v8, 3 }
 0x22f   : > { %v2499_v54 = vadd.f32 %v2498_v41, %v2429_v58  ;;  %v12120_v41 = vpack.c.bf16 %v11234_v55, %v11227_v31  ;;  %v7014_v30 = vrot.slane %v13617_v22, 4  ;;  %v11258_v31 = vld [vmem:[%s14557_s3 + $0x9a8] sm:$0xff]  ;;  %v11265_v55 = vld [vmem:[%s14557_s3 + $0x9e0] sm:$0x3] }
 0x230   : > { %v12142_v50 = vpack.c.bf16 %v11265_v55, %v11258_v31  ;;  %v7653_v55 = vrot.slane %v13622_v24, 6 }
 0x231   : > { %11673 = vmatmul.mubr.msk.f32.vlgmr.msra.gmra.mrb[88].mxu0 %vm728_vm4, %v6386_v17  ;;  %v11236_v17 = vld [vmem:[%s14557_s3 + $0x928] sm:$0x3] }
 0x232   : > { %6783 = vmatmul.mubr.f32.vlgmr.msra.gmra.mrb[90].mxu1 %v6697_v43  ;;  %12101 = vmatpush1.bf16.xpose.msra.mxu0 %v12100_v44  ;;  %v7017_v44 = vrot.slane %v13619_v34, 4  ;;  %v11240_v43 = vld [vmem:[%s14557_s3 + $0x930] sm:$0xff] }
 0x233   : > { %6852 = vmatprep.mubr.f32.mxu0 %v6700_v7  ;;  %12105 = vmatpush1.bf16.xpose.msra.mxu1 %v12104_v59  ;;  %v11247_v7 = vld [vmem:[%s14557_s3 + $0x968] sm:$0x3] }
 0x234   : > { %6922 = vmatprep.mubr.f32.mxu1 %v6702_v61  ;;  %v2568_v3 = vpop.f32.mrb[36].mxu0  ;;  %12106 = vmatprep.subr.bf16.mxu0 %v12418_v47  ;;  %v12128_v10 = vpack.c.bf16 %v11247_v7, %v11240_v43 }
 0x235   : > { %v2569_v35 = vadd.f32 %v2568_v3, %v2499_v54  ;;  %v11583_v60 = vpop.f32.mrb[37].mxu0  ;;  %v2675_v6 = vpop.f32.mrb[38].mxu1  ;;  %12111 = vmatprep.subr.bf16.mxu1 %v12110_v29  ;;  %v11229_v54 = vld [vmem:[%s14557_s3 + $0x8f0] sm:$0xff]  ;;  %v11250_v3 = vld [vmem:[%s14557_s3 + $0x980] sm:$0x3] }
 0x236   : > { %v2677_v16 = vpop.f32.mrb[39].mxu1  ;;  %v12123_v28 = vpack.c.bf16 %v11236_v17, %v11229_v54  ;;  %v11252_v60 = vld [vmem:[%s14557_s3 + $0x990] sm:$0x3]  ;;  %v11260_v17 = vld [vmem:[%s14557_s3 + $0x9b8] sm:$0xff] }
 0x237   : > { %v2572_v53 = vadd.f32 %v2569_v35, %v2255_v25  ;;  %v11225_v25 = vld [vmem:[%s14557_s3 + $0x8d0] sm:$0xff]  ;;  %v11245_v35 = vld [vmem:[%s14557_s3 + $0x958] sm:$0xff]  ;;  %v7018_v16 = vrot.slane %v13659_v46, 4 }
 0x238   : > { %v12116_v39 = vpack.c.bf16 %v11232_v2, %v11225_v25  ;;  %v12134_v15 = vpack.c.bf16 %v11252_v60, %v11245_v35  ;;  %v7649_v35 = vrot.slane %v13585_v1, 6 }
 0x239   : > { %6853 = vmatmul.mubr.f32.vlgmr.msra.gmra.mrb[90].mxu0 %v6699_v18  ;;  %v11249_v18 = vld [vmem:[%s14557_s3 + $0x978] sm:$0x3] }
 0x23a   : > { %6923 = vmatmul.mubr.f32.vlgmr.msra.gmra.mrb[92].mxu1 %v6701_v12  ;;  %12109 = vmatpush3.bf16.xpose.msk.msra.mxu0 %vm12671_vm5, %v12107_v48  ;;  %v12130_v48 = vpack.c.bf16 %v11250_v3, %v11243_v14  ;;  %v11244_v12 = vld [vmem:[%s14557_s3 + $0x950] sm:$0xff]  ;;  %v7333_v14 = vrot.slane %v13656_v42, 5 }
 0x23b   : > { %12113 = vmatpush1.bf16.xpose.msra.mxu1 %v12112_v19  ;;  %7099 = vmatprep.mubr.f32.mxu1 %v7015_v20 }
 0x23c   : > { %v2745_v27 = vpop.f32.mrb[38].mxu0  ;;  %11679 = vmatprep.mubr.msk.f32.mxu0 %vm12419_vm6, %v12415_v0  ;;  %12115 = vmatprep.subr.bf16.mxu0 %v12114_v26  ;;  %v11251_v26 = vld [vmem:[%s14557_s3 + $0x988] sm:$0x3] }
 0x23d   : > { %v2746_v23 = vadd.f32 %v2745_v27, %v2675_v6  ;;  %v2747_v11 = vpop.f32.mrb[39].mxu0  ;;  %v2815_v32 = vpop.f32.mrb[40].mxu1  ;;  %12119 = vmatprep.subr.bf16.mxu1 %v12118_v56 }
 0x23e   : > { %v2817_v36 = vpop.f32.mrb[41].mxu1  ;;  %v7020_v11 = vrot.slane %v13688_v8, 4 }
 0x23f   : > { %v2816_v58 = vadd.f32 %v2815_v32, %v2746_v23  ;;  %v12136_v32 = vpack.c.bf16 %v11251_v26, %v11244_v12  ;;  %v7331_v36 = vrot.slane %v13617_v22, 5  ;;  %v11275_v12 = vld [vmem:[%s14557_s3 + $0xa18] sm:$0xff]  ;;  %v11282_v26 = vld [vmem:[%s14557_s3 + $0xa50] sm:$0x3] }
 0x240   : > { %v12158_v31 = vpack.c.bf16 %v11282_v26, %v11275_v12  ;;  %v14024_v12 = vpop.permute.xlu1 %261  ;;  %v7970_v26 = vrot.slane %v13622_v24, 7  ;;  %v11298_v24 = vld [vmem:[%s14557_s3 + $0xab8] sm:$0x3] }
 0x241   : > { %11680 = vmatmul.mubr.msk.f32.vlgmr.msra.gmra.mrb[92].mxu0 %vm728_vm4, %v6703_v38  ;;  %v11253_v38 = vld [vmem:[%s14557_s3 + $0x998] sm:$0x3] }
 0x242   : > { %7100 = vmatmul.mubr.f32.vlgmr.msra.gmra.mrb[94].mxu1 %v7014_v30  ;;  %12117 = vmatpush1.bf16.xpose.msra.mxu0 %v12116_v39  ;;  %v7334_v39 = vrot.slane %v13619_v34, 5  ;;  %v11257_v30 = vld [vmem:[%s14557_s3 + $0x9a0] sm:$0xff] }
 0x243   : > { %7169 = vmatprep.mubr.f32.mxu0 %v7017_v44  ;;  %12121 = vmatpush1.bf16.xpose.msra.mxu1 %v12120_v41  ;;  %v11264_v44 = vld [vmem:[%s14557_s3 + $0x9d8] sm:$0x3] }
 0x244   : > { %7239 = vmatprep.mubr.f32.mxu1 %v7019_v52  ;;  %v2885_v59 = vpop.f32.mrb[40].mxu0  ;;  %12122 = vmatprep.subr.bf16.mxu0 %v12418_v47  ;;  %v12144_v3 = vpack.c.bf16 %v11264_v44, %v11257_v30 }
 0x245   : > { %v2886_v29 = vadd.f32 %v2885_v59, %v2816_v58  ;;  %v11590_v61 = vpop.f32.mrb[41].mxu0  ;;  %v2992_v63 = vpop.f32.mrb[42].mxu1  ;;  %12127 = vmatprep.subr.bf16.mxu1 %v12126_v45  ;;  %v11246_v58 = vld [vmem:[%s14557_s3 + $0x960] sm:$0xff]  ;;  %v11267_v59 = vld [vmem:[%s14557_s3 + $0x9f0] sm:$0x3] }
 0x246   : > { %v2994_v5 = vpop.f32.mrb[43].mxu1  ;;  %v12139_v7 = vpack.c.bf16 %v11253_v38, %v11246_v58  ;;  %v11269_v61 = vld [vmem:[%s14557_s3 + $0xa00] sm:$0x3]  ;;  %v11277_v38 = vld [vmem:[%s14557_s3 + $0xa28] sm:$0xff] }
 0x247   : > { %v2889_v6 = vadd.f32 %v2886_v29, %v2572_v53  ;;  %v11242_v53 = vld [vmem:[%s14557_s3 + $0x940] sm:$0xff]  ;;  %v11262_v29 = vld [vmem:[%s14557_s3 + $0x9c8] sm:$0xff]  ;;  %v7335_v5 = vrot.slane %v13659_v46, 5 }
 0x248   : > { %v12132_v27 = vpack.c.bf16 %v11249_v18, %v11242_v53  ;;  %v12150_v60 = vpack.c.bf16 %v11269_v61, %v11262_v29  ;;  %v7966_v29 = vrot.slane %v13585_v1, 7  ;;  %v11278_v1 = vld [vmem:[%s14557_s3 + $0xa30] sm:$0xff] }
 0x249   : > { %7170 = vmatmul.mubr.f32.vlgmr.msra.gmra.mrb[94].mxu0 %v7016_v9  ;;  %v11266_v9 = vld [vmem:[%s14557_s3 + $0x9e8] sm:$0x3] }
 0x24a   : > { %7240 = vmatmul.mubr.f32.vlgmr.msra.gmra.mrb[96].mxu1 %v7018_v16  ;;  %12125 = vmatpush3.bf16.xpose.msk.msra.mxu0 %vm12671_vm5, %v12123_v28  ;;  %v12146_v28 = vpack.c.bf16 %v11267_v59, %v11260_v17  ;;  %v11261_v16 = vld [vmem:[%s14557_s3 + $0x9c0] sm:$0xff]  ;;  %v7650_v17 = vrot.slane %v13656_v42, 6 }
 0x24b   : > { %12129 = vmatpush1.bf16.xpose.msra.mxu1 %v12128_v10  ;;  %7416 = vmatprep.mubr.f32.mxu1 %v7332_v13 }
 0x24c   : > { %v3062_v19 = vpop.f32.mrb[42].mxu0  ;;  %11686 = vmatprep.mubr.msk.f32.mxu0 %vm12419_vm6, %v12415_v0  ;;  %12131 = vmatprep.subr.bf16.mxu0 %v12130_v48  ;;  %v11268_v48 = vld [vmem:[%s14557_s3 + $0x9f8] sm:$0x3] }
 0x24d   : > { %v3063_v20 = vadd.f32 %v3062_v19, %v2992_v63  ;;  %v3064_v56 = vpop.f32.mrb[43].mxu0  ;;  %v3132_v25 = vpop.f32.mrb[44].mxu1  ;;  %12135 = vmatprep.subr.bf16.mxu1 %v12134_v15 }
 0x24e   : > { %v3134_v2 = vpop.f32.mrb[45].mxu1  ;;  %v7337_v56 = vrot.slane %v13688_v8, 5 }
 0x24f   : > { %v3133_v23 = vadd.f32 %v3132_v25, %v3063_v20  ;;  %v12152_v25 = vpack.c.bf16 %v11268_v48, %v11261_v16  ;;  %v7648_v2 = vrot.slane %v13617_v22, 6  ;;  %v11299_v16 = vld [vmem:[%s14557_s3 + $0xac0] sm:$0x3] }
 0x251   : > { %11687 = vmatmul.mubr.msk.f32.vlgmr.msra.gmra.mrb[96].mxu0 %vm728_vm4, %v7020_v11  ;;  %v11270_v11 = vld [vmem:[%s14557_s3 + $0xa08] sm:$0x3] }
 0x252   : > { %7417 = vmatmul.mubr.f32.vlgmr.msra.gmra.mrb[98].mxu1 %v7331_v36  ;;  %12133 = vmatpush1.bf16.xpose.msra.mxu0 %v12132_v27  ;;  %v7651_v27 = vrot.slane %v13619_v34, 6  ;;  %v11274_v36 = vld [vmem:[%s14557_s3 + $0xa10] sm:$0xff] }
 0x253   : > { %7486 = vmatprep.mubr.f32.mxu0 %v7334_v39  ;;  %12137 = vmatpush1.bf16.xpose.msra.mxu1 %v12136_v32  ;;  %v11281_v39 = vld [vmem:[%s14557_s3 + $0xa48] sm:$0x3] }
 0x254   : > { %7556 = vmatprep.mubr.f32.mxu1 %v7336_v40  ;;  %v3202_v41 = vpop.f32.mrb[44].mxu0  ;;  %12138 = vmatprep.subr.bf16.mxu0 %v12418_v47  ;;  %v12160_v59 = vpack.c.bf16 %v11281_v39, %v11274_v36  ;;  %v11296_v36 = vld [vmem:[%s14557_s3 + $0xaa8] sm:$0xff] }
 0x255   : > { %v3203_v45 = vadd.f32 %v3202_v41, %v3133_v23  ;;  %v11597_v52 = vpop.f32.mrb[45].mxu0  ;;  %v3297_v54 = vpop.f32.mrb[46].mxu1  ;;  %12143 = vmatprep.subr.bf16.mxu1 %v12142_v50  ;;  %v11263_v23 = vld [vmem:[%s14557_s3 + $0x9d0] sm:$0xff]  ;;  %v11284_v41 = vld [vmem:[%s14557_s3 + $0xa60] sm:$0x3] }
 0x256   : > { %v3299_v43 = vpop.f32.mrb[47].mxu1  ;;  %v12155_v44 = vpack.c.bf16 %v11270_v11, %v11263_v23  ;;  %v11286_v52 = vld [vmem:[%s14557_s3 + $0xa70] sm:$0x3] }
 0x257   : > { %v3206_v63 = vadd.f32 %v3203_v45, %v2889_v6  ;;  %v11259_v6 = vld [vmem:[%s14557_s3 + $0x9b0] sm:$0xff]  ;;  %v11279_v45 = vld [vmem:[%s14557_s3 + $0xa38] sm:$0xff]  ;;  %v7652_v43 = vrot.slane %v13659_v46, 6 }
 0x258   : > { %v12148_v19 = vpack.c.bf16 %v11266_v9, %v11259_v6  ;;  %v12166_v61 = vpack.c.bf16 %v11286_v52, %v11279_v45  ;;  %v11301_v23 = vld [vmem:[%s14557_s3 + $0xad0] sm:$0x3]  ;;  %v11295_v52 = vld [vmem:[%s14557_s3 + $0xaa0] sm:$0xff] }
 0x259   : > { %7487 = vmatmul.mubr.f32.vlgmr.msra.gmra.mrb[98].mxu0 %v7333_v14  ;;  %v11283_v14 = vld [vmem:[%s14557_s3 + $0xa58] sm:$0x3] }
 0x25a   : > { %7557 = vmatmul.mubr.f32.vlgmr.msra.gmra.mrb[100].mxu1 %v7335_v5  ;;  %12141 = vmatpush3.bf16.xpose.msk.msra.mxu0 %vm12671_vm5, %v12139_v7  ;;  %v12162_v7 = vpack.c.bf16 %v11284_v41, %v11277_v38  ;;  %v11285_v5 = vld [vmem:[%s14557_s3 + $0xa68] sm:$0x3] }
 0x25b   : > { %12145 = vmatpush1.bf16.xpose.msra.mxu1 %v12144_v3  ;;  %7733 = vmatprep.mubr.f32.mxu1 %v7649_v35 }
 0x25c   : > { %v3367_v10 = vpop.f32.mrb[46].mxu0  ;;  %11693 = vmatprep.mubr.msk.f32.mxu0 %vm12419_vm6, %v12415_v0  ;;  %12147 = vmatprep.subr.bf16.mxu0 %v12146_v28 }
 0x25d   : > { %v3368_v13 = vadd.f32 %v3367_v10, %v3297_v54  ;;  %v3369_v15 = vpop.f32.mrb[47].mxu0  ;;  %v3437_v53 = vpop.f32.mrb[48].mxu1  ;;  %12151 = vmatprep.subr.bf16.mxu1 %v12150_v60  ;;  %v11292_v10 = vld [vmem:[%s14557_s3 + $0xa88] sm:$0xff] }
 0x25e   : > { %v3439_v18 = vpop.f32.mrb[49].mxu1  ;;  %v12168_v15 = vpack.c.bf16 %v11285_v5, %v11278_v1 }
 0x25f   : > { %v3438_v20 = vadd.f32 %v3437_v53, %v3368_v13  ;;  %v7654_v13 = vrot.slane %v13688_v8, 6  ;;  %v7965_v53 = vrot.slane %v13617_v22, 7  ;;  %v7968_v18 = vrot.slane %v13619_v34, 7  ;;  %v11287_v22 = vld [vmem:[%s14557_s3 + $0xa78] sm:$0x3]  ;;  %v11291_v34 = vld [vmem:[%s14557_s3 + $0xa80] sm:$0xff] }
 0x261   : > { %11694 = vmatmul.mubr.msk.f32.vlgmr.msra.gmra.mrb[100].mxu0 %vm728_vm4, %v7337_v56 }
 0x262   : > { %7734 = vmatmul.mubr.f32.vlgmr.msra.gmra.mrb[102].mxu1 %v7648_v2  ;;  %12149 = vmatpush1.bf16.xpose.msra.mxu0 %v12148_v19  ;;  %v12174_v19 = vpack.c.bf16 %v11299_v16, %v11292_v10  ;;  %v11315_v16 = vld [vmem:[%s14557_s3 + $0xb28] sm:$0x3] }
 0x263   : > { %7803 = vmatprep.mubr.f32.mxu0 %v7651_v27  ;;  %12153 = vmatpush1.bf16.xpose.msra.mxu1 %v12152_v25  ;;  %v386_v25 = vadd.f32 %v12615_v51, %v14024_v12  ;;  %v11303_v51 = vld [vmem:[%s14557_s3 + $0xae0] sm:$0x3] }
 0x264   : > { %7873 = vmatprep.mubr.f32.mxu1 %v7653_v55  ;;  %v3507_v32 = vpop.f32.mrb[48].mxu0  ;;  %12154 = vmatprep.subr.bf16.mxu0 %v12418_v47  ;;  %v11294_v55 = vld [vmem:[%s14557_s3 + $0xa98] sm:$0xff] }
 0x265   : > { %v3508_v50 = vadd.f32 %v3507_v32, %v3438_v20  ;;  %v11604_v40 = vpop.f32.mrb[49].mxu0  ;;  %v3620_v58 = vpop.f32.mrb[50].mxu1  ;;  %12159 = vmatprep.subr.bf16.mxu1 %v12158_v31  ;;  %v11280_v20 = vld [vmem:[%s14557_s3 + $0xa40] sm:$0xff]  ;;  %v12178_v38 = vpack.c.bf16 %v11301_v23, %v11294_v55  ;;  %v14056_v41 = vmax.f32 %v386_v25, 0.0  ;;  %v11317_v23 = vld [vmem:[%s14557_s3 + $0xb38] sm:$0x3] }
 0x266   : > { %v3622_v30 = vpop.f32.mrb[51].mxu1  ;;  %v12171_v32 = vpack.c.bf16 %v11287_v22, %v11280_v20  ;;  %v12176_v40 = vpack.c.bf16 %v11298_v24, %v11291_v34  ;;  %v11320_v20 = vld [vmem:[%s14557_s3 + $0xb50] sm:$0x3]  ;;  %v11310_v55 = vld [vmem:[%s14557_s3 + $0xb00] sm:$0xff] }
 0x267   : > { %v3511_v54 = vadd.f32 %v3508_v50, %v3206_v63  ;;  %v11276_v63 = vld [vmem:[%s14557_s3 + $0xa20] sm:$0xff]  ;;  %v7967_v50 = vrot.slane %v13656_v42, 7  ;;  %v12182_v30 = vpack.c.bf16 %v11303_v51, %v11296_v36  ;;  %v11300_v42 = vld [vmem:[%s14557_s3 + $0xac8] sm:$0x3] }
 0x268   : > { %v12164_v9 = vpack.c.bf16 %v11283_v14, %v11276_v63  ;;  %v11309_v63 = vld [vmem:[%s14557_s3 + $0xaf8] sm:$0xff]  ;;  %v11316_v14 = vld [vmem:[%s14557_s3 + $0xb30] sm:$0x3] }
 0x269   : > { %7804 = vmatmul.mubr.f32.vlgmr.msra.gmra.mrb[102].mxu0 %v7650_v17  ;;  %v475_v17 = vadd.f32 %v12705_v37, %v14024_v12  ;;  %v7971_v37 = vrot.slane %v13688_v8, 7  ;;  %v11297_v8 = vld [vmem:[%s14557_s3 + $0xab0] sm:$0xff] }
 0x26a   : > { %7874 = vmatmul.mubr.f32.vlgmr.msra.gmra.mrb[104].mxu1 %v7652_v43  ;;  %12157 = vmatpush3.bf16.xpose.msk.msra.mxu0 %vm12671_vm5, %v12155_v44  ;;  %v11293_v44 = vld [vmem:[%s14557_s3 + $0xa90] sm:$0xff] }
 0x26b   : > { %12161 = vmatpush1.bf16.xpose.msra.mxu1 %v12160_v59  ;;  %8050 = vmatprep.mubr.f32.mxu1 %v7966_v29 }
 0x26c   : > { %v3690_v3 = vpop.f32.mrb[50].mxu0  ;;  %11700 = vmatprep.mubr.msk.f32.mxu0 %vm12419_vm6, %v12415_v0  ;;  %12163 = vmatprep.subr.bf16.mxu0 %v12162_v7 }
 0x26d   : > { %v3691_v28 = vadd.f32 %v3690_v3, %v3620_v58  ;;  %v3692_v35 = vpop.f32.mrb[51].mxu0  ;;  %v3760_v60 = vpop.f32.mrb[52].mxu1  ;;  %12167 = vmatprep.subr.bf16.mxu1 %v12166_v61  ;;  %v7969_v58 = vrot.slane %v13659_v46, 7  ;;  %v384_v46 = vadd.f32 %v12613_v49, %v14024_v12  ;;  %v564_v49 = vadd.f32 %v12989_v4, %v14024_v12 }
 0x26e   : > { %v3762_v6 = vpop.f32.mrb[53].mxu1  ;;  %v12180_v61 = vpack.c.bf16 %v11300_v42, %v11293_v44  ;;  %v12190_v4 = vpack.c.bf16 %v11316_v14, %v11309_v63  ;;  %v11328_v63 = vld [vmem:[%s14557_s3 + $0xb78] sm:$0xff]  ;;  %v11335_v14 = vld [vmem:[%s14557_s3 + $0xbb0] sm:$0x3] }
 0x26f   : > { %v3761_v48 = vadd.f32 %v3760_v60, %v3691_v28  ;;  %v14088_v5 = vmax.f32 %v384_v46, 0.0  ;;  %v14090_v28 = vmax.f32 %v475_v17, 0.0  ;;  %v14093_v35 = vmax.f32 %v564_v49, 0.0  ;;  %v11304_v6 = vld [vmem:[%s14557_s3 + $0xae8] sm:$0x3] }
 0x270   : > { %v473_v60 = vadd.f32 %v12695_v33, %v14024_v12  ;;  %v11308_v33 = vld [vmem:[%s14557_s3 + $0xaf0] sm:$0xff]  ;;  %v11321_v17 = vld [vmem:[%s14557_s3 + $0xb58] sm:$0x3] }
 0x271   : > { %11701 = vmatmul.mubr.msk.f32.vlgmr.msra.gmra.mrb[104].mxu0 %vm728_vm4, %v7654_v13  ;;  %v12192_v34 = vpack.c.bf16 %v11315_v16, %v11308_v33  ;;  %v8593_v42 = vrot.slane %v14088_v5, 1  ;;  %v8596_v46 = vrot.slane %v14090_v28, 1  ;;  %v8911_v33 = vrot.slane %v14056_v41, 2 }
 0x272   : > { %8051 = vmatmul.mubr.f32.vlgmr.msra.gmra.mrb[106].mxu1 %v7965_v53  ;;  %12165 = vmatpush1.bf16.xpose.msra.mxu0 %v12164_v9  ;;  %v562_v9 = vadd.f32 %v12979_v62, %v14024_v12  ;;  %v11311_v62 = vld [vmem:[%s14557_s3 + $0xb08] sm:$0xff]  ;;  %v11318_v53 = vld [vmem:[%s14557_s3 + $0xb40] sm:$0x3]  ;;  %v14127_v22 = vmax.f32 %v473_v60, 0.0 }
 0x273   : > { %8120 = vmatprep.mubr.f32.mxu0 %v7968_v18  ;;  %12169 = vmatpush1.bf16.xpose.msra.mxu1 %v12168_v15  ;;  %v12194_v25 = vpack.c.bf16 %v11318_v53, %v11311_v62  ;;  %v11329_v62 = vld [vmem:[%s14557_s3 + $0xb80] sm:$0xff]  ;;  %v11336_v53 = vld [vmem:[%s14557_s3 + $0xbb8] sm:$0x3] }
 0x274   : > { %8190 = vmatprep.mubr.f32.mxu1 %v7970_v26  ;;  %v3830_v56 = vpop.f32.mrb[52].mxu0  ;;  %12170 = vmatprep.subr.bf16.mxu0 %v12418_v47  ;;  %v11313_v26 = vld [vmem:[%s14557_s3 + $0xb18] sm:$0xff]  ;;  %v14129_v24 = vmax.f32 %v562_v9, 0.0 }
 0x275   : > { %v3831_v2 = vadd.f32 %v3830_v56, %v3761_v48  ;;  %v11611_v27 = vpop.f32.mrb[53].mxu0  ;;  %v3937_v31 = vpop.f32.mrb[54].mxu1  ;;  %12175 = vmatprep.subr.bf16.mxu1 %v12174_v19  ;;  %v12187_v19 = vpack.c.bf16 %v11304_v6, %v11297_v8  ;;  %v8595_v8 = vrot.slane %v14127_v22, 1 }
 0x276   : > { %v3939_v11 = vpop.f32.mrb[55].mxu1  ;;  %v12198_v27 = vpack.c.bf16 %v11320_v20, %v11313_v26  ;;  %v8597_v9 = vrot.slane %v14129_v24, 1 }
 0x277   : > { %v3834_v39 = vadd.f32 %v3831_v2, %v3511_v54  ;;  %v11302_v54 = vld [vmem:[%s14557_s3 + $0xad8] sm:$0x3]  ;;  %v8594_v2 = vrot.slane %v14056_v41, 1 }
 0x278   : > { %v12184_v1 = vpack.c.bf16 %v11302_v54, %v11295_v52  ;;  %v8598_v52 = vrot.slane %v14093_v35, 1  ;;  %v11314_v54 = vld [vmem:[%s14557_s3 + $0xb20] sm:$0xff] }
 0x279   : > { %8121 = vmatmul.mubr.f32.vlgmr.msra.gmra.mrb[106].mxu0 %v7967_v50  ;;  %v12196_v50 = vpack.c.bf16 %v11317_v23, %v11310_v55  ;;  %v8910_v55 = vrot.slane %v14088_v5, 2  ;;  %v8913_v23 = vrot.slane %v14090_v28, 2 }
 0x27a   : > { %8191 = vmatmul.mubr.f32.vlgmr.msra.gmra.mrb[108].mxu1 %v7969_v58  ;;  %12173 = vmatpush3.bf16.xpose.msk.msra.mxu0 %vm12671_vm5, %v12171_v32  ;;  %v11312_v32 = vld [vmem:[%s14557_s3 + $0xb10] sm:$0xff]  ;;  %v11333_v58 = vld [vmem:[%s14557_s3 + $0xba0] sm:$0x3] }
 0x27b   : > { %12177 = vmatpush1.bf16.xpose.msra.mxu1 %v12176_v40  ;;  %8355 = vmatprep.mubr.f32.mxu1 %v14056_v41  ;;  %v11326_v40 = vld [vmem:[%s14557_s3 + $0xb68] sm:$0xff] }
 0x27c   : > { %v4007_v45 = vpop.f32.mrb[54].mxu0  ;;  %11707 = vmatprep.mubr.msk.f32.mxu0 %vm12419_vm6, %v12415_v0  ;;  %12179 = vmatprep.subr.bf16.mxu0 %v12178_v38 }
 0x27d   : > { %v4008_v59 = vadd.f32 %v4007_v45, %v3937_v31  ;;  %v4009_v43 = vpop.f32.mrb[55].mxu0  ;;  %v4077_v7 = vpop.f32.mrb[56].mxu1  ;;  %12183 = vmatprep.subr.bf16.mxu1 %v12182_v30  ;;  %v648_v31 = vadd.f32 %v12970_v57, %v14024_v12  ;;  %v11319_v57 = vld [vmem:[%s14557_s3 + $0xb48] sm:$0x3]  ;;  %v12206_v45 = vpack.c.bf16 %v11333_v58, %v11326_v40 }
 0x27e   : > { %v4079_v29 = vpop.f32.mrb[57].mxu1  ;;  %v12200_v44 = vpack.c.bf16 %v11319_v57, %v11312_v32  ;;  %v11325_v43 = vld [vmem:[%s14557_s3 + $0xb60] sm:$0xff]  ;;  %v8915_v32 = vrot.slane %v14093_v35, 2  ;;  %v11331_v57 = vld [vmem:[%s14557_s3 + $0xb90] sm:$0xff] }
 0x27f   : > { %v4078_v3 = vadd.f32 %v4077_v7, %v4008_v59  ;;  %v14158_v38 = vmax.f32 %v648_v31, 0.0  ;;  %v11332_v7 = vld [vmem:[%s14557_s3 + $0xb98] sm:$0x3]  ;;  %v12216_v31 = vpack.c.bf16 %v11336_v53, %v11329_v62  ;;  %v9232_v53 = vrot.slane %v14093_v35, 3 }
 0x280   : > { %v12208_v6 = vpack.c.bf16 %v11332_v7, %v11325_v43  ;;  %v8914_v43 = vrot.slane %v14129_v24, 2 }
 0x281   : > { %11708 = vmatmul.mubr.msk.f32.vlgmr.msra.gmra.mrb[108].mxu0 %vm728_vm4, %v7971_v37  ;;  %v12203_v37 = vpack.c.bf16 %v11321_v17, %v11314_v54  ;;  %v8912_v17 = vrot.slane %v14127_v22, 2 }
 0x282   : > { %8356 = vmatmul.mubr.f32.vlgmr.msra.gmra.mrb[110].mxu1 %v14088_v5  ;;  %12181 = vmatpush1.bf16.xpose.msra.mxu0 %v12180_v61 }
 0x283   : > { %8425 = vmatprep.mubr.f32.mxu0 %v14090_v28  ;;  %12185 = vmatpush1.bf16.xpose.msra.mxu1 %v12184_v1  ;;  %v11330_v1 = vld [vmem:[%s14557_s3 + $0xb88] sm:$0xff] }
 0x284   : > { %8495 = vmatprep.mubr.f32.mxu1 %v14093_v35  ;;  %v4147_v10 = vpop.f32.mrb[56].mxu0  ;;  %12186 = vmatprep.subr.bf16.mxu0 %v12418_v47 }
 0x285   : > { %v4148_v48 = vadd.f32 %v4147_v10, %v4078_v3  ;;  %v11618_v13 = vpop.f32.mrb[57].mxu0  ;;  %v4254_v15 = vpop.f32.mrb[58].mxu1  ;;  %12191 = vmatprep.subr.bf16.mxu1 %v12190_v4  ;;  %v11337_v4 = vld [vmem:[%s14557_s3 + $0xbc0] sm:$0x3]  ;;  %v12210_v10 = vpack.c.bf16 %v11335_v14, %v11328_v63  ;;  %v11351_v63 = vld [vmem:[%s14557_s3 + $0xc18] sm:$0x3] }
 0x286   : > { %v4256_v18 = vpop.f32.mrb[59].mxu1  ;;  %v12214_v16 = vpack.c.bf16 %v11337_v4, %v11330_v1  ;;  %v11334_v13 = vld [vmem:[%s14557_s3 + $0xba8] sm:$0x3] }
 0x287   : > { %v4151_v56 = vadd.f32 %v4148_v48, %v3834_v39  ;;  %v11327_v48 = vld [vmem:[%s14557_s3 + $0xb70] sm:$0xff] }
 0x289   : > { %8426 = vmatmul.mubr.f32.vlgmr.msra.gmra.mrb[110].mxu0 %v14127_v22 }
 0x28a   : > { %8496 = vmatmul.mubr.f32.vlgmr.msra.gmra.mrb[112].mxu1 %v14129_v24  ;;  %12189 = vmatpush3.bf16.xpose.msk.msra.mxu0 %vm12671_vm5, %v12187_v19 }
 0x28b   : > { %12193 = vmatpush1.bf16.xpose.msra.mxu1 %v12192_v34  ;;  %8678 = vmatprep.mubr.f32.mxu1 %v8594_v2  ;;  %v11343_v34 = vld [vmem:[%s14557_s3 + $0xbd8] sm:$0xff] }
 0x28c   : > { %v4324_v11 = vpop.f32.mrb[58].mxu0  ;;  %11714 = vmatprep.mubr.msk.f32.mxu0 %vm12419_vm6, %v12415_v0  ;;  %12195 = vmatprep.subr.bf16.mxu0 %v12194_v25  ;;  %v11350_v25 = vld [vmem:[%s14557_s3 + $0xc10] sm:$0x3] }
 0x28d   : > { %v4325_v12 = vadd.f32 %v4324_v11, %v4254_v15  ;;  %v4326_v36 = vpop.f32.mrb[59].mxu0  ;;  %v4394_v51 = vpop.f32.mrb[60].mxu1  ;;  %12199 = vmatprep.subr.bf16.mxu1 %v12198_v27  ;;  %v8599_v27 = vrot.slane %v14158_v38, 1  ;;  %v12222_v11 = vpack.c.bf16 %v11350_v25, %v11343_v34 }
 0x28e   : > { %v4396_v39 = vpop.f32.mrb[61].mxu1 }
 0x28f   : > { %v4395_v30 = vadd.f32 %v4394_v51, %v4325_v12  ;;  %v11338_v12 = vld [vmem:[%s14557_s3 + $0xbc8] sm:$0x3]  ;;  %v11342_v51 = vld [vmem:[%s14557_s3 + $0xbd0] sm:$0xff] }
 0x290   : > { %v11349_v39 = vld [vmem:[%s14557_s3 + $0xc08] sm:$0x3] }
 0x291   : > { %11715 = vmatmul.mubr.msk.f32.vlgmr.msra.gmra.mrb[112].mxu0 %vm728_vm4, %v14158_v38 }
 0x292   : > { %8679 = vmatmul.mubr.f32.vlgmr.msra.gmra.mrb[114].mxu1 %v8593_v42  ;;  %12197 = vmatpush1.bf16.xpose.msra.mxu0 %v12196_v50 }
 0x293   : > { %8748 = vmatprep.mubr.f32.mxu0 %v8596_v46  ;;  %12201 = vmatpush1.bf16.xpose.msra.mxu1 %v12200_v44  ;;  %v11352_v44 = vld [vmem:[%s14557_s3 + $0xc20] sm:$0x3]  ;;  %v12219_v46 = vpack.c.bf16 %v11338_v12, %v11331_v57  ;;  %v9229_v12 = vrot.slane %v14127_v22, 3 }
 0x294   : > { %8818 = vmatprep.mubr.f32.mxu1 %v8598_v52  ;;  %v4464_v59 = vpop.f32.mrb[60].mxu0  ;;  %12202 = vmatprep.subr.bf16.mxu0 %v12418_v47  ;;  %v11354_v52 = vld [vmem:[%s14557_s3 + $0xc30] sm:$0x3] }
 0x295   : > { %v4465_v49 = vadd.f32 %v4464_v59, %v4395_v30  ;;  %v11625_v29 = vpop.f32.mrb[61].mxu0  ;;  %v4571_v61 = vpop.f32.mrb[62].mxu1  ;;  %12207 = vmatprep.subr.bf16.mxu1 %v12206_v45  ;;  %v11345_v30 = vld [vmem:[%s14557_s3 + $0xbe8] sm:$0xff]  ;;  %v11347_v45 = vld [vmem:[%s14557_s3 + $0xbf8] sm:$0xff]  ;;  %v12224_v59 = vpack.c.bf16 %v11349_v39, %v11342_v51  ;;  %v9231_v51 = vrot.slane %v14129_v24, 3 }
 0x296   : > { %v4573_v3 = vpop.f32.mrb[63].mxu1  ;;  %v12226_v7 = vpack.c.bf16 %v11352_v44, %v11345_v30  ;;  %v12230_v29 = vpack.c.bf16 %v11354_v52, %v11347_v45  ;;  %v11368_v30 = vld [vmem:[%s14557_s3 + $0xc88] sm:$0x3] }
 0x297   : > { %v4468_v60 = vadd.f32 %v4465_v49, %v4151_v56  ;;  %v12212_v56 = vpack.c.bf16 %v11334_v13, %v11327_v48  ;;  %v9228_v49 = vrot.slane %v14056_v41, 3  ;;  %v11346_v3 = vld [vmem:[%s14557_s3 + $0xbf0] sm:$0xff]  ;;  %v9227_v13 = vrot.slane %v14088_v5, 3 }
 0x299   : > { %8749 = vmatmul.mubr.f32.vlgmr.msra.gmra.mrb[114].mxu0 %v8595_v8 }
 0x29a   : > { %8819 = vmatmul.mubr.f32.vlgmr.msra.gmra.mrb[116].mxu1 %v8597_v9  ;;  %12205 = vmatpush3.bf16.xpose.msk.msra.mxu0 %vm12671_vm5, %v12203_v37  ;;  %v11353_v37 = vld [vmem:[%s14557_s3 + $0xc28] sm:$0x3] }
 0x29b   : > { %12209 = vmatpush1.bf16.xpose.msra.mxu1 %v12208_v6  ;;  %8995 = vmatprep.mubr.f32.mxu1 %v8911_v33  ;;  %v11360_v9 = vld [vmem:[%s14557_s3 + $0xc48] sm:$0xff]  ;;  %v12232_v48 = vpack.c.bf16 %v11353_v37, %v11346_v3  ;;  %v9549_v37 = vrot.slane %v14093_v35, 4 }
 0x29c   : > { %v4641_v15 = vpop.f32.mrb[62].mxu0  ;;  %11721 = vmatprep.mubr.msk.f32.mxu0 %vm12419_vm6, %v12415_v0  ;;  %12211 = vmatprep.subr.bf16.mxu0 %v12210_v10  ;;  %v11367_v10 = vld [vmem:[%s14557_s3 + $0xc80] sm:$0x3] }
 0x29d   : > { %v4642_v18 = vadd.f32 %v4641_v15, %v4571_v61  ;;  %v4643_v19 = vpop.f32.mrb[63].mxu0  ;;  %v4711_v26 = vpop.f32.mrb[64].mxu1  ;;  %12215 = vmatprep.subr.bf16.mxu1 %v12214_v16  ;;  %v11344_v61 = vld [vmem:[%s14557_s3 + $0xbe0] sm:$0xff]  ;;  %v8916_v16 = vrot.slane %v14158_v38, 2  ;;  %v9230_v15 = vrot.slane %v14090_v28, 3  ;;  %v12238_v62 = vpack.c.bf16 %v11367_v10, %v11360_v9 }
 0x29e   : > { %v4713_v20 = vpop.f32.mrb[65].mxu1  ;;  %v12228_v6 = vpack.c.bf16 %v11351_v63, %v11344_v61  ;;  %v11355_v19 = vld [vmem:[%s14557_s3 + $0xc38] sm:$0x3]  ;;  %v9544_v63 = vrot.slane %v14088_v5, 4 }
 0x29f   : > { %v4712_v2 = vadd.f32 %v4711_v26, %v4642_v18  ;;  %v11348_v18 = vld [vmem:[%s14557_s3 + $0xc00] sm:$0xff] }
 0x2a0   : > { %v11359_v20 = vld [vmem:[%s14557_s3 + $0xc40] sm:$0xff] }
 0x2a1   : > { %11722 = vmatmul.mubr.msk.f32.vlgmr.msra.gmra.mrb[116].mxu0 %vm728_vm4, %v8599_v27  ;;  %v11362_v27 = vld [vmem:[%s14557_s3 + $0xc58] sm:$0xff] }
 0x2a2   : > { %8996 = vmatmul.mubr.f32.vlgmr.msra.gmra.mrb[118].mxu1 %v8910_v55  ;;  %12213 = vmatpush1.bf16.xpose.msra.mxu0 %v12212_v56  ;;  %v11366_v56 = vld [vmem:[%s14557_s3 + $0xc78] sm:$0x3] }
 0x2a3   : > { %9065 = vmatprep.mubr.f32.mxu0 %v8913_v23  ;;  %12217 = vmatpush1.bf16.xpose.msra.mxu1 %v12216_v31  ;;  %v11369_v31 = vld [vmem:[%s14557_s3 + $0xc90] sm:$0x3]  ;;  %v12235_v23 = vpack.c.bf16 %v11355_v19, %v11348_v18  ;;  %v9546_v19 = vrot.slane %v14127_v22, 4 }
 0x2a4   : > { %9135 = vmatprep.mubr.f32.mxu1 %v8915_v32  ;;  %v4781_v36 = vpop.f32.mrb[64].mxu0  ;;  %12218 = vmatprep.subr.bf16.mxu0 %v12418_v47  ;;  %v11371_v32 = vld [vmem:[%s14557_s3 + $0xca0] sm:$0x3]  ;;  %v12242_v39 = vpack.c.bf16 %v11369_v31, %v11362_v27  ;;  %v11385_v27 = vld [vmem:[%s14557_s3 + $0xcf8] sm:$0x3] }
 0x2a5   : > { %v4782_v50 = vadd.f32 %v4781_v36, %v4712_v2  ;;  %v11632_v40 = vpop.f32.mrb[65].mxu0  ;;  %v4888_v58 = vpop.f32.mrb[66].mxu1  ;;  %12223 = vmatprep.subr.bf16.mxu1 %v12222_v11  ;;  %v11364_v11 = vld [vmem:[%s14557_s3 + $0xc68] sm:$0xff]  ;;  %v12240_v36 = vpack.c.bf16 %v11366_v56, %v11359_v20  ;;  %v9548_v20 = vrot.slane %v14129_v24, 4 }
 0x2a6   : > { %v4890_v42 = vpop.f32.mrb[67].mxu1  ;;  %v12246_v40 = vpack.c.bf16 %v11371_v32, %v11364_v11 }
 0x2a7   : > { %v4785_v54 = vadd.f32 %v4782_v50, %v4468_v60  ;;  %v9545_v50 = vrot.slane %v14056_v41, 4  ;;  %v11363_v42 = vld [vmem:[%s14557_s3 + $0xc60] sm:$0xff] }
 0x2a9   : > { %9066 = vmatmul.mubr.f32.vlgmr.msra.gmra.mrb[118].mxu0 %v8912_v17 }
 0x2aa   : > { %9136 = vmatmul.mubr.f32.vlgmr.msra.gmra.mrb[120].mxu1 %v8914_v43  ;;  %12221 = vmatpush3.bf16.xpose.msk.msra.mxu0 %vm12671_vm5, %v12219_v46  ;;  %v11370_v46 = vld [vmem:[%s14557_s3 + $0xc98] sm:$0x3] }
 0x2ab   : > { %12225 = vmatpush1.bf16.xpose.msra.mxu1 %v12224_v59  ;;  %9312 = vmatprep.mubr.f32.mxu1 %v9228_v49  ;;  %v11377_v43 = vld [vmem:[%s14557_s3 + $0xcb8] sm:$0xff]  ;;  %v12248_v61 = vpack.c.bf16 %v11370_v46, %v11363_v42  ;;  %v9866_v46 = vrot.slane %v14093_v35, 5 }
 0x2ac   : > { %v4958_v14 = vpop.f32.mrb[66].mxu0  ;;  %11728 = vmatprep.mubr.msk.f32.mxu0 %vm12419_vm6, %v12415_v0  ;;  %12227 = vmatprep.subr.bf16.mxu0 %v12226_v7  ;;  %v11384_v7 = vld [vmem:[%s14557_s3 + $0xcf0] sm:$0x3] }
 0x2ad   : > { %v4959_v1 = vadd.f32 %v4958_v14, %v4888_v58  ;;  %v4960_v4 = vpop.f32.mrb[67].mxu0  ;;  %v5028_v60 = vpop.f32.mrb[68].mxu1  ;;  %12231 = vmatprep.subr.bf16.mxu1 %v12230_v29  ;;  %v11361_v58 = vld [vmem:[%s14557_s3 + $0xc50] sm:$0xff]  ;;  %v9233_v29 = vrot.slane %v14158_v38, 3  ;;  %v9547_v14 = vrot.slane %v14090_v28, 4  ;;  %v12254_v3 = vpack.c.bf16 %v11384_v7, %v11377_v43 }
 0x2ae   : > { %v5030_v8 = vpop.f32.mrb[69].mxu1  ;;  %v12244_v59 = vpack.c.bf16 %v11368_v30, %v11361_v58  ;;  %v11372_v4 = vld [vmem:[%s14557_s3 + $0xca8] sm:$0x3]  ;;  %v9861_v30 = vrot.slane %v14088_v5, 5 }
 0x2af   : > { %v5029_v33 = vadd.f32 %v5028_v60, %v4959_v1  ;;  %v11365_v1 = vld [vmem:[%s14557_s3 + $0xc70] sm:$0xff] }
 0x2b0   : > { %v11376_v8 = vld [vmem:[%s14557_s3 + $0xcb0] sm:$0xff] }
 0x2b1   : > { %11729 = vmatmul.mubr.msk.f32.vlgmr.msra.gmra.mrb[120].mxu0 %vm728_vm4, %v8916_v16  ;;  %v11379_v16 = vld [vmem:[%s14557_s3 + $0xcc8] sm:$0xff] }
 0x2b2   : > { %9313 = vmatmul.mubr.f32.vlgmr.msra.gmra.mrb[122].mxu1 %v9227_v13  ;;  %12229 = vmatpush1.bf16.xpose.msra.mxu0 %v12228_v6  ;;  %v11383_v6 = vld [vmem:[%s14557_s3 + $0xce8] sm:$0x3] }
 0x2b3   : > { %9382 = vmatprep.mubr.f32.mxu0 %v9230_v15  ;;  %12233 = vmatpush1.bf16.xpose.msra.mxu1 %v12232_v48  ;;  %v11386_v48 = vld [vmem:[%s14557_s3 + $0xd00] sm:$0x3]  ;;  %v12251_v15 = vpack.c.bf16 %v11372_v4, %v11365_v1  ;;  %v9863_v4 = vrot.slane %v14127_v22, 5 }
 0x2b4   : > { %9452 = vmatprep.mubr.f32.mxu1 %v9232_v53  ;;  %v5098_v26 = vpop.f32.mrb[68].mxu0  ;;  %12234 = vmatprep.subr.bf16.mxu0 %v12418_v47  ;;  %v11388_v53 = vld [vmem:[%s14557_s3 + $0xd10] sm:$0x3]  ;;  %v12258_v56 = vpack.c.bf16 %v11386_v48, %v11379_v16  ;;  %v11402_v16 = vld [vmem:[%s14557_s3 + $0xd68] sm:$0x3] }
 0x2b5   : > { %v5099_v34 = vadd.f32 %v5098_v26, %v5029_v33  ;;  %v11639_v25 = vpop.f32.mrb[69].mxu0  ;;  %v5205_v2 = vpop.f32.mrb[70].mxu1  ;;  %12239 = vmatprep.subr.bf16.mxu1 %v12238_v62  ;;  %v11381_v62 = vld [vmem:[%s14557_s3 + $0xcd8] sm:$0xff]  ;;  %v12256_v26 = vpack.c.bf16 %v11383_v6, %v11376_v8  ;;  %v9865_v8 = vrot.slane %v14129_v24, 5 }
 0x2b6   : > { %v5207_v55 = vpop.f32.mrb[71].mxu1  ;;  %v12262_v25 = vpack.c.bf16 %v11388_v53, %v11381_v62 }
 0x2b7   : > { %v5102_v57 = vadd.f32 %v5099_v34, %v4785_v54  ;;  %v9862_v34 = vrot.slane %v14056_v41, 5  ;;  %v11380_v55 = vld [vmem:[%s14557_s3 + $0xcd0] sm:$0xff] }
 0x2b9   : > { %9383 = vmatmul.mubr.f32.vlgmr.msra.gmra.mrb[122].mxu0 %v9229_v12 }
 0x2ba   : > { %9453 = vmatmul.mubr.f32.vlgmr.msra.gmra.mrb[124].mxu1 %v9231_v51  ;;  %12237 = vmatpush3.bf16.xpose.msk.msra.mxu0 %vm12671_vm5, %v12235_v23  ;;  %v11387_v23 = vld [vmem:[%s14557_s3 + $0xd08] sm:$0x3] }
 0x2bb   : > { %12241 = vmatpush1.bf16.xpose.msra.mxu1 %v12240_v36  ;;  %9629 = vmatprep.mubr.f32.mxu1 %v9545_v50  ;;  %v11394_v51 = vld [vmem:[%s14557_s3 + $0xd28] sm:$0xff]  ;;  %v12264_v58 = vpack.c.bf16 %v11387_v23, %v11380_v55  ;;  %v10183_v23 = vrot.slane %v14093_v35, 6 }
 0x2bc   : > { %v5275_v44 = vpop.f32.mrb[70].mxu0  ;;  %11735 = vmatprep.mubr.msk.f32.mxu0 %vm12419_vm6, %v12415_v0  ;;  %12243 = vmatprep.subr.bf16.mxu0 %v12242_v39  ;;  %v11401_v39 = vld [vmem:[%s14557_s3 + $0xd60] sm:$0x3] }
 0x2bd   : > { %v5276_v45 = vadd.f32 %v5275_v44, %v5205_v2  ;;  %v5277_v52 = vpop.f32.mrb[71].mxu0  ;;  %v5345_v54 = vpop.f32.mrb[72].mxu1  ;;  %12247 = vmatprep.subr.bf16.mxu1 %v12246_v40  ;;  %v11378_v2 = vld [vmem:[%s14557_s3 + $0xcc0] sm:$0xff]  ;;  %v9550_v40 = vrot.slane %v14158_v38, 4  ;;  %v9864_v44 = vrot.slane %v14090_v28, 5  ;;  %v12270_v42 = vpack.c.bf16 %v11401_v39, %v11394_v51 }
 0x2be   : > { %v5347_v17 = vpop.f32.mrb[73].mxu1  ;;  %v12260_v36 = vpack.c.bf16 %v11385_v27, %v11378_v2  ;;  %v11389_v52 = vld [vmem:[%s14557_s3 + $0xd18] sm:$0x3]  ;;  %v10178_v27 = vrot.slane %v14088_v5, 6 }
 0x2bf   : > { %v5346_v49 = vadd.f32 %v5345_v54, %v5276_v45  ;;  %v11382_v45 = vld [vmem:[%s14557_s3 + $0xce0] sm:$0xff] }
 0x2c0   : > { %v11393_v17 = vld [vmem:[%s14557_s3 + $0xd20] sm:$0xff] }
 0x2c1   : > { %11736 = vmatmul.mubr.msk.f32.vlgmr.msra.gmra.mrb[124].mxu0 %vm728_vm4, %v9233_v29  ;;  %v11396_v29 = vld [vmem:[%s14557_s3 + $0xd38] sm:$0xff] }
 0x2c2   : > { %9630 = vmatmul.mubr.f32.vlgmr.msra.gmra.mrb[126].mxu1 %v9544_v63  ;;  %12245 = vmatpush1.bf16.xpose.msra.mxu0 %v12244_v59  ;;  %v11400_v59 = vld [vmem:[%s14557_s3 + $0xd58] sm:$0x3] }
 0x2c3   : > { %9699 = vmatprep.mubr.f32.mxu0 %v9547_v14  ;;  %12249 = vmatpush1.bf16.xpose.msra.mxu1 %v12248_v61  ;;  %v11403_v61 = vld [vmem:[%s14557_s3 + $0xd70] sm:$0x3]  ;;  %v12267_v14 = vpack.c.bf16 %v11389_v52, %v11382_v45  ;;  %v10180_v52 = vrot.slane %v14127_v22, 6 }
 0x2c4   : > { %9769 = vmatprep.mubr.f32.mxu1 %v9549_v37  ;;  %v5415_v60 = vpop.f32.mrb[72].mxu0  ;;  %12250 = vmatprep.subr.bf16.mxu0 %v12418_v47  ;;  %v11405_v37 = vld [vmem:[%s14557_s3 + $0xd80] sm:$0x3]  ;;  %v12274_v6 = vpack.c.bf16 %v11403_v61, %v11396_v29  ;;  %v11419_v29 = vld [vmem:[%s14557_s3 + $0xdd8] sm:$0x3] }
 0x2c5   : > { %v5416_v9 = vadd.f32 %v5415_v60, %v5346_v49  ;;  %v11646_v10 = vpop.f32.mrb[73].mxu0  ;;  %v5522_v33 = vpop.f32.mrb[74].mxu1  ;;  %12255 = vmatprep.subr.bf16.mxu1 %v12254_v3  ;;  %v11398_v3 = vld [vmem:[%s14557_s3 + $0xd48] sm:$0xff]  ;;  %v12272_v60 = vpack.c.bf16 %v11400_v59, %v11393_v17  ;;  %v10182_v17 = vrot.slane %v14129_v24, 6 }
 0x2c6   : > { %v5524_v13 = vpop.f32.mrb[75].mxu1  ;;  %v12278_v10 = vpack.c.bf16 %v11405_v37, %v11398_v3 }
 0x2c7   : > { %v5419_v18 = vadd.f32 %v5416_v9, %v5102_v57  ;;  %v10179_v9 = vrot.slane %v14056_v41, 6  ;;  %v11397_v13 = vld [vmem:[%s14557_s3 + $0xd40] sm:$0xff] }
 0x2c9   : > { %9700 = vmatmul.mubr.f32.vlgmr.msra.gmra.mrb[126].mxu0 %v9546_v19 }
 0x2ca   : > { %9770 = vmatmul.mubr.f32.vlgmr.msra.gmra.mrb[128].mxu1 %v9548_v20  ;;  %12253 = vmatpush3.bf16.xpose.msk.msra.mxu0 %vm12671_vm5, %v12251_v15  ;;  %v11404_v15 = vld [vmem:[%s14557_s3 + $0xd78] sm:$0x3] }
 0x2cb   : > { %12257 = vmatpush1.bf16.xpose.msra.mxu1 %v12256_v26  ;;  %9946 = vmatprep.mubr.f32.mxu1 %v9862_v34  ;;  %v11411_v20 = vld [vmem:[%s14557_s3 + $0xd98] sm:$0xff]  ;;  %v12280_v2 = vpack.c.bf16 %v11404_v15, %v11397_v13 }
 0x2cc   : > { %v5592_v31 = vpop.f32.mrb[74].mxu0  ;;  %11742 = vmatprep.mubr.msk.f32.mxu0 %vm12419_vm6, %v12415_v0  ;;  %12259 = vmatprep.subr.bf16.mxu0 %v12258_v56  ;;  %v11418_v56 = vld [vmem:[%s14557_s3 + $0xdd0] sm:$0x3] }
 0x2cd   : > { %v5593_v11 = vadd.f32 %v5592_v31, %v5522_v33  ;;  %v5594_v32 = vpop.f32.mrb[75].mxu0  ;;  %v5662_v57 = vpop.f32.mrb[76].mxu1  ;;  %12263 = vmatprep.subr.bf16.mxu1 %v12262_v25  ;;  %v11395_v33 = vld [vmem:[%s14557_s3 + $0xd30] sm:$0xff]  ;;  %v9867_v25 = vrot.slane %v14158_v38, 5  ;;  %v10181_v31 = vrot.slane %v14090_v28, 6  ;;  %v12286_v55 = vpack.c.bf16 %v11418_v56, %v11411_v20 }
 0x2ce   : > { %v5664_v12 = vpop.f32.mrb[77].mxu1  ;;  %v12276_v26 = vpack.c.bf16 %v11402_v16, %v11395_v33  ;;  %v11406_v32 = vld [vmem:[%s14557_s3 + $0xd88] sm:$0x3]  ;;  %v10500_v33 = vrot.slane %v14093_v35, 7  ;;  %v11416_v16 = vld [vmem:[%s14557_s3 + $0xdc0] sm:$0xff] }
 0x2cf   : > { %v5663_v50 = vadd.f32 %v5662_v57, %v5593_v11  ;;  %v11399_v11 = vld [vmem:[%s14557_s3 + $0xd50] sm:$0xff] }
 0x2d0   : > { %v11410_v12 = vld [vmem:[%s14557_s3 + $0xd90] sm:$0xff] }
 0x2d1   : > { %11743 = vmatmul.mubr.msk.f32.vlgmr.msra.gmra.mrb[128].mxu0 %vm728_vm4, %v9550_v40  ;;  %v11413_v40 = vld [vmem:[%s14557_s3 + $0xda8] sm:$0xff] }
 0x2d2   : > { %9947 = vmatmul.mubr.f32.vlgmr.msra.gmra.mrb[130].mxu1 %v9861_v30  ;;  %12261 = vmatpush1.bf16.xpose.msra.mxu0 %v12260_v36  ;;  %v11417_v36 = vld [vmem:[%s14557_s3 + $0xdc8] sm:$0x3] }
 0x2d3   : > { %10016 = vmatprep.mubr.f32.mxu0 %v9864_v44  ;;  %12265 = vmatpush1.bf16.xpose.msra.mxu1 %v12264_v58  ;;  %v11420_v58 = vld [vmem:[%s14557_s3 + $0xde0] sm:$0x3]  ;;  %v12283_v44 = vpack.c.bf16 %v11406_v32, %v11399_v11 }
 0x2d4   : > { %10086 = vmatprep.mubr.f32.mxu1 %v9866_v46  ;;  %v5732_v54 = vpop.f32.mrb[76].mxu0  ;;  %12266 = vmatprep.subr.bf16.mxu0 %v12418_v47  ;;  %v11422_v46 = vld [vmem:[%s14557_s3 + $0xdf0] sm:$0x3]  ;;  %v12290_v59 = vpack.c.bf16 %v11420_v58, %v11413_v40 }
 0x2d5   : > { %v5733_v43 = vadd.f32 %v5732_v54, %v5663_v50  ;;  %v11653_v7 = vpop.f32.mrb[77].mxu0  ;;  %v5827_v49 = vpop.f32.mrb[78].mxu1  ;;  %12271 = vmatprep.subr.bf16.mxu1 %v12270_v42  ;;  %v11415_v42 = vld [vmem:[%s14557_s3 + $0xdb8] sm:$0xff]  ;;  %v12288_v54 = vpack.c.bf16 %v11417_v36, %v11410_v12 }
 0x2d6   : > { %v5829_v63 = vpop.f32.mrb[79].mxu1  ;;  %v12294_v7 = vpack.c.bf16 %v11422_v46, %v11415_v42 }
 0x2d7   : > { %v5736_v1 = vadd.f32 %v5733_v43, %v5419_v18  ;;  %v10496_v43 = vrot.slane %v14056_v41, 7  ;;  %v11414_v41 = vld [vmem:[%s14557_s3 + $0xdb0] sm:$0xff]  ;;  %v11421_v63 = vld [vmem:[%s14557_s3 + $0xde8] sm:$0x3] }
 0x2d9   : > { %10017 = vmatmul.mubr.f32.vlgmr.msra.gmra.mrb[130].mxu0 %v9863_v4 }
 0x2da   : > { %10087 = vmatmul.mubr.f32.vlgmr.msra.gmra.mrb[132].mxu1 %v9865_v8  ;;  %12269 = vmatpush3.bf16.xpose.msk.msra.mxu0 %vm12671_vm5, %v12267_v14  ;;  %v10184_v8 = vrot.slane %v14158_v38, 6 }
 0x2db   : > { %12273 = vmatpush1.bf16.xpose.msra.mxu1 %v12272_v60  ;;  %10263 = vmatprep.mubr.f32.mxu1 %v10179_v9  ;;  %v10495_v9 = vrot.slane %v14088_v5, 7 }
 0x2dc   : > { %v5897_v48 = vpop.f32.mrb[78].mxu0  ;;  %11749 = vmatprep.mubr.msk.f32.mxu0 %vm12419_vm6, %v12415_v0  ;;  %12275 = vmatprep.subr.bf16.mxu0 %v12274_v6  ;;  %v12296_v6 = vpack.c.bf16 %v11421_v63, %v11414_v41 }
 0x2dd   : > { %v5898_v62 = vadd.f32 %v5897_v48, %v5827_v49  ;;  %v5899_v53 = vpop.f32.mrb[79].mxu0  ;;  %v5967_v18 = vpop.f32.mrb[80].mxu1  ;;  %12279 = vmatprep.subr.bf16.mxu1 %v12278_v10  ;;  %v11412_v49 = vld [vmem:[%s14557_s3 + $0xda0] sm:$0xff]  ;;  %v10498_v10 = vrot.slane %v14090_v28, 7  ;;  %v11423_v48 = vld [vmem:[%s14557_s3 + $0xdf8] sm:$0x3] }
 0x2de   : > { %v5969_v19 = vpop.f32.mrb[81].mxu1  ;;  %v12292_v4 = vpack.c.bf16 %v11419_v29, %v11412_v49  ;;  %v12299_v53 = vpack.c.bf16 %v11423_v48, %v11416_v16 }
 0x2df   : > { %v5968_v34 = vadd.f32 %v5967_v18, %v5898_v62  ;;  %v10497_v18 = vrot.slane %v14127_v22, 7  ;;  %v10499_v19 = vrot.slane %v14129_v24, 7 }
 0x2e1   : > { %11750 = vmatmul.mubr.msk.f32.vlgmr.msra.gmra.mrb[132].mxu0 %vm728_vm4, %v9867_v25 }
 0x2e2   : > { %10264 = vmatmul.mubr.f32.vlgmr.msra.gmra.mrb[134].mxu1 %v10178_v27  ;;  %12277 = vmatpush1.bf16.xpose.msra.mxu0 %v12276_v26 }
 0x2e3   : > { %10333 = vmatprep.mubr.f32.mxu0 %v10181_v31  ;;  %12281 = vmatpush1.bf16.xpose.msra.mxu1 %v12280_v2  ;;  %v10501_v2 = vrot.slane %v14158_v38, 7 }
 0x2e4   : > { %10403 = vmatprep.mubr.f32.mxu1 %v10183_v23  ;;  %v6037_v57 = vpop.f32.mrb[80].mxu0  ;;  %12282 = vmatprep.subr.bf16.mxu0 %v12418_v47 }
 0x2e5   : > { %v6038_v51 = vadd.f32 %v6037_v57, %v5968_v34  ;;  %v11660_v39 = vpop.f32.mrb[81].mxu0  ;;  %v6150_v50 = vpop.f32.mrb[82].mxu1  ;;  %12287 = vmatprep.subr.bf16.mxu1 %v12286_v55 }
 0x2e6   : > { %v6152_v30 = vpop.f32.mrb[83].mxu1 }
 0x2e7   : > { %v6041_v45 = vadd.f32 %v6038_v51, %v5736_v1 }
 0x2e9   : > { %10334 = vmatmul.mubr.f32.vlgmr.msra.gmra.mrb[134].mxu0 %v10180_v52 }
 0x2ea   : > { %10404 = vmatmul.mubr.f32.vlgmr.msra.gmra.mrb[136].mxu1 %v10182_v17  ;;  %12285 = vmatpush3.bf16.xpose.msk.msra.mxu0 %vm12671_vm5, %v12283_v44 }
 0x2eb   : > { %12289 = vmatpush1.bf16.xpose.msra.mxu1 %v12288_v54  ;;  %10580 = vmatprep.mubr.f32.mxu1 %v10496_v43 }
 0x2ec   : > { %v6220_v61 = vpop.f32.mrb[82].mxu0  ;;  %11756 = vmatprep.mubr.msk.f32.mxu0 %vm12419_vm6, %v12415_v0  ;;  %12291 = vmatprep.subr.bf16.mxu0 %v12290_v59 }
 0x2ed   : > { %v6221_v14 = vadd.f32 %v6220_v61, %v6150_v50  ;;  %v6222_v3 = vpop.f32.mrb[83].mxu0  ;;  %v6290_v37 = vpop.f32.mrb[84].mxu1  ;;  %12295 = vmatprep.subr.bf16.mxu1 %v12294_v7 }
 0x2ee   : > { %v6292_v1 = vpop.f32.mrb[85].mxu1 }
 0x2ef   : > { %v6291_v60 = vadd.f32 %v6290_v37, %v6221_v14 }
 0x2f1   : > { %11757 = vmatmul.mubr.msk.f32.vlgmr.msra.gmra.mrb[136].mxu0 %vm728_vm4, %v10184_v8 }
 0x2f2   : > { %10581 = vmatmul.mubr.f32.vlgmr.msra.gmra.mrb[138].mxu1 %v10495_v9  ;;  %12293 = vmatpush1.bf16.xpose.msra.mxu0 %v12292_v4 }
 0x2f3   : > { %10650 = vmatprep.mubr.f32.mxu0 %v10498_v10  ;;  %12297 = vmatpush1.bf16.xpose.msra.mxu1 %v12296_v6 }
 0x2f4   : > { %10720 = vmatprep.mubr.f32.mxu1 %v10500_v33  ;;  %v6360_v5 = vpop.f32.mrb[84].mxu0  ;;  %12298 = vmatprep.subr.bf16.mxu0 %v12418_v47 }
 0x2f5   : > { %v6361_v13 = vadd.f32 %v6360_v5, %v6291_v60  ;;  %v11667_v28 = vpop.f32.mrb[85].mxu0  ;;  %v6467_v15 = vpop.f32.mrb[86].mxu1 }
 0x2f6   : > { %v6469_v62 = vpop.f32.mrb[87].mxu1 }
 0x2f7   : > { %v6364_v35 = vadd.f32 %v6361_v13, %v6041_v45 }
 0x2f9   : > { %10651 = vmatmul.mubr.f32.vlgmr.msra.gmra.mrb[138].mxu0 %v10497_v18 }
 0x2fa   : > { %10721 = vmatmul.mubr.f32.vlgmr.msra.gmra.mrb[140].mxu1 %v10499_v19  ;;  %12301 = vmatpush3.bf16.xpose.msk.msra.mxu0 %vm12671_vm5, %v12299_v53 }
 0x2fb   : > { %11763 = vmatprep.mubr.msk.f32.mxu0 %vm12419_vm6, %v12415_v0 }
 0x2fc   : > { %v6537_v26 = vpop.f32.mrb[86].mxu0 }
 0x2fd   : > { %v6538_v47 = vadd.f32 %v6537_v26, %v6467_v15  ;;  %v6539_v20 = vpop.f32.mrb[87].mxu0  ;;  %v6607_v56 = vpop.f32.mrb[88].mxu1 }
 0x2fe   : > { %v6609_v34 = vpop.f32.mrb[89].mxu1 }
 0x2ff   : > { %v6608_v25 = vadd.f32 %v6607_v56, %v6538_v47 }
 0x301   : > { %11764 = vmatmul.mubr.msk.f32.vlgmr.msra.gmra.mrb[140].mxu0 %vm728_vm4, %v10501_v2 }
 0x304   : > { %v6677_v22 = vpop.f32.mrb[88].mxu0 }
 0x305   : > { %v6678_v24 = vadd.f32 %v6677_v22, %v6608_v25  ;;  %v11674_v27 = vpop.f32.mrb[89].mxu0  ;;  %v6784_v31 = vpop.f32.mrb[90].mxu1 }
 0x306   : > { %v6786_v55 = vpop.f32.mrb[91].mxu1 }
 0x307   : > { %v6681_v21 = vadd.f32 %v6678_v24, %v6364_v35 }
 0x30c   : > { %v6854_v23 = vpop.f32.mrb[90].mxu0 }
 0x30d   : > { %v6855_v11 = vadd.f32 %v6854_v23, %v6784_v31  ;;  %v6856_v32 = vpop.f32.mrb[91].mxu0  ;;  %v6924_v0 = vpop.f32.mrb[92].mxu1 }
 0x30e   : > { %v6926_v57 = vpop.f32.mrb[93].mxu1 }
 0x30f   : > { %v6925_v12 = vadd.f32 %v6924_v0, %v6855_v11 }
 0x314   : > { %v6994_v36 = vpop.f32.mrb[92].mxu0 }
 0x315   : > { %v6995_v51 = vadd.f32 %v6994_v36, %v6925_v12  ;;  %v11681_v39 = vpop.f32.mrb[93].mxu0  ;;  %v7101_v50 = vpop.f32.mrb[94].mxu1 }
 0x316   : > { %v7103_v40 = vpop.f32.mrb[95].mxu1 }
 0x317   : > { %v6998_v38 = vadd.f32 %v6995_v51, %v6681_v21 }
 0x31c   : > { %v7171_v58 = vpop.f32.mrb[94].mxu0 }
 0x31d   : > { %v7172_v30 = vadd.f32 %v7171_v58, %v7101_v50  ;;  %v7173_v44 = vpop.f32.mrb[95].mxu0  ;;  %v7241_v42 = vpop.f32.mrb[96].mxu1 }
 0x31e   : > { %v7243_v46 = vpop.f32.mrb[97].mxu1 }
 0x31f   : > { %v7242_v45 = vadd.f32 %v7241_v42, %v7172_v30 }
 0x324   : > { %v7311_v52 = vpop.f32.mrb[96].mxu0 }
 0x325   : > { %v7312_v54 = vadd.f32 %v7311_v52, %v7242_v45  ;;  %v11688_v17 = vpop.f32.mrb[97].mxu0  ;;  %v7418_v59 = vpop.f32.mrb[98].mxu1 }
 0x326   : > { %v7420_v43 = vpop.f32.mrb[99].mxu1 }
 0x327   : > { %v7315_v7 = vadd.f32 %v7312_v54, %v6998_v38 }
 0x32c   : > { %v7488_v49 = vpop.f32.mrb[98].mxu0 }
 0x32d   : > { %v7489_v29 = vadd.f32 %v7488_v49, %v7418_v59  ;;  %v7490_v61 = vpop.f32.mrb[99].mxu0  ;;  %v7558_v41 = vpop.f32.mrb[100].mxu1 }
 0x32e   : > { %v7560_v63 = vpop.f32.mrb[101].mxu1 }
 0x32f   : > { %v7559_v14 = vadd.f32 %v7558_v41, %v7489_v29 }
 0x334   : > { %v7628_v3 = vpop.f32.mrb[100].mxu0 }
 0x335   : > { %v7629_v37 = vadd.f32 %v7628_v3, %v7559_v14  ;;  %v11695_v1 = vpop.f32.mrb[101].mxu0  ;;  %v7735_v4 = vpop.f32.mrb[102].mxu1 }
 0x336   : > { %v7737_v60 = vpop.f32.mrb[103].mxu1 }
 0x337   : > { %v7632_v8 = vadd.f32 %v7629_v37, %v7315_v7 }
 0x33c   : > { %v7805_v6 = vpop.f32.mrb[102].mxu0 }
 0x33d   : > { %v7806_v9 = vadd.f32 %v7805_v6, %v7735_v4  ;;  %v7807_v10 = vpop.f32.mrb[103].mxu0  ;;  %v7875_v33 = vpop.f32.mrb[104].mxu1 }
 0x33e   : > { %v7877_v16 = vpop.f32.mrb[105].mxu1 }
 0x33f   : > { %v7876_v48 = vadd.f32 %v7875_v33, %v7806_v9 }
 0x344   : > { %v7945_v5 = vpop.f32.mrb[104].mxu0 }
 0x345   : > { %v7946_v13 = vadd.f32 %v7945_v5, %v7876_v48  ;;  %v11702_v28 = vpop.f32.mrb[105].mxu0  ;;  %v8052_v15 = vpop.f32.mrb[106].mxu1 }
 0x346   : > { %v8054_v62 = vpop.f32.mrb[107].mxu1 }
 0x347   : > { %v7949_v53 = vadd.f32 %v7946_v13, %v7632_v8 }
 0x34c   : > { %v8122_v35 = vpop.f32.mrb[106].mxu0 }
 0x34d   : > { %v8123_v18 = vadd.f32 %v8122_v35, %v8052_v15  ;;  %v8124_v19 = vpop.f32.mrb[107].mxu0  ;;  %v8192_v26 = vpop.f32.mrb[108].mxu1 }
 0x34e   : > { %v8194_v47 = vpop.f32.mrb[109].mxu1 }
 0x34f   : > { %v8193_v20 = vadd.f32 %v8192_v26, %v8123_v18 }
 0x354   : > { %v8262_v56 = vpop.f32.mrb[108].mxu0 }
 0x355   : > { %v8263_v34 = vadd.f32 %v8262_v56, %v8193_v20  ;;  %v11709_v25 = vpop.f32.mrb[109].mxu0  ;;  %v8357_v2 = vpop.f32.mrb[110].mxu1 }
 0x356   : > { %v8359_v22 = vpop.f32.mrb[111].mxu1 }
 0x357   : > { %v8266_v24 = vadd.f32 %v8263_v34, %v7949_v53 }
 0x35c   : > { %v8427_v27 = vpop.f32.mrb[110].mxu0 }
 0x35d   : > { %v8428_v31 = vadd.f32 %v8427_v27, %v8357_v2  ;;  %v8429_v55 = vpop.f32.mrb[111].mxu0  ;;  %v8497_v21 = vpop.f32.mrb[112].mxu1 }
 0x35e   : > { %v8499_v23 = vpop.f32.mrb[113].mxu1 }
 0x35f   : > { %v8498_v11 = vadd.f32 %v8497_v21, %v8428_v31 }
 0x364   : > { %v8567_v32 = vpop.f32.mrb[112].mxu0 }
 0x365   : > { %v8568_v0 = vadd.f32 %v8567_v32, %v8498_v11  ;;  %v11716_v57 = vpop.f32.mrb[113].mxu0  ;;  %v8680_v12 = vpop.f32.mrb[114].mxu1 }
 0x366   : > { %v8682_v36 = vpop.f32.mrb[115].mxu1 }
 0x367   : > { %v8571_v51 = vadd.f32 %v8568_v0, %v8266_v24 }
 0x36c   : > { %v8750_v39 = vpop.f32.mrb[114].mxu0 }
 0x36d   : > { %v8751_v50 = vadd.f32 %v8750_v39, %v8680_v12  ;;  %v8752_v40 = vpop.f32.mrb[115].mxu0  ;;  %v8820_v38 = vpop.f32.mrb[116].mxu1 }
 0x36e   : > { %v8822_v58 = vpop.f32.mrb[117].mxu1 }
 0x36f   : > { %v8821_v30 = vadd.f32 %v8820_v38, %v8751_v50 }
 0x374   : > { %v8890_v44 = vpop.f32.mrb[116].mxu0 }
 0x375   : > { %v8891_v42 = vadd.f32 %v8890_v44, %v8821_v30  ;;  %v11723_v46 = vpop.f32.mrb[117].mxu0  ;;  %v8997_v45 = vpop.f32.mrb[118].mxu1 }
 0x376   : > { %v8999_v52 = vpop.f32.mrb[119].mxu1 }
 0x377   : > { %v8894_v54 = vadd.f32 %v8891_v42, %v8571_v51 }
 0x37c   : > { %v9067_v17 = vpop.f32.mrb[118].mxu0 }
 0x37d   : > { %v9068_v59 = vadd.f32 %v9067_v17, %v8997_v45  ;;  %v9069_v43 = vpop.f32.mrb[119].mxu0  ;;  %v9137_v7 = vpop.f32.mrb[120].mxu1 }
 0x37e   : > { %v9139_v49 = vpop.f32.mrb[121].mxu1 }
 0x37f   : > { %v9138_v29 = vadd.f32 %v9137_v7, %v9068_v59 }
 0x384   : > { %v9207_v61 = vpop.f32.mrb[120].mxu0 }
 0x385   : > { %v9208_v41 = vadd.f32 %v9207_v61, %v9138_v29  ;;  %v11730_v63 = vpop.f32.mrb[121].mxu0  ;;  %v9314_v14 = vpop.f32.mrb[122].mxu1  ;;  %v10797_v29 = vld [vmem:[%s14558_s4] sm:$0x1] }
 0x386   : > { %v9316_v3 = vpop.f32.mrb[123].mxu1 }
 0x387   : > { %v9211_v37 = vadd.f32 %v9208_v41, %v8894_v54 }
 0x38c   : > { %v9384_v1 = vpop.f32.mrb[122].mxu0 }
 0x38d   : > { %v9385_v4 = vadd.f32 %v9384_v1, %v9314_v14  ;;  %v9386_v60 = vpop.f32.mrb[123].mxu0  ;;  %v9454_v8 = vpop.f32.mrb[124].mxu1 }
 0x38e   : > { %v9456_v6 = vpop.f32.mrb[125].mxu1 }
 0x38f   : > { %v9455_v9 = vadd.f32 %v9454_v8, %v9385_v4 }
 0x394   : > { %v9524_v10 = vpop.f32.mrb[124].mxu0 }
 0x395   : > { %v9525_v33 = vadd.f32 %v9524_v10, %v9455_v9  ;;  %v11737_v16 = vpop.f32.mrb[125].mxu0  ;;  %v9631_v48 = vpop.f32.mrb[126].mxu1 }
 0x396   : > { %v9633_v5 = vpop.f32.mrb[127].mxu1 }
 0x397   : > { %v9528_v13 = vadd.f32 %v9525_v33, %v9211_v37 }
 0x39c   : > { %v9701_v28 = vpop.f32.mrb[126].mxu0 }
 0x39d   : > { %v9702_v15 = vadd.f32 %v9701_v28, %v9631_v48  ;;  %v9703_v62 = vpop.f32.mrb[127].mxu0  ;;  %v9771_v53 = vpop.f32.mrb[128].mxu1 }
 0x39e   : > { %v9773_v35 = vpop.f32.mrb[129].mxu1 }
 0x39f   : > { %v9772_v18 = vadd.f32 %v9771_v53, %v9702_v15 }
 0x3a4   : > { %v9841_v19 = vpop.f32.mrb[128].mxu0 }
 0x3a5   : > { %v9842_v26 = vadd.f32 %v9841_v19, %v9772_v18  ;;  %v11744_v47 = vpop.f32.mrb[129].mxu0  ;;  %v9948_v20 = vpop.f32.mrb[130].mxu1 }
 0x3a6   : > { %v9950_v56 = vpop.f32.mrb[131].mxu1 }
 0x3a7   : > { %v9845_v34 = vadd.f32 %v9842_v26, %v9528_v13 }
 0x3ac   : > { %v10018_v25 = vpop.f32.mrb[130].mxu0 }
 0x3ad   : > { %v10019_v2 = vadd.f32 %v10018_v25, %v9948_v20  ;;  %v10020_v22 = vpop.f32.mrb[131].mxu0  ;;  %v10088_v24 = vpop.f32.mrb[132].mxu1 }
 0x3ae   : > { %v10090_v27 = vpop.f32.mrb[133].mxu1 }
 0x3af   : > { %v10089_v31 = vadd.f32 %v10088_v24, %v10019_v2 }
 0x3b4   : > { %v10158_v55 = vpop.f32.mrb[132].mxu0 }
 0x3b5   : > { %v10159_v21 = vadd.f32 %v10158_v55, %v10089_v31  ;;  %v11751_v23 = vpop.f32.mrb[133].mxu0  ;;  %v10265_v11 = vpop.f32.mrb[134].mxu1 }
 0x3b6   : > { %v10267_v32 = vpop.f32.mrb[135].mxu1 }
 0x3b7   : > { %v10162_v0 = vadd.f32 %v10159_v21, %v9845_v34 }
 0x3bc   : > { %v10335_v57 = vpop.f32.mrb[134].mxu0 }
 0x3bd   : > { %v10336_v12 = vadd.f32 %v10335_v57, %v10265_v11  ;;  %v10337_v36 = vpop.f32.mrb[135].mxu0  ;;  %v10405_v51 = vpop.f32.mrb[136].mxu1 }
 0x3be   : > { %v10407_v39 = vpop.f32.mrb[137].mxu1 }
 0x3bf   : > { %v10406_v50 = vadd.f32 %v10405_v51, %v10336_v12 }
 0x3c4   : > { %v10475_v40 = vpop.f32.mrb[136].mxu0 }
 0x3c5   : > { %v10476_v38 = vadd.f32 %v10475_v40, %v10406_v50  ;;  %v11758_v58 = vpop.f32.mrb[137].mxu0  ;;  %v10582_v30 = vpop.f32.mrb[138].mxu1 }
 0x3c6   : > { %v10584_v44 = vpop.f32.mrb[139].mxu1 }
 0x3c7   : > { %v10479_v42 = vadd.f32 %v10476_v38, %v10162_v0 }
 0x3cc   : > { %v10652_v46 = vpop.f32.mrb[138].mxu0 }
 0x3cd   : > { %v10653_v45 = vadd.f32 %v10652_v46, %v10582_v30  ;;  %v10654_v52 = vpop.f32.mrb[139].mxu0  ;;  %v10722_v54 = vpop.f32.mrb[140].mxu1 }
 0x3ce   : > { %v10724_v17 = vpop.f32.mrb[141].mxu1 }
 0x3cf   : > { %v10723_v59 = vadd.f32 %v10722_v54, %v10653_v45 }
 0x3d4   : > { %v10792_v43 = vpop.f32.mrb[140].mxu0 }
 0x3d5   : > { %v10793_v7 = vadd.f32 %v10792_v43, %v10723_v59  ;;  %v11765_v49 = vpop.f32.mrb[141].mxu0 }
 0x3d7   : > { %v10796_v61 = vadd.f32 %v10793_v7, %v10479_v42 }
 0x3d9   : > { %v10798_v41 = vadd.f32 %v10797_v29, %v10796_v61 }
 0x3db   : > { %10800 = vst.msk [vmem:[%s216_s14] sm:$0x1] %vm10799_vm7, %v10798_v41 }
 0x3dc   : > { %12364 = shalt.err (!%p12361_p3)
}
 0x3dd   : > { %s12365_s7 = scalar_lea.hbm %s14512_s23, 16  ;;  %s12369_s10 = scalar_lea.hbm %s14559_s5, 32 }
 0x3de   : > { %p12366_p4 = scmp.ne.s32.totalorder %s14512_s23, %s12365_s7  ;;  %p12370_p9 = scmp.lt.u32.totalorder %s14512_s23, %s14559_s5 }
 0x3df   : > { %p12371_p10 = scmp.lt.u32.totalorder %s12369_s10, %s12365_s7  ;;  %p12373_p12 = scmp.lt.u32.totalorder %s12365_s7, %s14512_s23 }
 0x3e0   : > { %p12367_p7 = pnand %p12366_p4, %p12489_p5 }
 0x3e1   : > { %p12372_p11 = por %p12371_p10, %p12370_p9 }
 0x3e2   : > { %p12368_p8 = pneg %p12367_p7 }
 0x3e3   : > { %p12374_p13 = por %p12373_p12, %p12372_p11 }
 0x3e5   : > { %p12375_p0 = pnand %p12374_p13, %p12368_p8 }
 0x3e7   : > { %12378 = shalt.err (!%p12375_p0)
}
 0x3e8   : > { %12305 = dma.vmem_to_hbm [thread:$0]  (%p12489_p5), %s14514_s15, 16, %s14512_s23, %s10802_s25  }
 0x3e9 PF: > { %p12311_p1 = scmp.ge.s32.totalorder %s12413_s21, 2  ;;  %s10826_s13 = sand.u32 1, %s12401_s18  }
 0x3ea   : > { %s10827_s14 = scalar_lea.sflag [#allocation3], %s10826_s13 }
 0x3eb   : > { %p12308_p2 = pnand %p12311_p1, %p12493_p6 }
 0x3ed   : > { %12396 = dma.done.wait (!%p12308_p2), %s10827_s14, 16  }
 0x3ee   : > { %12398 = vsyncadd (!%p12308_p2), %s10827_s14, 4294967280  ;;  %p15_p3 = scmp.ge.s32.totalorder %s12476_s24, 4   ;;  %s14566_s18 = smov %s12405_s19 }
 0x3ef   : > { %s14567_s19 = smov %s12409_s20  ;;  %s14568_s20 = smov %s12487_s27 }
 0x3f0   : > { %s14569_s21 = smov %s12476_s24  ;;  %17 = sbr.rel (!%p15_p3) target bundleno = 3 (0x3), region = 106 }
 0x3f7   :  { %10831 = vsyncpa [#allocation3], 1 }
 0x3f8   :  { %10833 = vsyncpa [#allocation3 + $0x1], 1 }

</bundles_post_ra>
